<compile_context>
chip_gen: v7x
topology: tpu7x:2x2x1
jax: 0.10.0
libtpu: 0.0.40
codegen_flags: <defaults>
</compile_context>

<pallas_src>
import functools

import jax
import jax.numpy as jnp
from jax.experimental import pallas as pl
from jax.experimental.pallas import tpu as pltpu


def _round_up(x, m):
    return (x + m - 1) // m * m


# ----------------------------------------------------------------------------
# Fused whole-network kernel (B_TILE samples per grid step)
# ----------------------------------------------------------------------------
def _gengnet_kernel(x1_ref, w1_ref, b1_ref, w2_ref, b2_ref, w3_ref, b3_ref,
                    w4_ref, b4_ref, wf1_ref, bf1_ref, wf2_ref, bf2_ref,
                    wf3_ref, bf3_ref, o_ref, canvas_ref,
                    *, C, W, P, NROWS, B_TILE, LEAD):
    f32 = jnp.float32
    bf16 = jnp.bfloat16
    LANES = C * B_TILE
    G = canvas_ref.shape[0]
    tap_base = LEAD - (P + 1)

    # Keep the canvas halo zero every step (megacore-safe: no reliance on
    # program_id == 0).  Halo rows double as conv2's top/bottom zero padding;
    # the interior [LEAD, LEAD + NROWS) is fully rewritten below.
    canvas_ref[0:LEAD, :] = jnp.zeros((LEAD, LANES), f32)
    canvas_ref[LEAD + NROWS:G, :] = jnp.zeros((G - LEAD - NROWS, LANES), f32)

    # ---- conv1 + BN + ReLU: one im2col MXU matmul (M=NROWS, K=9*B_TILE) ------
    y = jnp.dot(x1_ref[0].astype(bf16), w1_ref[...], preferred_element_type=f32)
    y = jnp.maximum(y + b1_ref[...], 0.0)

    # Rows with w >= W are junk columns of the padded-flat layout; zero them so
    # they double as conv2's left/right zero padding between image rows.
    row = jax.lax.broadcasted_iota(jnp.int32, (NROWS, 1), 0)
    keep = (row % P) < W
    y = jnp.where(keep, y, 0.0)
    canvas_ref[LEAD:LEAD + NROWS, :] = y

    # ---- conv2 + BN + ReLU: 9 shifted-window block-diagonal MXU matmuls ------
    acc = jnp.zeros((NROWS, LANES), f32)
    for t in range(9):
        off = tap_base + (t // 3) * P + (t % 3)
        win = canvas_ref[off:off + NROWS, :].astype(bf16)
        acc = acc + jnp.dot(win, w2_ref[t], preferred_element_type=f32)
    y = jnp.maximum(acc + b2_ref[...], 0.0)

    # ---- conv3 / conv4 (1x1 convs): block-diagonal channel matmuls -----------
    y = jnp.maximum(
        jnp.dot(y.astype(bf16), w3_ref[...], preferred_element_type=f32)
        + b3_ref[...], 0.0)
    # TODO(synk): Dropout(p=0.5) after conv4 and inside fcn1 is eval-mode identity.
    y = jnp.maximum(
        jnp.dot(y.astype(bf16), w4_ref[...], preferred_element_type=f32)
        + b4_ref[...], 0.0)                                   # (NROWS, LANES)

    # ---- fcn1 Linear(C*H*W -> 512): one transpose, then C slab matmuls -------
    # Lanes are channel-major (l = c*B_TILE + s), so each channel's slab of the
    # transposed activation is a contiguous aligned (B_TILE, NROWS) block.
    # Junk pixels carry zero rows in wf1, so no re-masking is needed.
    yt = y.T                                                  # (LANES, NROWS)
    h = jnp.zeros((B_TILE, bf1_ref.shape[-1]), f32)
    for c in range(C):
        part = yt[c * B_TILE:(c + 1) * B_TILE, :].astype(bf16)
        h = h + jnp.dot(part, wf1_ref[c], preferred_element_type=f32)
    h = jnp.maximum(h + bf1_ref[...], 0.0)                    # (B_TILE, 512)

    # ---- fcn1 Linear(512 -> 128) + ReLU ---------------------------------------
    h = jnp.dot(h.astype(bf16), wf2_ref[...], preferred_element_type=f32)
    h = jnp.maximum(h + bf2_ref[...], 0.0)                    # (B_TILE, 128)

    # ---- fcn2 + exact softmax (padded logit columns carry a -1e9 bias) --------
    logits = jnp.dot(h, wf3_ref[...], preferred_element_type=f32) + bf3_ref[...]
    logits = logits - jnp.max(logits, axis=-1, keepdims=True)
    e = jnp.exp(logits)
    o_ref[...] = e / jnp.sum(e, axis=-1, keepdims=True)       # (B_TILE, 128)


# ----------------------------------------------------------------------------
# Wrapper: one pallas_call for the whole forward pass
# ----------------------------------------------------------------------------
def gengnet_forward(params, x_nchw):
    B = x_nchw.shape[0]
    C, H, W, P = params["C"], params["H"], params["W"], params["P"]
    NROWS, BT = params["NROWS"], params["B_TILE"]
    LEAD, G, NOUT = params["LEAD"], params["G"], params["NOUT"]
    ncls = params["class_num"]
    dfc1 = params["bf1"].shape[-1]
    dfc2 = params["bf2"].shape[-1]

    # Pad the batch to a multiple of the tile and build the conv1 im2col input
    # (pure layout plumbing on the tiny raw input): column index = tap*BT + s.
    Bp = _round_up(B, BT)
    nt = Bp // BT
    x = x_nchw.reshape(B, H, W).astype(jnp.float32)
    if Bp != B:
        x = jnp.pad(x, ((0, Bp - B), (0, 0), (0, 0)))
    xp = jnp.pad(x, ((0, 0), (1, 1), (1, 1)))                      # (Bp, H+2, P)
    xf = jnp.pad(xp.reshape(Bp, (H + 2) * P), ((0, 0), (0, 2 * P + 2)))
    offs = [dh * P + dw for dh in range(3) for dw in range(3)]
    cols = jnp.stack([xf[:, o:o + NROWS] for o in offs], axis=1)   # (Bp, 9, NROWS)
    x1 = cols.reshape(nt, BT, 9, NROWS).transpose(0, 3, 2, 1)      # (nt, NROWS, 9, BT)
    x1 = x1.reshape(nt, NROWS, 9 * BT)

    def rep(shape):
        return pl.BlockSpec(shape, lambda b, _n=len(shape): (0,) * _n)

    kernel = functools.partial(
        _gengnet_kernel, C=C, W=W, P=P, NROWS=NROWS, B_TILE=BT, LEAD=LEAD)

    out = pl.pallas_call(
        kernel,
        out_shape=jax.ShapeDtypeStruct((Bp, NOUT), jnp.float32),
        grid=(nt,),
        in_specs=[
            pl.BlockSpec((1, NROWS, 9 * BT), lambda b: (b, 0, 0)),
            rep((9 * BT, C * BT)), rep((1, C * BT)),
            rep((9, C * BT, C * BT)), rep((1, C * BT)),
            rep((C * BT, C * BT)), rep((1, C * BT)),
            rep((C * BT, C * BT)), rep((1, C * BT)),
            rep((C, NROWS, dfc1)), rep((1, dfc1)),
            rep((dfc1, dfc2)), rep((1, dfc2)),
            rep((dfc2, NOUT)), rep((1, NOUT)),
        ],
        out_specs=pl.BlockSpec((BT, NOUT), lambda b: (b, 0)),
        scratch_shapes=[pltpu.VMEM((G, C * BT), jnp.float32)],
        compiler_params=pltpu.CompilerParams(dimension_semantics=("parallel",)),
    )(x1,
      params["w1"], params["b1"], params["w2"], params["b2"],
      params["w3"], params["b3"], params["w4"], params["b4"],
      params["wf1"], params["bf1"], params["wf2"], params["bf2"],
      params["wf3"], params["bf3"])
    return out[:B, :ncls]


# ----------------------------------------------------------------------------
# Parameter construction (deterministic, synthetic), BN folding, kernel layout
# ----------------------------------------------------------------------------
def fold_bn(w, b, gamma, beta, mean, var, eps=1e-5):
    """Fold eval-mode BatchNorm into the preceding conv (out channels = last axis)."""
    scale = gamma / jnp.sqrt(var + eps)
    return w * scale, (b - mean) * scale + beta


def init_params(key, base_features=8, window_length=16, input_channels=6, class_num=5):
    keys = jax.random.split(key, 24)
    bf = base_features

    def bn_params(k, c):
        k1, k2, k3, k4 = jax.random.split(k, 4)
        gamma = 1.0 + 0.1 * jax.random.normal(k1, (c,), jnp.float32)
        beta = 0.1 * jax.random.normal(k2, (c,), jnp.float32)
        mean = 0.1 * jax.random.normal(k3, (c,), jnp.float32)
        var = jax.random.uniform(k4, (c,), jnp.float32, 0.5, 1.5)
        return (gamma, beta, mean, var)

    p = {}
    p["conv1_w"] = 0.1 * jax.random.normal(keys[0], (3, 3, 1, bf), jnp.float32)
    p["conv1_b"] = 0.05 * jax.random.normal(keys[1], (bf,), jnp.float32)
    p["bn1"] = bn_params(keys[2], bf)
    p["conv2_w"] = 0.1 * jax.random.normal(keys[3], (3, 3, bf, bf), jnp.float32)
    p["conv2_b"] = 0.05 * jax.random.normal(keys[4], (bf,), jnp.float32)
    p["bn2"] = bn_params(keys[5], bf)
    p["conv3_w"] = 0.1 * jax.random.normal(keys[6], (bf, bf), jnp.float32)
    p["conv3_b"] = 0.05 * jax.random.normal(keys[7], (bf,), jnp.float32)
    p["bn3"] = bn_params(keys[8], bf)
    p["conv4_w"] = 0.1 * jax.random.normal(keys[9], (bf, bf), jnp.float32)
    p["conv4_b"] = 0.05 * jax.random.normal(keys[10], (bf,), jnp.float32)
    p["bn4"] = bn_params(keys[11], bf)
    d_in = bf * window_length * input_channels
    p["fc1_w"] = 0.02 * jax.random.normal(keys[12], (d_in, 512), jnp.float32)
    p["fc1_b"] = 0.02 * jax.random.normal(keys[13], (512,), jnp.float32)
    p["fc2_w"] = 0.02 * jax.random.normal(keys[14], (512, 128), jnp.float32)
    p["fc2_b"] = 0.02 * jax.random.normal(keys[15], (128,), jnp.float32)
    p["fc3_w"] = 0.05 * jax.random.normal(keys[16], (128, class_num), jnp.float32)
    p["fc3_b"] = 0.05 * jax.random.normal(keys[17], (class_num,), jnp.float32)
    return p


def prepare_params(raw, base_features, window_length, input_channels, class_num):
    """One-time offline prep: BN folding, lane-packed block-diagonal conv weights,
    pixel-reordered fc1 weight, bf16 MXU operands, logit padding to 128 lanes."""
    C, H, W = base_features, window_length, input_channels
    assert 128 % C == 0, "channel count must divide 128 for lane packing"
    BT = 128 // C                       # samples packed per lane group
    P = W + 2
    NROWS = H * P
    assert NROWS % 8 == 0
    LEAD = _round_up(P + 1, 8)          # aligned interior start in the canvas
    G = _round_up(LEAD + NROWS + P + 1, 8)
    NOUT = _round_up(max(class_num, 128), 128)
    eye = jnp.eye(BT, dtype=jnp.float32)

    w1, b1 = fold_bn(raw["conv1_w"], raw["conv1_b"], *raw["bn1"])
    w2, b2 = fold_bn(raw["conv2_w"], raw["conv2_b"], *raw["bn2"])
    w3, b3 = fold_bn(raw["conv3_w"], raw["conv3_b"], *raw["bn3"])
    w4, b4 = fold_bn(raw["conv4_w"], raw["conv4_b"], *raw["bn4"])

    w1f = w1.reshape(9, C)
    w2f = w2.reshape(9, C, C)

    # Lane packing is channel-major: lane l = c*BT + s.  Per-sample channel
    # mixing therefore becomes multiplication by kron(w, I_BT).
    W1 = jnp.kron(w1f, eye).astype(jnp.bfloat16)                       # (9*BT, 128)
    W2 = jnp.stack([jnp.kron(w2f[t], eye) for t in range(9)]).astype(jnp.bfloat16)
    W3 = jnp.kron(w3, eye).astype(jnp.bfloat16)
    W4 = jnp.kron(w4, eye).astype(jnp.bfloat16)

    def tile_bias(b):
        return jnp.repeat(b, BT).reshape(1, C * BT).astype(jnp.float32)

    # fc1 rows are ordered c*H*W + h*W + w (PyTorch NCHW flatten).  Re-lay them
    # out as (C, NROWS, 512) in the kernel's padded-flat pixel order, with zero
    # rows at the junk pixels (w in [W, P)).
    dfc1 = raw["fc1_w"].shape[-1]
    WF1 = raw["fc1_w"].reshape(C, H, W, dfc1)
    WF1 = jnp.pad(WF1, ((0, 0), (0, 0), (0, P - W), (0, 0)))
    WF1 = WF1.reshape(C, NROWS, dfc1).astype(jnp.bfloat16)

    # fc3: pad the class dimension to a lane-dense 128 with zero weight columns
    # and a very negative bias so the padded logits vanish under softmax.
    WF3 = jnp.pad(raw["fc3_w"], ((0, 0), (0, NOUT - class_num))).astype(jnp.float32)
    bf3 = jnp.pad(raw["fc3_b"], (0, NOUT - class_num), constant_values=-1e9)

    return dict(
        H=H, W=W, C=C, P=P, NROWS=NROWS, B_TILE=BT, LEAD=LEAD, G=G, NOUT=NOUT,
        class_num=class_num,
        w1=W1, b1=tile_bias(b1),
        w2=W2, b2=tile_bias(b2),
        w3=W3, b3=tile_bias(b3),
        w4=W4, b4=tile_bias(b4),
        wf1=WF1, bf1=raw["fc1_b"].reshape(1, -1).astype(jnp.float32),
        wf2=raw["fc2_w"].astype(jnp.bfloat16),
        bf2=raw["fc2_b"].reshape(1, -1).astype(jnp.float32),
        wf3=WF3, bf3=bf3.reshape(1, -1).astype(jnp.float32),
    )


# ----------------------------------------------------------------------------
# Plain-JAX reference (for correctness cross-check only)
# ----------------------------------------------------------------------------
def reference_forward(raw, x_nchw, eps=1e-5):
    def bn_relu(y, bn):
        gamma, beta, mean, var = bn
        return jnp.maximum((y - mean) / jnp.sqrt(var + eps) * gamma + beta, 0.0)

    B = x_nchw.shape[0]
    x = jnp.transpose(x_nchw.astype(jnp.float32), (0, 2, 3, 1))      # NHWC, C=1
    x = bn_relu(jax.lax.conv_general_dilated(
        x, raw["conv1_w"], (1, 1), "SAME",
        dimension_numbers=("NHWC", "HWIO", "NHWC")) + raw["conv1_b"], raw["bn1"])
    x = bn_relu(jax.lax.conv_general_dilated(
        x, raw["conv2_w"], (1, 1), "SAME",
        dimension_numbers=("NHWC", "HWIO", "NHWC")) + raw["conv2_b"], raw["bn2"])
    x = bn_relu(jnp.einsum("bhwc,cd->bhwd", x, raw["conv3_w"]) + raw["conv3_b"], raw["bn3"])
    x = bn_relu(jnp.einsum("bhwc,cd->bhwd", x, raw["conv4_w"]) + raw["conv4_b"], raw["bn4"])
    x = jnp.transpose(x, (0, 3, 1, 2)).reshape(B, -1)                # NCHW flatten
    x = jnp.maximum(x @ raw["fc1_w"] + raw["fc1_b"], 0.0)
    x = jnp.maximum(x @ raw["fc2_w"] + raw["fc2_b"], 0.0)
    x = x @ raw["fc3_w"] + raw["fc3_b"]
    return jax.nn.softmax(x, axis=-1)


if __name__ == "__main__":
    # Small, deterministic configuration (module defaults scaled down).
    # B = 64 -> 4 grid steps of 16 lane-packed samples each.
    B = 64
    base_features = 8
    window_length = 16
    input_channels = 6
    class_num = 5

    key = jax.random.PRNGKey(0)
    k_params, k_input = jax.random.split(key)
    raw = init_params(k_params, base_features, window_length, input_channels, class_num)
    params = prepare_params(raw, base_features, window_length, input_channels, class_num)

    # PyTorch-style NCHW input: (B, 1, window_length, input_channels)
    x = jax.random.normal(k_input, (B, 1, window_length, input_channels), jnp.float32)

    fwd = jax.jit(functools.partial(gengnet_forward, params))
    out = jax.block_until_ready(fwd(x))

    assert out.shape == (B, class_num), out.shape
    assert bool(jnp.all(jnp.isfinite(out)))
    assert bool(jnp.allclose(jnp.sum(out, axis=-1), 1.0, atol=1e-3))
    # Cross-check against the plain-JAX reference (tolerance covers the bf16
    # MXU operands used inside the kernel).
    ref = reference_forward(raw, x)
    max_err = float(jnp.max(jnp.abs(out - ref)))
    assert max_err < 2e-2, max_err
    print("KERNEL_OK")
</pallas_src>

<mosaic_0001>
module attributes {stable_mosaic.version = 11 : i64} {
  func.func @_gengnet_kernel(%arg0: i32, %arg1: memref<1x128x144xf32, #tpu.memory_space<vmem>>, %arg2: memref<144x128xbf16, #tpu.memory_space<vmem>>, %arg3: memref<1x128xf32, #tpu.memory_space<vmem>>, %arg4: memref<9x128x128xbf16, #tpu.memory_space<vmem>>, %arg5: memref<1x128xf32, #tpu.memory_space<vmem>>, %arg6: memref<128x128xbf16, #tpu.memory_space<vmem>>, %arg7: memref<1x128xf32, #tpu.memory_space<vmem>>, %arg8: memref<128x128xbf16, #tpu.memory_space<vmem>>, %arg9: memref<1x128xf32, #tpu.memory_space<vmem>>, %arg10: memref<8x128x512xbf16, #tpu.memory_space<vmem>>, %arg11: memref<1x512xf32, #tpu.memory_space<vmem>>, %arg12: memref<512x128xbf16, #tpu.memory_space<vmem>>, %arg13: memref<1x128xf32, #tpu.memory_space<vmem>>, %arg14: memref<128x128xf32, #tpu.memory_space<vmem>>, %arg15: memref<1x128xf32, #tpu.memory_space<vmem>>, %arg16: memref<16x128xf32, #tpu.memory_space<vmem>>, %arg17: memref<160x128xf32, #tpu.memory_space<vmem>>) attributes {dimension_semantics = [#tpu.dimension_semantics<parallel>], iteration_bounds = array<i64: 4>, scalar_prefetch = 0 : i64, scratch_operands = 1 : i64, tpu.core_type = #tpu.core_type<tc>, window_params = [{transform_indices = @transform_0, window_bounds = array<i64: 1, 128, 144>}, {pipeline_mode = #tpu.pipeline_mode<synchronous>, transform_indices = @transform_1, window_bounds = array<i64: 144, 128>}, {pipeline_mode = #tpu.pipeline_mode<synchronous>, transform_indices = @transform_2, window_bounds = array<i64: 1, 128>}, {pipeline_mode = #tpu.pipeline_mode<synchronous>, transform_indices = @transform_3, window_bounds = array<i64: 9, 128, 128>}, {pipeline_mode = #tpu.pipeline_mode<synchronous>, transform_indices = @transform_4, window_bounds = array<i64: 1, 128>}, {pipeline_mode = #tpu.pipeline_mode<synchronous>, transform_indices = @transform_5, window_bounds = array<i64: 128, 128>}, {pipeline_mode = #tpu.pipeline_mode<synchronous>, transform_indices = @transform_6, window_bounds = array<i64: 1, 128>}, {pipeline_mode = #tpu.pipeline_mode<synchronous>, transform_indices = @transform_7, window_bounds = array<i64: 128, 128>}, {pipeline_mode = #tpu.pipeline_mode<synchronous>, transform_indices = @transform_8, window_bounds = array<i64: 1, 128>}, {pipeline_mode = #tpu.pipeline_mode<synchronous>, transform_indices = @transform_9, window_bounds = array<i64: 8, 128, 512>}, {pipeline_mode = #tpu.pipeline_mode<synchronous>, transform_indices = @transform_10, window_bounds = array<i64: 1, 512>}, {pipeline_mode = #tpu.pipeline_mode<synchronous>, transform_indices = @transform_11, window_bounds = array<i64: 512, 128>}, {pipeline_mode = #tpu.pipeline_mode<synchronous>, transform_indices = @transform_12, window_bounds = array<i64: 1, 128>}, {pipeline_mode = #tpu.pipeline_mode<synchronous>, transform_indices = @transform_13, window_bounds = array<i64: 128, 128>}, {pipeline_mode = #tpu.pipeline_mode<synchronous>, transform_indices = @transform_14, window_bounds = array<i64: 1, 128>}, {transform_indices = @transform_15, window_bounds = array<i64: 16, 128>}]} {
    %cst = arith.constant 0.000000e+00 : f32
    %0 = vector.broadcast %cst : f32 to vector<16x128xf32>
    %c0 = arith.constant 0 : index
    %c0_0 = arith.constant 0 : index
    %1 = vector.load %arg17[%c0, %c0_0] : memref<160x128xf32, #tpu.memory_space<vmem>>, vector<16x128xf32>
    tpu.vector_store %arg17[%c0, %c0_0], %0 {strides = array<i32>} : memref<160x128xf32, #tpu.memory_space<vmem>>, vector<16x128xf32>,
    %cst_1 = arith.constant 0.000000e+00 : f32
    %2 = vector.broadcast %cst_1 : f32 to vector<16x128xf32>
    %c144 = arith.constant 144 : index
    %c0_2 = arith.constant 0 : index
    %3 = vector.load %arg17[%c144, %c0_2] : memref<160x128xf32, #tpu.memory_space<vmem>>, vector<16x128xf32>
    tpu.vector_store %arg17[%c144, %c0_2], %2 {strides = array<i32>} : memref<160x128xf32, #tpu.memory_space<vmem>>, vector<16x128xf32>,
    %c0_3 = arith.constant 0 : index
    %c0_4 = arith.constant 0 : index
    %c0_5 = arith.constant 0 : index
    %4 = vector.load %arg1[%c0_3, %c0_4, %c0_5] : memref<1x128x144xf32, #tpu.memory_space<vmem>>, vector<1x128x144xf32>
    %5 = vector.shape_cast %4 : vector<1x128x144xf32> to vector<128x144xf32>
    %6 = arith.truncf %5 : vector<128x144xf32> to vector<128x144xbf16>
    %c0_6 = arith.constant 0 : index
    %c0_7 = arith.constant 0 : index
    %7 = vector.load %arg2[%c0_6, %c0_7] : memref<144x128xbf16, #tpu.memory_space<vmem>>, vector<144x128xbf16>
    %cst_8 = arith.constant dense<0.000000e+00> : vector<128x128xf32>
    %8 = tpu.matmul %6, %7, %cst_8 {dimension_numbers = #tpu.dot_dimension_numbers<[1], [0], [0], [1], [0, 0, 1, 1], [], []>} : vector<128x144xbf16>, vector<144x128xbf16>, vector<128x128xf32> -> vector<128x128xf32>
    %c0_9 = arith.constant 0 : index
    %c0_10 = arith.constant 0 : index
    %9 = vector.load %arg3[%c0_9, %c0_10] : memref<1x128xf32, #tpu.memory_space<vmem>>, vector<1x128xf32>
    %10 = vector.broadcast %9 : vector<1x128xf32> to vector<128x128xf32>
    %11 = arith.addf %8, %10 : vector<128x128xf32>
    %cst_11 = arith.constant 0.000000e+00 : f32
    %12 = vector.broadcast %cst_11 : f32 to vector<128x128xf32>
    %13 = arith.maximumf %11, %12 : vector<128x128xf32>
    %14 = tpu.iota {dimensions = array<i32: 0>} : vector<128x1xi32>
    %c8_i32 = arith.constant 8 : i32
    %c0_i32 = arith.constant 0 : i32
    %15 = arith.cmpi eq, %c8_i32, %c0_i32 : i32
    %c1_i32 = arith.constant 1 : i32
    %16 = arith.select %15, %c1_i32, %c8_i32 : i32
    %17 = vector.broadcast %16 : i32 to vector<128x1xi32>
    %18 = arith.remsi %14, %17 : vector<128x1xi32>
    %c0_i32_12 = arith.constant 0 : i32
    %19 = vector.broadcast %c0_i32_12 : i32 to vector<128x1xi32>
    %20 = arith.cmpi ne, %18, %19 : vector<128x1xi32>
    %c0_i32_13 = arith.constant 0 : i32
    %21 = vector.broadcast %c0_i32_13 : i32 to vector<128x1xi32>
    %22 = arith.cmpi slt, %18, %21 : vector<128x1xi32>
    %c0_i32_14 = arith.constant 0 : i32
    %23 = arith.cmpi slt, %16, %c0_i32_14 : i32
    %24 = vector.broadcast %23 : i1 to vector<128x1xi1>
    %25 = vector.broadcast %24 : vector<128x1xi1> to vector<128x1xi1>
    %26 = arith.xori %22, %25 : vector<128x1xi1>
    %27 = arith.andi %26, %20 : vector<128x1xi1>
    %28 = vector.broadcast %16 : i32 to vector<128x1xi32>
    %29 = arith.addi %18, %28 : vector<128x1xi32>
    %30 = arith.select %27, %29, %18 : vector<128x1xi1>, vector<128x1xi32>
    %c6_i32 = arith.constant 6 : i32
    %31 = vector.broadcast %c6_i32 : i32 to vector<128x1xi32>
    %32 = arith.cmpi slt, %30, %31 : vector<128x1xi32>
    %cst_15 = arith.constant 0.000000e+00 : f32
    %33 = vector.shape_cast %32 : vector<128x1xi1> to vector<128x1xi1>
    %34 = vector.broadcast %33 : vector<128x1xi1> to vector<128x128xi1>
    %35 = vector.broadcast %cst_15 : f32 to vector<128x128xf32>
    %36 = arith.select %34, %13, %35 : vector<128x128xi1>, vector<128x128xf32>
    %c16 = arith.constant 16 : index
    %c0_16 = arith.constant 0 : index
    %37 = vector.load %arg17[%c16, %c0_16] : memref<160x128xf32, #tpu.memory_space<vmem>>, vector<128x128xf32>
    tpu.vector_store %arg17[%c16, %c0_16], %36 {strides = array<i32>} : memref<160x128xf32, #tpu.memory_space<vmem>>, vector<128x128xf32>,
    %cst_17 = arith.constant 0.000000e+00 : f32
    %38 = vector.broadcast %cst_17 : f32 to vector<128x128xf32>
    %c7 = arith.constant 7 : index
    %c0_18 = arith.constant 0 : index
    %39 = vector.load %arg17[%c7, %c0_18] : memref<160x128xf32, #tpu.memory_space<vmem>>, vector<128x128xf32>
    %40 = arith.truncf %39 : vector<128x128xf32> to vector<128x128xbf16>
    %c0_19 = arith.constant 0 : index
    %c0_20 = arith.constant 0 : index
    %c0_21 = arith.constant 0 : index
    %41 = vector.load %arg4[%c0_19, %c0_20, %c0_21] : memref<9x128x128xbf16, #tpu.memory_space<vmem>>, vector<1x128x128xbf16>
    %42 = vector.shape_cast %41 : vector<1x128x128xbf16> to vector<128x128xbf16>
    %cst_22 = arith.constant dense<0.000000e+00> : vector<128x128xf32>
    %43 = tpu.matmul %40, %42, %cst_22 {dimension_numbers = #tpu.dot_dimension_numbers<[1], [0], [0], [1], [0, 0, 1, 1], [], []>} : vector<128x128xbf16>, vector<128x128xbf16>, vector<128x128xf32> -> vector<128x128xf32>
    %44 = arith.addf %38, %43 : vector<128x128xf32>
    %c8 = arith.constant 8 : index
    %c0_23 = arith.constant 0 : index
    %45 = vector.load %arg17[%c8, %c0_23] : memref<160x128xf32, #tpu.memory_space<vmem>>, vector<128x128xf32>
    %46 = arith.truncf %45 : vector<128x128xf32> to vector<128x128xbf16>
    %c1 = arith.constant 1 : index
    %c0_24 = arith.constant 0 : index
    %c0_25 = arith.constant 0 : index
    %47 = vector.load %arg4[%c1, %c0_24, %c0_25] : memref<9x128x128xbf16, #tpu.memory_space<vmem>>, vector<1x128x128xbf16>
    %48 = vector.shape_cast %47 : vector<1x128x128xbf16> to vector<128x128xbf16>
    %cst_26 = arith.constant dense<0.000000e+00> : vector<128x128xf32>
    %49 = tpu.matmul %46, %48, %cst_26 {dimension_numbers = #tpu.dot_dimension_numbers<[1], [0], [0], [1], [0, 0, 1, 1], [], []>} : vector<128x128xbf16>, vector<128x128xbf16>, vector<128x128xf32> -> vector<128x128xf32>
    %50 = arith.addf %44, %49 : vector<128x128xf32>
    %c9 = arith.constant 9 : index
    %c0_27 = arith.constant 0 : index
    %51 = vector.load %arg17[%c9, %c0_27] : memref<160x128xf32, #tpu.memory_space<vmem>>, vector<128x128xf32>
    %52 = arith.truncf %51 : vector<128x128xf32> to vector<128x128xbf16>
    %c2 = arith.constant 2 : index
    %c0_28 = arith.constant 0 : index
    %c0_29 = arith.constant 0 : index
    %53 = vector.load %arg4[%c2, %c0_28, %c0_29] : memref<9x128x128xbf16, #tpu.memory_space<vmem>>, vector<1x128x128xbf16>
    %54 = vector.shape_cast %53 : vector<1x128x128xbf16> to vector<128x128xbf16>
    %cst_30 = arith.constant dense<0.000000e+00> : vector<128x128xf32>
    %55 = tpu.matmul %52, %54, %cst_30 {dimension_numbers = #tpu.dot_dimension_numbers<[1], [0], [0], [1], [0, 0, 1, 1], [], []>} : vector<128x128xbf16>, vector<128x128xbf16>, vector<128x128xf32> -> vector<128x128xf32>
    %56 = arith.addf %50, %55 : vector<128x128xf32>
    %c15 = arith.constant 15 : index
    %c0_31 = arith.constant 0 : index
    %57 = vector.load %arg17[%c15, %c0_31] : memref<160x128xf32, #tpu.memory_space<vmem>>, vector<128x128xf32>
    %58 = arith.truncf %57 : vector<128x128xf32> to vector<128x128xbf16>
    %c3 = arith.constant 3 : index
    %c0_32 = arith.constant 0 : index
    %c0_33 = arith.constant 0 : index
    %59 = vector.load %arg4[%c3, %c0_32, %c0_33] : memref<9x128x128xbf16, #tpu.memory_space<vmem>>, vector<1x128x128xbf16>
    %60 = vector.shape_cast %59 : vector<1x128x128xbf16> to vector<128x128xbf16>
    %cst_34 = arith.constant dense<0.000000e+00> : vector<128x128xf32>
    %61 = tpu.matmul %58, %60, %cst_34 {dimension_numbers = #tpu.dot_dimension_numbers<[1], [0], [0], [1], [0, 0, 1, 1], [], []>} : vector<128x128xbf16>, vector<128x128xbf16>, vector<128x128xf32> -> vector<128x128xf32>
    %62 = arith.addf %56, %61 : vector<128x128xf32>
    %c16_35 = arith.constant 16 : index
    %c0_36 = arith.constant 0 : index
    %63 = vector.load %arg17[%c16_35, %c0_36] : memref<160x128xf32, #tpu.memory_space<vmem>>, vector<128x128xf32>
    %64 = arith.truncf %63 : vector<128x128xf32> to vector<128x128xbf16>
    %c4 = arith.constant 4 : index
    %c0_37 = arith.constant 0 : index
    %c0_38 = arith.constant 0 : index
    %65 = vector.load %arg4[%c4, %c0_37, %c0_38] : memref<9x128x128xbf16, #tpu.memory_space<vmem>>, vector<1x128x128xbf16>
    %66 = vector.shape_cast %65 : vector<1x128x128xbf16> to vector<128x128xbf16>
    %cst_39 = arith.constant dense<0.000000e+00> : vector<128x128xf32>
    %67 = tpu.matmul %64, %66, %cst_39 {dimension_numbers = #tpu.dot_dimension_numbers<[1], [0], [0], [1], [0, 0, 1, 1], [], []>} : vector<128x128xbf16>, vector<128x128xbf16>, vector<128x128xf32> -> vector<128x128xf32>
    %68 = arith.addf %62, %67 : vector<128x128xf32>
    %c17 = arith.constant 17 : index
    %c0_40 = arith.constant 0 : index
    %69 = vector.load %arg17[%c17, %c0_40] : memref<160x128xf32, #tpu.memory_space<vmem>>, vector<128x128xf32>
    %70 = arith.truncf %69 : vector<128x128xf32> to vector<128x128xbf16>
    %c5 = arith.constant 5 : index
    %c0_41 = arith.constant 0 : index
    %c0_42 = arith.constant 0 : index
    %71 = vector.load %arg4[%c5, %c0_41, %c0_42] : memref<9x128x128xbf16, #tpu.memory_space<vmem>>, vector<1x128x128xbf16>
    %72 = vector.shape_cast %71 : vector<1x128x128xbf16> to vector<128x128xbf16>
    %cst_43 = arith.constant dense<0.000000e+00> : vector<128x128xf32>
    %73 = tpu.matmul %70, %72, %cst_43 {dimension_numbers = #tpu.dot_dimension_numbers<[1], [0], [0], [1], [0, 0, 1, 1], [], []>} : vector<128x128xbf16>, vector<128x128xbf16>, vector<128x128xf32> -> vector<128x128xf32>
    %74 = arith.addf %68, %73 : vector<128x128xf32>
    %c23 = arith.constant 23 : index
    %c0_44 = arith.constant 0 : index
    %75 = vector.load %arg17[%c23, %c0_44] : memref<160x128xf32, #tpu.memory_space<vmem>>, vector<128x128xf32>
    %76 = arith.truncf %75 : vector<128x128xf32> to vector<128x128xbf16>
    %c6 = arith.constant 6 : index
    %c0_45 = arith.constant 0 : index
    %c0_46 = arith.constant 0 : index
    %77 = vector.load %arg4[%c6, %c0_45, %c0_46] : memref<9x128x128xbf16, #tpu.memory_space<vmem>>, vector<1x128x128xbf16>
    %78 = vector.shape_cast %77 : vector<1x128x128xbf16> to vector<128x128xbf16>
    %cst_47 = arith.constant dense<0.000000e+00> : vector<128x128xf32>
    %79 = tpu.matmul %76, %78, %cst_47 {dimension_numbers = #tpu.dot_dimension_numbers<[1], [0], [0], [1], [0, 0, 1, 1], [], []>} : vector<128x128xbf16>, vector<128x128xbf16>, vector<128x128xf32> -> vector<128x128xf32>
    %80 = arith.addf %74, %79 : vector<128x128xf32>
    %c24 = arith.constant 24 : index
    %c0_48 = arith.constant 0 : index
    %81 = vector.load %arg17[%c24, %c0_48] : memref<160x128xf32, #tpu.memory_space<vmem>>, vector<128x128xf32>
    %82 = arith.truncf %81 : vector<128x128xf32> to vector<128x128xbf16>
    %c7_49 = arith.constant 7 : index
    %c0_50 = arith.constant 0 : index
    %c0_51 = arith.constant 0 : index
    %83 = vector.load %arg4[%c7_49, %c0_50, %c0_51] : memref<9x128x128xbf16, #tpu.memory_space<vmem>>, vector<1x128x128xbf16>
    %84 = vector.shape_cast %83 : vector<1x128x128xbf16> to vector<128x128xbf16>
    %cst_52 = arith.constant dense<0.000000e+00> : vector<128x128xf32>
    %85 = tpu.matmul %82, %84, %cst_52 {dimension_numbers = #tpu.dot_dimension_numbers<[1], [0], [0], [1], [0, 0, 1, 1], [], []>} : vector<128x128xbf16>, vector<128x128xbf16>, vector<128x128xf32> -> vector<128x128xf32>
    %86 = arith.addf %80, %85 : vector<128x128xf32>
    %c25 = arith.constant 25 : index
    %c0_53 = arith.constant 0 : index
    %87 = vector.load %arg17[%c25, %c0_53] : memref<160x128xf32, #tpu.memory_space<vmem>>, vector<128x128xf32>
    %88 = arith.truncf %87 : vector<128x128xf32> to vector<128x128xbf16>
    %c8_54 = arith.constant 8 : index
    %c0_55 = arith.constant 0 : index
    %c0_56 = arith.constant 0 : index
    %89 = vector.load %arg4[%c8_54, %c0_55, %c0_56] : memref<9x128x128xbf16, #tpu.memory_space<vmem>>, vector<1x128x128xbf16>
    %90 = vector.shape_cast %89 : vector<1x128x128xbf16> to vector<128x128xbf16>
    %cst_57 = arith.constant dense<0.000000e+00> : vector<128x128xf32>
    %91 = tpu.matmul %88, %90, %cst_57 {dimension_numbers = #tpu.dot_dimension_numbers<[1], [0], [0], [1], [0, 0, 1, 1], [], []>} : vector<128x128xbf16>, vector<128x128xbf16>, vector<128x128xf32> -> vector<128x128xf32>
    %92 = arith.addf %86, %91 : vector<128x128xf32>
    %c0_58 = arith.constant 0 : index
    %c0_59 = arith.constant 0 : index
    %93 = vector.load %arg5[%c0_58, %c0_59] : memref<1x128xf32, #tpu.memory_space<vmem>>, vector<1x128xf32>
    %94 = vector.broadcast %93 : vector<1x128xf32> to vector<128x128xf32>
    %95 = arith.addf %92, %94 : vector<128x128xf32>
    %cst_60 = arith.constant 0.000000e+00 : f32
    %96 = vector.broadcast %cst_60 : f32 to vector<128x128xf32>
    %97 = arith.maximumf %95, %96 : vector<128x128xf32>
    %98 = arith.truncf %97 : vector<128x128xf32> to vector<128x128xbf16>
    %c0_61 = arith.constant 0 : index
    %c0_62 = arith.constant 0 : index
    %99 = vector.load %arg6[%c0_61, %c0_62] : memref<128x128xbf16, #tpu.memory_space<vmem>>, vector<128x128xbf16>
    %cst_63 = arith.constant dense<0.000000e+00> : vector<128x128xf32>
    %100 = tpu.matmul %98, %99, %cst_63 {dimension_numbers = #tpu.dot_dimension_numbers<[1], [0], [0], [1], [0, 0, 1, 1], [], []>} : vector<128x128xbf16>, vector<128x128xbf16>, vector<128x128xf32> -> vector<128x128xf32>
    %c0_64 = arith.constant 0 : index
    %c0_65 = arith.constant 0 : index
    %101 = vector.load %arg7[%c0_64, %c0_65] : memref<1x128xf32, #tpu.memory_space<vmem>>, vector<1x128xf32>
    %102 = vector.broadcast %101 : vector<1x128xf32> to vector<128x128xf32>
    %103 = arith.addf %100, %102 : vector<128x128xf32>
    %cst_66 = arith.constant 0.000000e+00 : f32
    %104 = vector.broadcast %cst_66 : f32 to vector<128x128xf32>
    %105 = arith.maximumf %103, %104 : vector<128x128xf32>
    %106 = arith.truncf %105 : vector<128x128xf32> to vector<128x128xbf16>
    %c0_67 = arith.constant 0 : index
    %c0_68 = arith.constant 0 : index
    %107 = vector.load %arg8[%c0_67, %c0_68] : memref<128x128xbf16, #tpu.memory_space<vmem>>, vector<128x128xbf16>
    %cst_69 = arith.constant dense<0.000000e+00> : vector<128x128xf32>
    %108 = tpu.matmul %106, %107, %cst_69 {dimension_numbers = #tpu.dot_dimension_numbers<[1], [0], [0], [1], [0, 0, 1, 1], [], []>} : vector<128x128xbf16>, vector<128x128xbf16>, vector<128x128xf32> -> vector<128x128xf32>
    %c0_70 = arith.constant 0 : index
    %c0_71 = arith.constant 0 : index
    %109 = vector.load %arg9[%c0_70, %c0_71] : memref<1x128xf32, #tpu.memory_space<vmem>>, vector<1x128xf32>
    %110 = vector.broadcast %109 : vector<1x128xf32> to vector<128x128xf32>
    %111 = arith.addf %108, %110 : vector<128x128xf32>
    %cst_72 = arith.constant 0.000000e+00 : f32
    %112 = vector.broadcast %cst_72 : f32 to vector<128x128xf32>
    %113 = arith.maximumf %111, %112 : vector<128x128xf32>
    %114 = tpu.transpose %113, [1, 0] : vector<128x128xf32> -> vector<128x128xf32>
    %cst_73 = arith.constant 0.000000e+00 : f32
    %115 = vector.broadcast %cst_73 : f32 to vector<16x512xf32>
    %116 = vector.extract_strided_slice %114 {offsets = [0, 0], sizes = [16, 128], strides = [1, 1]} : vector<128x128xf32> to vector<16x128xf32>
    %117 = arith.truncf %116 : vector<16x128xf32> to vector<16x128xbf16>
    %c0_74 = arith.constant 0 : index
    %c0_75 = arith.constant 0 : index
    %c0_76 = arith.constant 0 : index
    %118 = vector.load %arg10[%c0_74, %c0_75, %c0_76] : memref<8x128x512xbf16, #tpu.memory_space<vmem>>, vector<1x128x512xbf16>
    %119 = vector.shape_cast %118 : vector<1x128x512xbf16> to vector<128x512xbf16>
    %cst_77 = arith.constant dense<0.000000e+00> : vector<16x512xf32>
    %120 = tpu.matmul %117, %119, %cst_77 {dimension_numbers = #tpu.dot_dimension_numbers<[1], [0], [0], [1], [0, 0, 1, 1], [], []>} : vector<16x128xbf16>, vector<128x512xbf16>, vector<16x512xf32> -> vector<16x512xf32>
    %121 = arith.addf %115, %120 : vector<16x512xf32>
    %122 = vector.extract_strided_slice %114 {offsets = [16, 0], sizes = [16, 128], strides = [1, 1]} : vector<128x128xf32> to vector<16x128xf32>
    %123 = arith.truncf %122 : vector<16x128xf32> to vector<16x128xbf16>
    %c1_78 = arith.constant 1 : index
    %c0_79 = arith.constant 0 : index
    %c0_80 = arith.constant 0 : index
    %124 = vector.load %arg10[%c1_78, %c0_79, %c0_80] : memref<8x128x512xbf16, #tpu.memory_space<vmem>>, vector<1x128x512xbf16>
    %125 = vector.shape_cast %124 : vector<1x128x512xbf16> to vector<128x512xbf16>
    %cst_81 = arith.constant dense<0.000000e+00> : vector<16x512xf32>
    %126 = tpu.matmul %123, %125, %cst_81 {dimension_numbers = #tpu.dot_dimension_numbers<[1], [0], [0], [1], [0, 0, 1, 1], [], []>} : vector<16x128xbf16>, vector<128x512xbf16>, vector<16x512xf32> -> vector<16x512xf32>
    %127 = arith.addf %121, %126 : vector<16x512xf32>
    %128 = vector.extract_strided_slice %114 {offsets = [32, 0], sizes = [16, 128], strides = [1, 1]} : vector<128x128xf32> to vector<16x128xf32>
    %129 = arith.truncf %128 : vector<16x128xf32> to vector<16x128xbf16>
    %c2_82 = arith.constant 2 : index
    %c0_83 = arith.constant 0 : index
    %c0_84 = arith.constant 0 : index
    %130 = vector.load %arg10[%c2_82, %c0_83, %c0_84] : memref<8x128x512xbf16, #tpu.memory_space<vmem>>, vector<1x128x512xbf16>
    %131 = vector.shape_cast %130 : vector<1x128x512xbf16> to vector<128x512xbf16>
    %cst_85 = arith.constant dense<0.000000e+00> : vector<16x512xf32>
    %132 = tpu.matmul %129, %131, %cst_85 {dimension_numbers = #tpu.dot_dimension_numbers<[1], [0], [0], [1], [0, 0, 1, 1], [], []>} : vector<16x128xbf16>, vector<128x512xbf16>, vector<16x512xf32> -> vector<16x512xf32>
    %133 = arith.addf %127, %132 : vector<16x512xf32>
    %134 = vector.extract_strided_slice %114 {offsets = [48, 0], sizes = [16, 128], strides = [1, 1]} : vector<128x128xf32> to vector<16x128xf32>
    %135 = arith.truncf %134 : vector<16x128xf32> to vector<16x128xbf16>
    %c3_86 = arith.constant 3 : index
    %c0_87 = arith.constant 0 : index
    %c0_88 = arith.constant 0 : index
    %136 = vector.load %arg10[%c3_86, %c0_87, %c0_88] : memref<8x128x512xbf16, #tpu.memory_space<vmem>>, vector<1x128x512xbf16>
    %137 = vector.shape_cast %136 : vector<1x128x512xbf16> to vector<128x512xbf16>
    %cst_89 = arith.constant dense<0.000000e+00> : vector<16x512xf32>
    %138 = tpu.matmul %135, %137, %cst_89 {dimension_numbers = #tpu.dot_dimension_numbers<[1], [0], [0], [1], [0, 0, 1, 1], [], []>} : vector<16x128xbf16>, vector<128x512xbf16>, vector<16x512xf32> -> vector<16x512xf32>
    %139 = arith.addf %133, %138 : vector<16x512xf32>
    %140 = vector.extract_strided_slice %114 {offsets = [64, 0], sizes = [16, 128], strides = [1, 1]} : vector<128x128xf32> to vector<16x128xf32>
    %141 = arith.truncf %140 : vector<16x128xf32> to vector<16x128xbf16>
    %c4_90 = arith.constant 4 : index
    %c0_91 = arith.constant 0 : index
    %c0_92 = arith.constant 0 : index
    %142 = vector.load %arg10[%c4_90, %c0_91, %c0_92] : memref<8x128x512xbf16, #tpu.memory_space<vmem>>, vector<1x128x512xbf16>
    %143 = vector.shape_cast %142 : vector<1x128x512xbf16> to vector<128x512xbf16>
    %cst_93 = arith.constant dense<0.000000e+00> : vector<16x512xf32>
    %144 = tpu.matmul %141, %143, %cst_93 {dimension_numbers = #tpu.dot_dimension_numbers<[1], [0], [0], [1], [0, 0, 1, 1], [], []>} : vector<16x128xbf16>, vector<128x512xbf16>, vector<16x512xf32> -> vector<16x512xf32>
    %145 = arith.addf %139, %144 : vector<16x512xf32>
    %146 = vector.extract_strided_slice %114 {offsets = [80, 0], sizes = [16, 128], strides = [1, 1]} : vector<128x128xf32> to vector<16x128xf32>
    %147 = arith.truncf %146 : vector<16x128xf32> to vector<16x128xbf16>
    %c5_94 = arith.constant 5 : index
    %c0_95 = arith.constant 0 : index
    %c0_96 = arith.constant 0 : index
    %148 = vector.load %arg10[%c5_94, %c0_95, %c0_96] : memref<8x128x512xbf16, #tpu.memory_space<vmem>>, vector<1x128x512xbf16>
    %149 = vector.shape_cast %148 : vector<1x128x512xbf16> to vector<128x512xbf16>
    %cst_97 = arith.constant dense<0.000000e+00> : vector<16x512xf32>
    %150 = tpu.matmul %147, %149, %cst_97 {dimension_numbers = #tpu.dot_dimension_numbers<[1], [0], [0], [1], [0, 0, 1, 1], [], []>} : vector<16x128xbf16>, vector<128x512xbf16>, vector<16x512xf32> -> vector<16x512xf32>
    %151 = arith.addf %145, %150 : vector<16x512xf32>
    %152 = vector.extract_strided_slice %114 {offsets = [96, 0], sizes = [16, 128], strides = [1, 1]} : vector<128x128xf32> to vector<16x128xf32>
    %153 = arith.truncf %152 : vector<16x128xf32> to vector<16x128xbf16>
    %c6_98 = arith.constant 6 : index
    %c0_99 = arith.constant 0 : index
    %c0_100 = arith.constant 0 : index
    %154 = vector.load %arg10[%c6_98, %c0_99, %c0_100] : memref<8x128x512xbf16, #tpu.memory_space<vmem>>, vector<1x128x512xbf16>
    %155 = vector.shape_cast %154 : vector<1x128x512xbf16> to vector<128x512xbf16>
    %cst_101 = arith.constant dense<0.000000e+00> : vector<16x512xf32>
    %156 = tpu.matmul %153, %155, %cst_101 {dimension_numbers = #tpu.dot_dimension_numbers<[1], [0], [0], [1], [0, 0, 1, 1], [], []>} : vector<16x128xbf16>, vector<128x512xbf16>, vector<16x512xf32> -> vector<16x512xf32>
    %157 = arith.addf %151, %156 : vector<16x512xf32>
    %158 = vector.extract_strided_slice %114 {offsets = [112, 0], sizes = [16, 128], strides = [1, 1]} : vector<128x128xf32> to vector<16x128xf32>
    %159 = arith.truncf %158 : vector<16x128xf32> to vector<16x128xbf16>
    %c7_102 = arith.constant 7 : index
    %c0_103 = arith.constant 0 : index
    %c0_104 = arith.constant 0 : index
    %160 = vector.load %arg10[%c7_102, %c0_103, %c0_104] : memref<8x128x512xbf16, #tpu.memory_space<vmem>>, vector<1x128x512xbf16>
    %161 = vector.shape_cast %160 : vector<1x128x512xbf16> to vector<128x512xbf16>
    %cst_105 = arith.constant dense<0.000000e+00> : vector<16x512xf32>
    %162 = tpu.matmul %159, %161, %cst_105 {dimension_numbers = #tpu.dot_dimension_numbers<[1], [0], [0], [1], [0, 0, 1, 1], [], []>} : vector<16x128xbf16>, vector<128x512xbf16>, vector<16x512xf32> -> vector<16x512xf32>
    %163 = arith.addf %157, %162 : vector<16x512xf32>
    %c0_106 = arith.constant 0 : index
    %c0_107 = arith.constant 0 : index
    %164 = vector.load %arg11[%c0_106, %c0_107] : memref<1x512xf32, #tpu.memory_space<vmem>>, vector<1x512xf32>
    %165 = vector.broadcast %164 : vector<1x512xf32> to vector<16x512xf32>
    %166 = arith.addf %163, %165 : vector<16x512xf32>
    %cst_108 = arith.constant 0.000000e+00 : f32
    %167 = vector.broadcast %cst_108 : f32 to vector<16x512xf32>
    %168 = arith.maximumf %166, %167 : vector<16x512xf32>
    %169 = arith.truncf %168 : vector<16x512xf32> to vector<16x512xbf16>
    %c0_109 = arith.constant 0 : index
    %c0_110 = arith.constant 0 : index
    %170 = vector.load %arg12[%c0_109, %c0_110] : memref<512x128xbf16, #tpu.memory_space<vmem>>, vector<512x128xbf16>
    %cst_111 = arith.constant dense<0.000000e+00> : vector<16x128xf32>
    %171 = tpu.matmul %169, %170, %cst_111 {dimension_numbers = #tpu.dot_dimension_numbers<[1], [0], [0], [1], [0, 0, 1, 1], [], []>} : vector<16x512xbf16>, vector<512x128xbf16>, vector<16x128xf32> -> vector<16x128xf32>
    %c0_112 = arith.constant 0 : index
    %c0_113 = arith.constant 0 : index
    %172 = vector.load %arg13[%c0_112, %c0_113] : memref<1x128xf32, #tpu.memory_space<vmem>>, vector<1x128xf32>
    %173 = vector.broadcast %172 : vector<1x128xf32> to vector<16x128xf32>
    %174 = arith.addf %171, %173 : vector<16x128xf32>
    %cst_114 = arith.constant 0.000000e+00 : f32
    %175 = vector.broadcast %cst_114 : f32 to vector<16x128xf32>
    %176 = arith.maximumf %174, %175 : vector<16x128xf32>
    %c0_115 = arith.constant 0 : index
    %c0_116 = arith.constant 0 : index
    %177 = vector.load %arg14[%c0_115, %c0_116] : memref<128x128xf32, #tpu.memory_space<vmem>>, vector<128x128xf32>
    %cst_117 = arith.constant dense<0.000000e+00> : vector<16x128xf32>
    %178 = tpu.matmul %176, %177, %cst_117 {dimension_numbers = #tpu.dot_dimension_numbers<[1], [0], [0], [1], [0, 0, 1, 1], [], []>} : vector<16x128xf32>, vector<128x128xf32>, vector<16x128xf32> -> vector<16x128xf32>
    %c0_118 = arith.constant 0 : index
    %c0_119 = arith.constant 0 : index
    %179 = vector.load %arg15[%c0_118, %c0_119] : memref<1x128xf32, #tpu.memory_space<vmem>>, vector<1x128xf32>
    %180 = vector.broadcast %179 : vector<1x128xf32> to vector<16x128xf32>
    %181 = arith.addf %178, %180 : vector<16x128xf32>
    %cst_120 = arith.constant dense<0xFF800000> : vector<16xf32>
    %182 = vector.multi_reduction <maximumf>, %181, %cst_120 [1] : vector<16x128xf32> to vector<16xf32>
    %183 = vector.shape_cast %182 : vector<16xf32> to vector<16x1xf32>
    %184 = vector.broadcast %183 : vector<16x1xf32> to vector<16x128xf32>
    %185 = arith.subf %181, %184 : vector<16x128xf32>
    %186 = math.exp %185 : vector<16x128xf32>
    %cst_121 = arith.constant dense<0.000000e+00> : vector<16xf32>
    %187 = vector.multi_reduction <add>, %186, %cst_121 [1] : vector<16x128xf32> to vector<16xf32>
    %188 = vector.shape_cast %187 : vector<16xf32> to vector<16x1xf32>
    %189 = vector.broadcast %188 : vector<16x1xf32> to vector<16x128xf32>
    %190 = arith.divf %186, %189 : vector<16x128xf32>
    %c0_122 = arith.constant 0 : index
    %c0_123 = arith.constant 0 : index
    %191 = vector.load %arg16[%c0_122, %c0_123] : memref<16x128xf32, #tpu.memory_space<vmem>>, vector<16x128xf32>
    tpu.vector_store %arg16[%c0_122, %c0_123], %190 {strides = array<i32>} : memref<16x128xf32, #tpu.memory_space<vmem>>, vector<16x128xf32>,
    return
  }
  func.func @transform_0(%arg0: i32) -> (i32, i32, i32) {
    %c0_i32 = arith.constant 0 : i32
    %c0_i32_0 = arith.constant 0 : i32
    %c0_i32_1 = arith.constant 0 : i32
    return %arg0, %c0_i32, %c0_i32_0 : i32, i32, i32
  }
  func.func @transform_1(%arg0: i32) -> (i32, i32) {
    %c0_i32 = arith.constant 0 : i32
    %c0_i32_0 = arith.constant 0 : i32
    %c0_i32_1 = arith.constant 0 : i32
    return %c0_i32, %c0_i32_0 : i32, i32
  }
  func.func @transform_2(%arg0: i32) -> (i32, i32) {
    %c0_i32 = arith.constant 0 : i32
    %c0_i32_0 = arith.constant 0 : i32
    %c0_i32_1 = arith.constant 0 : i32
    return %c0_i32, %c0_i32_0 : i32, i32
  }
  func.func @transform_3(%arg0: i32) -> (i32, i32, i32) {
    %c0_i32 = arith.constant 0 : i32
    %c0_i32_0 = arith.constant 0 : i32
    %c0_i32_1 = arith.constant 0 : i32
    %c0_i32_2 = arith.constant 0 : i32
    return %c0_i32, %c0_i32_0, %c0_i32_1 : i32, i32, i32
  }
  func.func @transform_4(%arg0: i32) -> (i32, i32) {
    %c0_i32 = arith.constant 0 : i32
    %c0_i32_0 = arith.constant 0 : i32
    %c0_i32_1 = arith.constant 0 : i32
    return %c0_i32, %c0_i32_0 : i32, i32
  }
  func.func @transform_5(%arg0: i32) -> (i32, i32) {
    %c0_i32 = arith.constant 0 : i32
    %c0_i32_0 = arith.constant 0 : i32
    %c0_i32_1 = arith.constant 0 : i32
    return %c0_i32, %c0_i32_0 : i32, i32
  }
  func.func @transform_6(%arg0: i32) -> (i32, i32) {
    %c0_i32 = arith.constant 0 : i32
    %c0_i32_0 = arith.constant 0 : i32
    %c0_i32_1 = arith.constant 0 : i32
    return %c0_i32, %c0_i32_0 : i32, i32
  }
  func.func @transform_7(%arg0: i32) -> (i32, i32) {
    %c0_i32 = arith.constant 0 : i32
    %c0_i32_0 = arith.constant 0 : i32
    %c0_i32_1 = arith.constant 0 : i32
    return %c0_i32, %c0_i32_0 : i32, i32
  }
  func.func @transform_8(%arg0: i32) -> (i32, i32) {
    %c0_i32 = arith.constant 0 : i32
    %c0_i32_0 = arith.constant 0 : i32
    %c0_i32_1 = arith.constant 0 : i32
    return %c0_i32, %c0_i32_0 : i32, i32
  }
  func.func @transform_9(%arg0: i32) -> (i32, i32, i32) {
    %c0_i32 = arith.constant 0 : i32
    %c0_i32_0 = arith.constant 0 : i32
    %c0_i32_1 = arith.constant 0 : i32
    %c0_i32_2 = arith.constant 0 : i32
    return %c0_i32, %c0_i32_0, %c0_i32_1 : i32, i32, i32
  }
  func.func @transform_10(%arg0: i32) -> (i32, i32) {
    %c0_i32 = arith.constant 0 : i32
    %c0_i32_0 = arith.constant 0 : i32
    %c0_i32_1 = arith.constant 0 : i32
    return %c0_i32, %c0_i32_0 : i32, i32
  }
  func.func @transform_11(%arg0: i32) -> (i32, i32) {
    %c0_i32 = arith.constant 0 : i32
    %c0_i32_0 = arith.constant 0 : i32
    %c0_i32_1 = arith.constant 0 : i32
    return %c0_i32, %c0_i32_0 : i32, i32
  }
  func.func @transform_12(%arg0: i32) -> (i32, i32) {
    %c0_i32 = arith.constant 0 : i32
    %c0_i32_0 = arith.constant 0 : i32
    %c0_i32_1 = arith.constant 0 : i32
    return %c0_i32, %c0_i32_0 : i32, i32
  }
  func.func @transform_13(%arg0: i32) -> (i32, i32) {
    %c0_i32 = arith.constant 0 : i32
    %c0_i32_0 = arith.constant 0 : i32
    %c0_i32_1 = arith.constant 0 : i32
    return %c0_i32, %c0_i32_0 : i32, i32
  }
  func.func @transform_14(%arg0: i32) -> (i32, i32) {
    %c0_i32 = arith.constant 0 : i32
    %c0_i32_0 = arith.constant 0 : i32
    %c0_i32_1 = arith.constant 0 : i32
    return %c0_i32, %c0_i32_0 : i32, i32
  }
  func.func @transform_15(%arg0: i32) -> (i32, i32) {
    %c0_i32 = arith.constant 0 : i32
    %c0_i32_0 = arith.constant 0 : i32
    return %arg0, %c0_i32 : i32, i32
  }
}

</mosaic_0001>

<bundles_post_ra>
// kernel: gengnet_forward.1
= control target key start
LH: loop header
LB: loop body
LE: loop exit
PB: predicated region body
PF: predicated region fallthrough
CT: control target
= control target key end

     0   :  { %s8420_s18 = smov 0   ;;  %s10262_s0 = inlined_call_operand.vmem [shape: f32[4,128,144], index: 0, kind: input, shape index: {}]   ;;  %s10263_s1 = inlined_call_operand.vmem [shape: bf16[144,128], index: 1, kind: input, shape index: {}]   ;;  %s10264_s2 = inlined_call_operand.vmem [shape: f32[1,128], index: 2, kind: input, shape index: {}]   ;;  %s10265_s3 = inlined_call_operand.vmem [shape: bf16[9,128,128], index: 3, kind: input, shape index: {}]   ;;  %s10266_s4 = inlined_call_operand.vmem [shape: f32[1,128], index: 4, kind: input, shape index: {}]   ;;  %s10267_s5 = inlined_call_operand.vmem [shape: bf16[128,128], index: 5, kind: input, shape index: {}]   ;;  %s10268_s6 = inlined_call_operand.vmem [shape: f32[1,128], index: 6, kind: input, shape index: {}]   ;;  %s10269_s7 = inlined_call_operand.vmem [shape: bf16[128,128], index: 7, kind: input, shape index: {}]   ;;  %s10270_s8 = inlined_call_operand.vmem [shape: f32[1,128], index: 8, kind: input, shape index: {}]   ;;  %s10271_s9 = inlined_call_operand.vmem [shape: bf16[8,128,512], index: 9, kind: input, shape index: {}]   ;;  %s10272_s10 = inlined_call_operand.vmem [shape: f32[1,512], index: 10, kind: input, shape index: {}]   ;;  %s10273_s11 = inlined_call_operand.vmem [shape: bf16[512,128], index: 11, kind: input, shape index: {}]   ;;  %s10274_s12 = inlined_call_operand.vmem [shape: f32[1,128], index: 12, kind: input, shape index: {}]   ;;  %s10275_s13 = inlined_call_operand.vmem [shape: f32[128,128], index: 13, kind: input, shape index: {}]   ;;  %s10276_s14 = inlined_call_operand.vmem [shape: f32[1,128], index: 14, kind: input, shape index: {}]   ;;  %s10277_s15 = inlined_call_operand.vmem [shape: f32[64,128], index: 15, kind: output, shape index: {}]  }
   0x1 LB: > { %s8426_s19 = sadd.s32 4294967295, %s8335_s18   ;;  %p6149_p0 = scmp.ge.s32.totalorder %s8335_s18, 1  ;;  %s8335_s18 = sphi %s8420_s18, %s25_s18  }
   0x2   : > { %p437_p1 = scmp.lt.s32.totalorder %s8335_s18, 5 }
   0x4   : > { %p438_p2 = pnand %p6149_p0, %p437_p1 }
   0x6   : > { %441 = sbr.rel (%p438_p2) target bundleno = 2815 (0xaff), region = 80 }
   0xd   : > { %v7759_v0 = vld [vmem:[%s10263_s1] sm:$0xff]   ;;  %v10279_v1 = vmov 0   ;;  %p485_p3 = scmp.lt.s32.totalorder %s8426_s19, 3  ;;  %v7760_v2 = vld [vmem:[%s10263_s1 + $0x8] sm:$0xff]   ;;  %v7761_v3 = vld [vmem:[%s10263_s1 + $0x10] sm:$0xff]   ;;  %vm628_vm0 = vcmask 130048  }
   0xe   : > { %653 = vmatprep.subr.bf16.mxu1 %v10279_v1  ;;  %3554 = vmatprep.mubr.bf16.mxu0 %v10279_v1  ;;  %v7762_v6 = vld [vmem:[%s10263_s1 + $0x18] sm:$0xff]   ;;  %v7763_v8 = vld [vmem:[%s10263_s1 + $0x20] sm:$0xff]   ;;  %v7764_v9 = vld [vmem:[%s10263_s1 + $0x28] sm:$0xff]   ;;  %vm8339_vm3 = vmmov 1   ;;  %s6152_s23 = sshll.u32 %s8426_s19, 1 }
   0xf   : > { %654 = vmatpush1.bf16.msra.mxu1 %v7759_v0  ;;  %s486_s24 = scalar_select %p485_p3, %s8426_s19, 3  ;;  %v7765_v10 = vld [vmem:[%s10263_s1 + $0x30] sm:$0xff]   ;;  %v7766_v11 = vld [vmem:[%s10263_s1 + $0x38] sm:$0xff]   ;;  %v7767_v12 = vld [vmem:[%s10263_s1 + $0x40] sm:$0xff]  }
  0x10   : > { %655 = vmatprep.subr.bf16.mxu1 %v10279_v1  ;;  %v7768_v17 = vld [vmem:[%s10265_s3 + $0x40] sm:$0xff]   ;;  %v7769_v19 = vld [vmem:[%s10265_s3 + $0x48] sm:$0xff]   ;;  %v7770_v25 = vld [vmem:[%s10265_s3 + $0x50] sm:$0xff]   ;;  %p491_p4 = scmp.lt.s32.totalorder %s6152_s23, 7 }
  0x11   : > { %s6907_s25 = sshll.u32 %s486_s24, 8  ;;  %v7771_v61 = vld [vmem:[%s10265_s3 + $0x58] sm:$0xff]   ;;  %v7772_v62 = vld [vmem:[%s10265_s3 + $0x60] sm:$0xff]   ;;  %v7773_v63 = vld [vmem:[%s10265_s3 + $0x68] sm:$0xff]  }
  0x12   : > { %s8447_s30 = scalar_lea.vmem %s10262_s0, %s6907_s25  ;;  %v7774_v0 = vld [vmem:[%s10265_s3 + $0x70] sm:$0xff]   ;;  %s10383_s23 = smov (!%p491_p4, %s6152_s23), 7 }
  0x13   : > { %656 = vmatpush1.bf16.msra.mxu1 %v7760_v2  ;;  %v502_v4 = vld [vmem:[%s8447_s30 + $0x8] sm:$0xff]  ;;  %v504_v5 = vld [vmem:[%s8447_s30 + $0x18] sm:$0xff]  ;;  %v501_v13 = vld [vmem:[%s8447_s30] sm:$0xff]  ;;  %v8338_v2 = vmov 0.0   ;;  %s6153_s24 = sshll.u32 %s10383_s23, 3 }
  0x14   : > { %657 = vmatprep.subr.bf16.mxu1 %v10279_v1  ;;  %v534_v7 = vpack.c.bf16 %v504_v5, %v502_v4  ;;  %v503_v14 = vld [vmem:[%s8447_s30 + $0x10] sm:$0xff]  ;;  %v506_v15 = vld [vmem:[%s8447_s30 + $0x28] sm:$0xff]  ;;  %v508_v16 = vld [vmem:[%s8447_s30 + $0x38] sm:$0xff]  ;;  %498 = vst [vmem:[#allocation2 + $0x8] sm:$0xff] %v8338_v2  ;;  %v766_v5 = vlaneseq  ;;  %s494_s27 = scalar_lea.vmem %s10277_s15, %s6153_s24 }
  0x15   : > { %v533_v18 = vpack.c.bf16 %v503_v14, %v501_v13  ;;  %v536_v20 = vpack.c.bf16 %v508_v16, %v506_v15  ;;  %v505_v21 = vld [vmem:[%s8447_s30 + $0x20] sm:$0xff]  ;;  %v507_v22 = vld [vmem:[%s8447_s30 + $0x30] sm:$0xff]  ;;  %v510_v23 = vld [vmem:[%s8447_s30 + $0x48] sm:$0xff]  ;;  %497 = vst [vmem:[#allocation2] sm:$0xff] %v8338_v2 }
  0x16   : > { %6164 = vmatprep.mubr.msk.bf16.mxu1 %vm628_vm0, %v534_v7  ;;  %v512_v24 = vld [vmem:[%s8447_s30 + $0x58] sm:$0xff]  ;;  %v535_v26 = vpack.c.bf16 %v507_v22, %v505_v21  ;;  %v509_v28 = vld [vmem:[%s8447_s30 + $0x40] sm:$0xff]  ;;  %v511_v29 = vld [vmem:[%s8447_s30 + $0x50] sm:$0xff]  ;;  %499 = vst [vmem:[#allocation2 + $0x90] sm:$0xff] %v8338_v2 }
  0x17   : > { %658 = vmatpush1.bf16.msra.mxu1 %v7761_v3  ;;  %v538_v27 = vpack.c.bf16 %v512_v24, %v510_v23  ;;  %v514_v30 = vld [vmem:[%s8447_s30 + $0x68] sm:$0xff]  ;;  %v516_v31 = vld [vmem:[%s8447_s30 + $0x78] sm:$0xff]  ;;  %v537_v32 = vpack.c.bf16 %v511_v29, %v509_v28  ;;  %v513_v34 = vld [vmem:[%s8447_s30 + $0x60] sm:$0xff]  ;;  %500 = vst [vmem:[#allocation2 + $0x98] sm:$0xff] %v8338_v2 }
  0x18   : > { %659 = vmatprep.subr.bf16.mxu1 %v10279_v1  ;;  %v540_v33 = vpack.c.bf16 %v516_v31, %v514_v30  ;;  %v515_v35 = vld [vmem:[%s8447_s30 + $0x70] sm:$0xff]  ;;  %v518_v36 = vld [vmem:[%s8447_s30 + $0x88] sm:$0xff]  ;;  %v520_v37 = vld [vmem:[%s8447_s30 + $0x98] sm:$0xff] }
  0x19   : > { %v539_v38 = vpack.c.bf16 %v515_v35, %v513_v34  ;;  %v542_v39 = vpack.c.bf16 %v520_v37, %v518_v36  ;;  %v517_v40 = vld [vmem:[%s8447_s30 + $0x80] sm:$0xff]  ;;  %v519_v41 = vld [vmem:[%s8447_s30 + $0x90] sm:$0xff]  ;;  %v522_v42 = vld [vmem:[%s8447_s30 + $0xa8] sm:$0xff] }
  0x1a   : > { %v524_v43 = vld [vmem:[%s8447_s30 + $0xb8] sm:$0xff]  ;;  %v541_v44 = vpack.c.bf16 %v519_v41, %v517_v40  ;;  %v521_v46 = vld [vmem:[%s8447_s30 + $0xa0] sm:$0xff]  ;;  %v523_v47 = vld [vmem:[%s8447_s30 + $0xb0] sm:$0xff] }
  0x1b   : > { %660 = vmatpush1.bf16.msra.mxu1 %v7762_v6  ;;  %v544_v45 = vpack.c.bf16 %v524_v43, %v522_v42  ;;  %v526_v48 = vld [vmem:[%s8447_s30 + $0xc8] sm:$0xff]  ;;  %v528_v49 = vld [vmem:[%s8447_s30 + $0xd8] sm:$0xff]  ;;  %v543_v50 = vpack.c.bf16 %v523_v47, %v521_v46  ;;  %v525_v52 = vld [vmem:[%s8447_s30 + $0xc0] sm:$0xff]  ;;  %v8541_v6 = vshrl.u32 %v766_v5, 7 }
  0x1c   : > { %661 = vmatprep.subr.bf16.mxu1 %v10279_v1  ;;  %v546_v51 = vpack.c.bf16 %v528_v49, %v526_v48  ;;  %v527_v53 = vld [vmem:[%s8447_s30 + $0xd0] sm:$0xff]  ;;  %v530_v54 = vld [vmem:[%s8447_s30 + $0xe8] sm:$0xff]  ;;  %v532_v55 = vld [vmem:[%s8447_s30 + $0xf8] sm:$0xff] }
  0x1d   : > { %v545_v56 = vpack.c.bf16 %v527_v53, %v525_v52  ;;  %v548_v57 = vpack.c.bf16 %v532_v55, %v530_v54  ;;  %v529_v58 = vld [vmem:[%s8447_s30 + $0xe0] sm:$0xff]  ;;  %v531_v59 = vld [vmem:[%s8447_s30 + $0xf0] sm:$0xff]  ;;  %v7775_v3 = vld [vmem:[%s10265_s3 + $0x78] sm:$0xff]   ;;  %10302 = vst [vmem:[#allocation3_spill] sm:$0xff] %v8541_v6  ;;  %v768_v7 = vadd.s32 8, %v8541_v6  ;;  %v769_v16 = vadd.s32 16, %v8541_v6 }
  0x1e   : > { %v547_v60 = vpack.c.bf16 %v531_v59, %v529_v58  ;;  %v7776_v4 = vld [vmem:[%s10265_s3] sm:$0xff]   ;;  %v770_v21 = vadd.s32 24, %v8541_v6  ;;  %v7777_v42 = vld [vmem:[%s10265_s3 + $0x8] sm:$0xff]   ;;  %v7778_v52 = vld [vmem:[%s10265_s3 + $0x10] sm:$0xff]  }
  0x1f   : > { %662 = vmatpush1.bf16.msra.mxu1 %v7763_v8  ;;  %v8547_v8 = vld [vmem:[%s10264_s2] ss:$0 sm:$0xff]  ;;  %v801_v24 = vand.u32 7, %v769_v16 }
  0x20   : > { %663 = vmatprep.subr.bf16.mxu1 %v10279_v1  ;;  %v7812_v37 = vld [vmem:[%s10265_s3 + $0x160] sm:$0xff]  }
  0x21   : > { %vm8576_vm5 = vcmp.lt.s32.totalorder %v801_v24, 6 }
  0x23   : > { %664 = vmatpush1.bf16.msra.mxu1 %v7764_v9  ;;  %v787_v9 = vand.u32 7, %v8541_v6 }
  0x24   : > { %665 = vmatprep.subr.bf16.mxu1 %v10279_v1 }
  0x25   : > { %vm8551_vm1 = vcmp.lt.s32.totalorder %v787_v9, 6 }
  0x26   : > { %vm8281_vm4 = vmpackc.low %vm8551_vm1, %vm8339_vm3 }
  0x27   : > { %666 = vmatpush1.bf16.msra.mxu1 %v7765_v10 }
  0x28   : > { %667 = vmatprep.subr.bf16.mxu1 %v10279_v1 }
  0x2b   : > { %668 = vmatpush1.bf16.msra.mxu1 %v7766_v11  ;;  %v794_v11 = vand.u32 7, %v768_v7 }
  0x2c   : > { %669 = vmatprep.subr.bf16.mxu1 %v10279_v1 }
  0x2d   : > { %vm8559_vm2 = vcmp.lt.s32.totalorder %v794_v11, 6 }
  0x2e   : > { %vm8284_vm7 = vmpackc.low %vm8576_vm5, %vm8559_vm2 }
  0x2f   : > { %670 = vmatpush1.bf16.msra.mxu1 %v7767_v12 }
  0x30   : > { %7146 = vmatprep.subr.bf16.mxu1 %v7768_v17 }
  0x32   : > { %686 = vmatmul.mubr.bf16.vlgmr.msra.gmra.mrb[0].mxu1 %v533_v18 }
  0x33   : > { %6165 = vmatprep.mubr.msk.bf16.mxu1 %vm628_vm0, %v536_v20  ;;  %7147 = vmatpush3.bf16.msra.mxu1 %v7768_v17  ;;  %v7810_v20 = vld [vmem:[%s10265_s3 + $0x150] sm:$0xff]  }
  0x34   : > { %7148 = vmatprep.subr.bf16.mxu1 %v7769_v19 }
  0x37   : > { %7149 = vmatpush3.bf16.msra.mxu1 %v7769_v19 }
  0x38   : > { %7150 = vmatprep.subr.bf16.mxu1 %v7770_v25 }
  0x3a   : > { %694 = vmatmul.mubr.bf16.gmra.mrb[4].mxu1 %v535_v26 }
  0x3b   : > { %6166 = vmatprep.mubr.msk.bf16.mxu1 %vm628_vm0, %v538_v27  ;;  %7151 = vmatpush3.bf16.msra.mxu1 %v7770_v25  ;;  %v808_v27 = vand.u32 7, %v770_v21  ;;  %v776_v21 = vadd.s32 72, %v8541_v6 }
  0x3c   : > { %7152 = vmatprep.subr.bf16.mxu1 %v7771_v61 }
  0x3d   : > { %vm8584_vm6 = vcmp.lt.s32.totalorder %v808_v27, 6 }
  0x3f   : > { %7153 = vmatpush3.bf16.msra.mxu1 %v7771_v61 }
  0x40   : > { %7154 = vmatprep.subr.bf16.mxu1 %v7772_v62 }
  0x42   : > { %702 = vmatmul.mubr.bf16.gmra.mrb[8].mxu1 %v537_v32 }
  0x43   : > { %6167 = vmatprep.mubr.msk.bf16.mxu1 %vm628_vm0, %v540_v33  ;;  %7155 = vmatpush3.bf16.msra.mxu1 %v7772_v62  ;;  %v771_v33 = vadd.s32 32, %v8541_v6 }
  0x44   : > { %7156 = vmatprep.subr.bf16.mxu1 %v7773_v63 }
  0x45   : > { %v815_v41 = vand.u32 7, %v771_v33  ;;  %v850_v33 = vand.u32 7, %v776_v21 }
  0x47   : > { %7157 = vmatpush3.bf16.msra.mxu1 %v7773_v63  ;;  %vm8607_vm8 = vcmp.lt.s32.totalorder %v815_v41, 6  ;;  %v7779_v63 = vld [vmem:[%s10265_s3 + $0x18] sm:$0xff]   ;;  %vm8698_vm15 = vcmp.lt.s32.totalorder %v850_v33, 6 }
  0x48   : > { %7158 = vmatprep.subr.bf16.mxu1 %v7774_v0  ;;  %vm8287_vm10 = vmpackc.low %vm8607_vm8, %vm8584_vm6 }
  0x4a   : > { %710 = vmatmul.mubr.bf16.gmra.mrb[12].mxu1 %v539_v38  ;;  %v772_v38 = vadd.s32 40, %v8541_v6 }
  0x4b   : > { %6168 = vmatprep.mubr.msk.bf16.mxu1 %vm628_vm0, %v542_v39  ;;  %7159 = vmatpush3.bf16.msra.mxu1 %v7774_v0 }
  0x4c   : > { %7160 = vmatprep.subr.bf16.mxu1 %v7775_v3 }
  0x4f   : > { %7161 = vmatpush3.bf16.msra.mxu1 %v7775_v3 }
  0x50   : > { %7178 = vmatprep.subr.bf16.mxu1 %v7776_v4 }
  0x52   : > { %718 = vmatmul.mubr.bf16.gmra.mrb[16].mxu1 %v541_v44 }
  0x53   : > { %6169 = vmatprep.mubr.msk.bf16.mxu1 %vm628_vm0, %v544_v45  ;;  %v822_v45 = vand.u32 7, %v772_v38 }
  0x55   : > { %vm8618_vm9 = vcmp.lt.s32.totalorder %v822_v45, 6 }
  0x5a   : > { %726 = vmatmul.mubr.bf16.gmra.mrb[20].mxu1 %v543_v50 }
  0x5b   : > { %6170 = vmatprep.mubr.msk.bf16.mxu1 %vm628_vm0, %v546_v51  ;;  %v773_v51 = vadd.s32 48, %v8541_v6 }
  0x5d   : > { %v829_v62 = vand.u32 7, %v773_v51 }
  0x5f   : > { %vm8647_vm11 = vcmp.lt.s32.totalorder %v829_v62, 6 }
  0x60   : > { %vm8290_vm13 = vmpackc.low %vm8647_vm11, %vm8618_vm9 }
  0x62   : > { %734 = vmatmul.mubr.bf16.gmra.mrb[24].mxu1 %v545_v56 }
  0x63   : > { %6171 = vmatprep.mubr.msk.bf16.mxu1 %vm628_vm0, %v548_v57  ;;  %v774_v57 = vadd.s32 56, %v8541_v6 }
  0x6a   : > { %742 = vmatmul.mubr.bf16.gmra.mrb[28].mxu1 %v547_v60 }
 0x105   : > { %v687_v10 = vpop.f32.mrb[0].mxu1 }
 0x106   : > { %v688_v12 = vadd.f32 %v8547_v8, %v687_v10  ;;  %v689_v13 = vpop.f32.mrb[1].mxu1  ;;  %v7815_v10 = vld [vmem:[%s10265_s3 + $0x178] sm:$0xff]  }
 0x107   : > { %v690_v15 = vpop.f32.mrb[2].mxu1  ;;  %v7780_v13 = vld [vmem:[%s10265_s3 + $0x20] sm:$0xff]  }
 0x108   : > { %v8556_v17 = vmax.f32 %v688_v12, 0.0  ;;  %v691_v18 = vadd.f32 %v8547_v8, %v690_v15  ;;  %v692_v19 = vpop.f32.mrb[3].mxu1  ;;  %v775_v12 = vadd.s32 64, %v8541_v6 }
 0x10a   : > { %v1023_v22 = vsel %vm8551_vm1, %v8556_v17, 0.0  ;;  %v8567_v23 = vmax.f32 %v691_v18, 0.0  ;;  %v8282_v28 = vpack.c.bf16 %v8556_v17, %v8338_v2  ;;  %v843_v27 = vand.u32 7, %v775_v12  ;;  %v8735_v12 = vld [vmem:[%s10265_s3 + $0x80] sm:$0xff]  }
 0x10b   : > { %1039 = vst [vmem:[#allocation2 + $0x10] sm:$0xff] %v1023_v22 }
 0x10c   : > { %v1024_v25 = vsel %vm8559_vm2, %v8567_v23, 0.0  ;;  %8283 = vmatprep.mubr.msk.bf16.mxu1 %vm8281_vm4, %v8282_v28  ;;  %v7781_v28 = vld [vmem:[%s10265_s3 + $0x28] sm:$0xff]   ;;  %vm8687_vm14 = vcmp.lt.s32.totalorder %v843_v27, 6 }
 0x10d   : > { %1040 = vst [vmem:[#allocation2 + $0x18] sm:$0xff] %v1024_v25  ;;  %v695_v26 = vpop.f32.mrb[4].mxu1 }
 0x10e   : > { %v696_v29 = vadd.f32 %v8547_v8, %v695_v26  ;;  %v697_v30 = vpop.f32.mrb[5].mxu1 }
 0x10f   : > { %v698_v32 = vpop.f32.mrb[6].mxu1 }
 0x110   : > { %v8581_v34 = vmax.f32 %v696_v29, 0.0  ;;  %v699_v35 = vadd.f32 %v8547_v8, %v698_v32  ;;  %v700_v36 = vpop.f32.mrb[7].mxu1  ;;  %v7787_v29 = vld [vmem:[%s10265_s3 + $0x98] sm:$0xff]  }
 0x112   : > { %v1025_v39 = vsel %vm8576_vm5, %v8581_v34, 0.0  ;;  %v8592_v40 = vmax.f32 %v699_v35, 0.0  ;;  %v8285_v46 = vpack.c.bf16 %v8581_v34, %v8567_v23 }
 0x113   : > { %1041 = vst [vmem:[#allocation2 + $0x20] sm:$0xff] %v1025_v39 }
 0x114   : > { %v1026_v43 = vsel %vm8584_vm6, %v8592_v40, 0.0  ;;  %8286 = vmatmul.mubr.msk.bf16.vlgmr.msra.gmra.mrb[32].mxu1 %vm8284_vm7, %v8285_v46  ;;  %v8628_v60 = vld [vmem:[#allocation2 + $0x11] sm:$0xff]  ;;  %v8309_v14 = vpack.c.bf16 %v8592_v40, %v8581_v34 }
 0x115   : > { %1042 = vst [vmem:[#allocation2 + $0x28] sm:$0xff] %v1026_v43  ;;  %v703_v44 = vpop.f32.mrb[8].mxu1  ;;  %7179 = vmatpush3.bf16.msra.mxu1 %v7776_v4  ;;  %v836_v4 = vand.u32 7, %v774_v57  ;;  %v7782_v43 = vld [vmem:[%s10265_s3 + $0x30] sm:$0xff]   ;;  %v7783_v57 = vld [vmem:[%s10265_s3 + $0x38] sm:$0xff]  }
 0x116   : > { %v704_v47 = vadd.f32 %v8547_v8, %v703_v44  ;;  %v705_v48 = vpop.f32.mrb[9].mxu1  ;;  %7180 = vmatprep.subr.bf16.mxu1 %v7777_v42 }
 0x117   : > { %v706_v50 = vpop.f32.mrb[10].mxu1  ;;  %vm8658_vm12 = vcmp.lt.s32.totalorder %v836_v4, 6  ;;  %v778_v48 = vadd.s32 88, %v8541_v6 }
 0x118   : > { %v8615_v53 = vmax.f32 %v704_v47, 0.0  ;;  %v707_v54 = vadd.f32 %v8547_v8, %v706_v50  ;;  %v708_v55 = vpop.f32.mrb[11].mxu1  ;;  %vm8293_vm0 = vmpackc.low %vm8687_vm14, %vm8658_vm12 }
 0x119   : > { %7181 = vmatpush3.bf16.msra.mxu1 %v7777_v42  ;;  %v777_v42 = vadd.s32 80, %v8541_v6 }
 0x11a   : > { %v1027_v58 = vsel %vm8607_vm8, %v8615_v53, 0.0  ;;  %v8626_v59 = vmax.f32 %v707_v54, 0.0  ;;  %v8630_v61 = vld [vmem:[#allocation2 + $0x19] sm:$0xff]  ;;  %7182 = vmatprep.subr.bf16.mxu1 %v7778_v52  ;;  %v8288_v5 = vpack.c.bf16 %v8615_v53, %v8592_v40  ;;  %v7813_v40 = vld [vmem:[%s10265_s3 + $0x168] sm:$0xff]  }
 0x11b   : > { %1043 = vst [vmem:[#allocation2 + $0x30] sm:$0xff] %v1027_v58  ;;  %v857_v55 = vand.u32 7, %v777_v42 }
 0x11c   : > { %v1028_v2 = vsel %vm8618_vm9, %v8626_v59, 0.0  ;;  %8289 = vmatprep.mubr.msk.bf16.mxu1 %vm8287_vm10, %v8288_v5  ;;  %v8668_v25 = vld [vmem:[#allocation2 + $0x21] sm:$0xff] }
 0x11d   : > { %1044 = vst [vmem:[#allocation2 + $0x38] sm:$0xff] %v1028_v2  ;;  %v711_v3 = vpop.f32.mrb[12].mxu1  ;;  %7183 = vmatpush3.bf16.msra.mxu1 %v7778_v52  ;;  %v864_v2 = vand.u32 7, %v778_v48  ;;  %vm8727_vm3 = vcmp.lt.s32.totalorder %v857_v55, 6 }
 0x11e   : > { %v712_v7 = vadd.f32 %v8547_v8, %v711_v3  ;;  %v713_v9 = vpop.f32.mrb[13].mxu1  ;;  %7184 = vmatprep.subr.bf16.mxu1 %v7779_v63  ;;  %vm8296_vm7 = vmpackc.low %vm8727_vm3, %vm8698_vm15 }
 0x11f   : > { %v714_v11 = vpop.f32.mrb[14].mxu1  ;;  %vm8740_vm4 = vcmp.lt.s32.totalorder %v864_v2, 6  ;;  %v782_v2 = vadd.s32 120, %v8541_v6 }
 0x120   : > { %v8655_v15 = vmax.f32 %v712_v7, 0.0  ;;  %v715_v16 = vadd.f32 %v8547_v8, %v714_v11  ;;  %v716_v18 = vpop.f32.mrb[15].mxu1  ;;  %v10323_v7 = vmov 0  ;;  %v779_v11 = vadd.s32 96, %v8541_v6 }
 0x121   : > { %7185 = vmatpush3.bf16.msra.mxu1 %v7779_v63  ;;  %v10324_v7 = vsel %vm8727_vm3, 4294967295, %v10323_v7 }
 0x122   : > { %v1029_v22 = vsel %vm8647_vm11, %v8655_v15, 0.0  ;;  %v8666_v24 = vmax.f32 %v715_v16, 0.0  ;;  %v8670_v26 = vld [vmem:[#allocation2 + $0x29] sm:$0xff]  ;;  %7186 = vmatprep.subr.bf16.mxu1 %v7780_v13  ;;  %v8291_v35 = vpack.c.bf16 %v8655_v15, %v8626_v59  ;;  %v871_v33 = vand.u32 7, %v779_v11 }
 0x123   : > { %1045 = vst [vmem:[#allocation2 + $0x40] sm:$0xff] %v1029_v22  ;;  %v780_v22 = vadd.s32 104, %v8541_v6  ;;  %v10361_v21 = vpack.c.bf16 %v8670_v26, %v8668_v25 }
 0x124   : > { %v1030_v30 = vsel %vm8658_vm12, %v8666_v24, 0.0  ;;  %8292 = vmatmul.mubr.msk.bf16.gmra.mrb[36].mxu1 %vm8290_vm13, %v8291_v35  ;;  %v8708_v52 = vld [vmem:[#allocation2 + $0x31] sm:$0xff]  ;;  %vm8767_vm10 = vcmp.lt.s32.totalorder %v871_v33, 6  ;;  %v8315_v31 = vpack.c.bf16 %v8666_v24, %v8655_v15 }
 0x125   : > { %1046 = vst [vmem:[#allocation2 + $0x48] sm:$0xff] %v1030_v30  ;;  %v719_v32 = vpop.f32.mrb[16].mxu1  ;;  %7187 = vmatpush3.bf16.msra.mxu1 %v7780_v13 }
 0x126   : > { %v720_v36 = vadd.f32 %v8547_v8, %v719_v32  ;;  %v721_v38 = vpop.f32.mrb[17].mxu1  ;;  %7188 = vmatprep.subr.bf16.mxu1 %v7781_v28 }
 0x127   : > { %v722_v41 = vpop.f32.mrb[18].mxu1 }
 0x128   : > { %v8695_v44 = vmax.f32 %v720_v36, 0.0  ;;  %v723_v45 = vadd.f32 %v8547_v8, %v722_v41  ;;  %v724_v46 = vpop.f32.mrb[19].mxu1  ;;  %v878_v41 = vand.u32 7, %v780_v22 }
 0x129   : > { %7189 = vmatpush3.bf16.msra.mxu1 %v7781_v28  ;;  %v7822_v46 = vld [vmem:[%s10265_s3 + $0x1b0] sm:$0xff]  }
 0x12a   : > { %v1031_v50 = vsel %vm8687_vm14, %v8695_v44, 0.0  ;;  %v8706_v51 = vmax.f32 %v723_v45, 0.0  ;;  %v8710_v54 = vld [vmem:[#allocation2 + $0x39] sm:$0xff]  ;;  %7190 = vmatprep.subr.bf16.mxu1 %v7782_v43  ;;  %v8294_v3 = vpack.c.bf16 %v8695_v44, %v8666_v24  ;;  %vm8775_vm13 = vcmp.lt.s32.totalorder %v878_v41, 6 }
 0x12b   : > { %1047 = vst [vmem:[#allocation2 + $0x50] sm:$0xff] %v1031_v50  ;;  %v781_v50 = vadd.s32 112, %v8541_v6  ;;  %v10332_v41 = vmov 0 }
 0x12c   : > { %v1032_v62 = vsel %vm8698_vm15, %v8706_v51, 0.0  ;;  %8295 = vmatprep.mubr.msk.bf16.mxu1 %vm8293_vm0, %v8294_v3  ;;  %v8750_v30 = vld [vmem:[#allocation2 + $0x41] sm:$0xff]  ;;  %vm8299_vm0 = vmpackc.low %vm8767_vm10, %vm8740_vm4  ;;  %v8318_v34 = vpack.c.bf16 %v8706_v51, %v8695_v44 }
 0x12d   : > { %1048 = vst [vmem:[#allocation2 + $0x58] sm:$0xff] %v1032_v62  ;;  %v727_v63 = vpop.f32.mrb[20].mxu1  ;;  %7191 = vmatpush3.bf16.msra.mxu1 %v7782_v43  ;;  %v885_v11 = vand.u32 7, %v781_v50  ;;  %v10337_v50 = vmov 0 }
 0x12e   : > { %v728_v4 = vadd.f32 %v8547_v8, %v727_v63  ;;  %v729_v5 = vpop.f32.mrb[21].mxu1  ;;  %7192 = vmatprep.subr.bf16.mxu1 %v7783_v57 }
 0x12f   : > { %v730_v9 = vpop.f32.mrb[22].mxu1 }
 0x130   : > { %v8737_v13 = vmax.f32 %v728_v4, 0.0  ;;  %v731_v16 = vadd.f32 %v8547_v8, %v730_v9  ;;  %v732_v18 = vpop.f32.mrb[23].mxu1 }
 0x131   : > { %7193 = vmatpush3.bf16.msra.mxu1 %v7783_v57 }
 0x132   : > { %v1033_v27 = vsel %vm8727_vm3, %v8737_v13, 0.0  ;;  %v8748_v28 = vmax.f32 %v731_v16, 0.0  ;;  %v8752_v32 = vld [vmem:[#allocation2 + $0x49] sm:$0xff]  ;;  %7210 = vmatprep.subr.bf16.mxu1 %v8735_v12  ;;  %v8297_v42 = vpack.c.bf16 %v8737_v13, %v8706_v51  ;;  %v8868_v16 = vld [vmem:[#allocation2 + $0x3f] sm:$0xff]  ;;  %v10360_v51 = vpack.c.bf16 %v8630_v61, %v8628_v60 }
 0x133   : > { %1049 = vst [vmem:[#allocation2 + $0x60] sm:$0xff] %v1033_v27  ;;  %v892_v27 = vand.u32 7, %v782_v2  ;;  %v8870_v35 = vld [vmem:[#allocation2 + $0x4f] sm:$0xff] }
 0x134   : > { %v1034_v36 = vsel %vm8740_vm4, %v8748_v28, 0.0  ;;  %8298 = vmatmul.mubr.msk.bf16.gmra.mrb[40].mxu1 %vm8296_vm7, %v8297_v42  ;;  %v8785_v5 = vld [vmem:[#allocation2 + $0x51] sm:$0xff]  ;;  %vm8801_vm7 = vcmp.lt.s32.totalorder %v885_v11, 6  ;;  %v8321_v49 = vpack.c.bf16 %v8748_v28, %v8737_v13  ;;  %v7817_v13 = vld [vmem:[%s10265_s3 + $0x188] sm:$0xff]  }
 0x135   : > { %1050 = vst [vmem:[#allocation2 + $0x68] sm:$0xff] %v1034_v36  ;;  %v735_v38 = vpop.f32.mrb[24].mxu1  ;;  %v10333_v41 = vsel %vm8801_vm7, 4294967295, %v10332_v41  ;;  %vm8810_vm3 = vcmp.lt.s32.totalorder %v892_v27, 6 }
 0x136   : > { %v736_v43 = vadd.f32 %v8547_v8, %v735_v38  ;;  %v737_v45 = vpop.f32.mrb[25].mxu1  ;;  %10334 = vst [vmem:[#allocation5_spill] sm:$0xff] %v10333_v41  ;;  %v10338_v50 = vsel %vm8810_vm3, 4294967295, %v10337_v50  ;;  %v1426_v41 = vld [vmem:[#allocation2 + $0x9] sm:$0xff] }
 0x137   : > { %v738_v48 = vpop.f32.mrb[26].mxu1  ;;  %10339 = vst [vmem:[#allocation8_spill] sm:$0xff] %v10338_v50 }
 0x138   : > { %v8772_v55 = vmax.f32 %v736_v43, 0.0  ;;  %v739_v57 = vadd.f32 %v8547_v8, %v738_v48  ;;  %v740_v62 = vpop.f32.mrb[27].mxu1 }
 0x139   : > { %v8814_v62 = vld [vmem:[#allocation2 + $0xf] sm:$0xff] }
 0x13a   : > { %v1035_v3 = vsel %vm8767_vm10, %v8772_v55, 0.0  ;;  %v8783_v4 = vmax.f32 %v739_v57, 0.0  ;;  %v8787_v9 = vld [vmem:[#allocation2 + $0x59] sm:$0xff]  ;;  %v8300_v33 = vpack.c.bf16 %v8772_v55, %v8748_v28  ;;  %v1055_v57 = vld [vmem:[#allocation2 + $0x7] sm:$0xff] }
 0x13b   : > { %1051 = vst [vmem:[#allocation2 + $0x70] sm:$0xff] %v1035_v3  ;;  %v1071_v27 = vpack.c.bf16 %v8814_v62, %v1055_v57  ;;  %v7819_v28 = vld [vmem:[%s10265_s3 + $0x198] sm:$0xff]  }
 0x13c   : > { %10331 = vst [vmem:[#allocation4_spill] sm:$0xff] %v8783_v4  ;;  %v1036_v18 = vsel %vm8775_vm13, %v8783_v4, 0.0  ;;  %8301 = vmatprep.mubr.msk.bf16.mxu1 %vm8299_vm0, %v8300_v33  ;;  %v8820_v11 = vld [vmem:[#allocation2 + $0x61] sm:$0xff]  ;;  %vm8302_vm0 = vmpackc.low %vm8801_vm7, %vm8775_vm13 }
 0x13d   : > { %1052 = vst [vmem:[#allocation2 + $0x78] sm:$0xff] %v1036_v18  ;;  %v743_v22 = vpop.f32.mrb[28].mxu1 }
 0x13e   : > { %v744_v36 = vadd.f32 %v8547_v8, %v743_v22  ;;  %v745_v38 = vpop.f32.mrb[29].mxu1 }
 0x13f   : > { %v746_v42 = vpop.f32.mrb[30].mxu1  ;;  %v8839_v38 = vld [vmem:[#allocation2 + $0x2f] sm:$0xff] }
 0x140   : > { %v8805_v43 = vmax.f32 %v744_v36, 0.0  ;;  %v8808_v45 = vadd.f32 %v8547_v8, %v746_v42  ;;  %v748_v48 = vpop.f32.mrb[31].mxu1  ;;  %v8837_v36 = vld [vmem:[#allocation2 + $0x1f] sm:$0xff]  ;;  %v8841_v42 = vld [vmem:[#allocation2 + $0x17] sm:$0xff] }
 0x141   : > { %v7786_v8 = vld [vmem:[%s10265_s3 + $0x90] sm:$0xff]  }
 0x142   : > { %10335 = vst [vmem:[#allocation6_spill] sm:$0xff] %v8805_v43  ;;  %10336 = vst [vmem:[#allocation7_spill] sm:$0xff] %v8808_v45  ;;  %v1037_v2 = vsel %vm8801_vm7, %v8805_v43, 0.0  ;;  %v10281_v3 = vmax.f32 %v8808_v45, 0.0  ;;  %v8822_v18 = vld [vmem:[#allocation2 + $0x69] sm:$0xff]  ;;  %v8303_v33 = vpack.c.bf16 %v8805_v43, %v8783_v4 }
 0x143   : > { %1053 = vst [vmem:[#allocation2 + $0x80] sm:$0xff] %v1037_v2  ;;  %v8849_v2 = vpack.c.bf16 %v8837_v36, %v8841_v42  ;;  %v8894_v6 = vld [vmem:[#allocation2 + $0x6f] sm:$0xff] }
 0x144   : > { %v1038_v22 = vsel %vm8810_vm3, %v10281_v3, 0.0  ;;  %8304 = vmatmul.mubr.msk.bf16.gmra.mrb[44].mxu1 %vm8302_vm0, %v8303_v33  ;;  %v8843_v48 = vld [vmem:[#allocation2 + $0x71] sm:$0xff]  ;;  %v8892_v3 = vld [vmem:[#allocation2 + $0x5f] sm:$0xff]  ;;  %v7793_v4 = vld [vmem:[%s10265_s3 + $0xc8] sm:$0xff]  }
 0x145   : > { %1054 = vst [vmem:[#allocation2 + $0x88] sm:$0xff] %v1038_v22  ;;  %7194 = vmatprep.mubr.bf16.mxu1 %v1071_v27  ;;  %10340 = vst [vmem:[#allocation9_spill] sm:$0xff] %v8849_v2  ;;  %v8851_v22 = vld [vmem:[#allocation2 + $0x27] sm:$0xff]  ;;  %v8872_v33 = vld [vmem:[#allocation2 + $0x37] sm:$0xff] }
 0x146   : > { %v7785_v27 = vld [vmem:[%s10265_s3 + $0x88] sm:$0xff]   ;;  %v8860_v1 = vpack.c.bf16 %v8839_v38, %v8851_v22  ;;  %v8876_v58 = vpack.c.bf16 %v8868_v16, %v8872_v33  ;;  %v8918_v43 = vld [vmem:[#allocation2 + $0x77] sm:$0xff]  ;;  %vm8305_vm0 = vmpackc.low %vm8559_vm2, %vm8551_vm1 }
 0x147   : > { %vm8308_vm1 = vmpackc.low %vm8584_vm6, %vm8576_vm5  ;;  %v2448_v19 = vld [vmem:[#allocation2 + $0x78] sm:$0xff] }
 0x148   : > { %10341 = vst [vmem:[#allocation10_spill] sm:$0xff] %v8860_v1  ;;  %10342 = vst [vmem:[#allocation11_spill] sm:$0xff] %v8876_v58 }
 0x149   : > { %vm8311_vm2 = vmpackc.low %vm8618_vm9, %vm8607_vm8  ;;  %vm10353_vm8 = vnez %v10324_v7  ;;  %v10357_v24 = vld [vmem:[#allocation6_spill] sm:$0xff]  ;;  %v10358_v39 = vld [vmem:[#allocation7_spill] sm:$0xff] }
 0x14a   : > { %v8845_v57 = vld [vmem:[#allocation2 + $0x79] sm:$0xff]  ;;  %vm8314_vm5 = vmpackc.low %vm8658_vm12, %vm8647_vm11  ;;  %v10359_v44 = vmax.f32 %v10358_v39, 0.0 }
 0x14b   : > { %v8916_v45 = vld [vmem:[#allocation2 + $0x7f] sm:$0xff]  ;;  %vm8317_vm6 = vmpackc.low %vm8698_vm15, %vm8687_vm14 }
 0x14c   : > { %7195 = vmatmul.mubr.bf16.vlgmr.msra.gmra.mrb[32].mxu1 %v8849_v2  ;;  %v8922_v50 = vpack.c.bf16 %v8916_v45, %v8918_v43  ;;  %vm8320_vm9 = vmpackc.low %vm8740_vm4, %vm10353_vm8  ;;  %v8327_v47 = vpack.c.bf16 %v10359_v44, %v10357_v24  ;;  %v7816_v7 = vld [vmem:[%s10265_s3 + $0x180] sm:$0xff]   ;;  %v7837_v24 = vld [vmem:[%s10265_s3 + $0x228] sm:$0xff]  }
 0x14d   : > { %7211 = vmatpush3.bf16.msra.mxu1 %v8735_v12  ;;  %7198 = vmatprep.mubr.bf16.mxu1 %v8860_v1  ;;  %v8878_v12 = vld [vmem:[#allocation2 + $0x47] sm:$0xff]  ;;  %v8896_v1 = vld [vmem:[#allocation2 + $0x57] sm:$0xff]  ;;  %vm8323_vm11 = vmpackc.low %vm8775_vm13, %vm8767_vm10 }
 0x14e   : > { %7212 = vmatprep.subr.bf16.mxu1 %v7785_v27  ;;  %v8885_v0 = vpack.c.bf16 %v8870_v35, %v8878_v12  ;;  %v8900_v2 = vpack.c.bf16 %v8892_v3, %v8896_v1  ;;  %10346 = vst [vmem:[#allocation15_spill] sm:$0xff] %v8922_v50  ;;  %vm8326_vm12 = vmpackc.low %vm8810_vm3, %vm8801_vm7  ;;  %v7838_v44 = vld [vmem:[%s10265_s3 + $0x230] sm:$0xff]  }
 0x150   : > { %10343 = vst [vmem:[#allocation12_spill] sm:$0xff] %v8885_v0  ;;  %10344 = vst [vmem:[#allocation13_spill] sm:$0xff] %v8900_v2 }
 0x151   : > { %7213 = vmatpush3.bf16.msra.mxu1 %v7785_v27  ;;  %v7788_v27 = vld [vmem:[%s10265_s3 + $0xa0] sm:$0xff]  }
 0x152   : > { %7214 = vmatprep.subr.bf16.mxu1 %v7786_v8 }
 0x154   : > { %7199 = vmatmul.mubr.bf16.gmra.mrb[36].mxu1 %v8876_v58 }
 0x155   : > { %7215 = vmatpush3.bf16.msra.mxu1 %v7786_v8  ;;  %7202 = vmatprep.mubr.bf16.mxu1 %v8885_v0  ;;  %v8902_v8 = vld [vmem:[#allocation2 + $0x67] sm:$0xff] }
 0x156   : > { %7216 = vmatprep.subr.bf16.mxu1 %v7787_v29  ;;  %v7789_v0 = vld [vmem:[%s10265_s3 + $0xa8] sm:$0xff]   ;;  %v8909_v58 = vpack.c.bf16 %v8894_v6, %v8902_v8 }
 0x158   : > { %10345 = vst [vmem:[#allocation14_spill] sm:$0xff] %v8909_v58 }
 0x159   : > { %7217 = vmatpush3.bf16.msra.mxu1 %v7787_v29  ;;  %v7790_v29 = vld [vmem:[%s10265_s3 + $0xb0] sm:$0xff]  }
 0x15a   : > { %7218 = vmatprep.subr.bf16.mxu1 %v7788_v27 }
 0x15c   : > { %7203 = vmatmul.mubr.bf16.gmra.mrb[40].mxu1 %v8900_v2  ;;  %v8934_v2 = vpack.c.bf16 %v8668_v25, %v8630_v61  ;;  %v7818_v61 = vld [vmem:[%s10265_s3 + $0x190] sm:$0xff]   ;;  %v10363_v25 = vpack.c.bf16 %v8752_v32, %v8750_v30 }
 0x15d   : > { %7219 = vmatpush3.bf16.msra.mxu1 %v7788_v27  ;;  %7206 = vmatprep.mubr.bf16.mxu1 %v8909_v58  ;;  %v7791_v27 = vld [vmem:[%s10265_s3 + $0xb8] sm:$0xff]   ;;  %v1442_v58 = vpack.c.bf16 %v8628_v60, %v1426_v41  ;;  %v8941_v41 = vpack.c.bf16 %v8708_v52, %v8670_v26  ;;  %v10362_v60 = vpack.c.bf16 %v8710_v54, %v8708_v52  ;;  %v7820_v52 = vld [vmem:[%s10265_s3 + $0x1a0] sm:$0xff]  }
 0x15e   : > { %7220 = vmatprep.subr.bf16.mxu1 %v7789_v0  ;;  %10347 = vst [vmem:[#allocation16_spill] sm:$0xff] %v8934_v2  ;;  %v10364_v26 = vpack.c.bf16 %v8787_v9, %v8785_v5 }
 0x15f   : > { %10348 = vst [vmem:[#allocation17_spill] sm:$0xff] %v8941_v41 }
 0x161   : > { %7221 = vmatpush3.bf16.msra.mxu1 %v7789_v0  ;;  %v7792_v0 = vld [vmem:[%s10265_s3 + $0xc0] sm:$0xff]  }
 0x162   : > { %7222 = vmatprep.subr.bf16.mxu1 %v7790_v29 }
 0x164   : > { %7207 = vmatmul.mubr.bf16.gmra.mrb[44].mxu1 %v8922_v50  ;;  %v7801_v50 = vld [vmem:[%s10265_s3 + $0x108] sm:$0xff]  }
 0x165   : > { %7223 = vmatpush3.bf16.msra.mxu1 %v7790_v29  ;;  %7226 = vmatprep.mubr.bf16.mxu1 %v1442_v58  ;;  %v7794_v58 = vld [vmem:[%s10265_s3 + $0xd0] sm:$0xff]   ;;  %v8950_v29 = vpack.c.bf16 %v8750_v30, %v8710_v54  ;;  %v7821_v54 = vld [vmem:[%s10265_s3 + $0x1a8] sm:$0xff]   ;;  %v10365_v30 = vpack.c.bf16 %v8822_v18, %v8820_v11 }
 0x166   : > { %7224 = vmatprep.subr.bf16.mxu1 %v7791_v27 }
 0x167   : > { %10349 = vst [vmem:[#allocation18_spill] sm:$0xff] %v8950_v29 }
 0x169   : > { %7225 = vmatpush3.bf16.msra.mxu1 %v7791_v27  ;;  %v7795_v27 = vld [vmem:[%s10265_s3 + $0xd8] sm:$0xff]  }
 0x16a   : > { %7242 = vmatprep.subr.bf16.mxu1 %v7792_v0 }
 0x16c   : > { %7227 = vmatmul.mubr.bf16.vlgmr.msra.gmra.mrb[32].mxu1 %v8934_v2  ;;  %v7797_v2 = vld [vmem:[%s10265_s3 + $0xe8] sm:$0xff]  }
 0x16d   : > { %7243 = vmatpush3.bf16.msra.mxu1 %v7792_v0  ;;  %7230 = vmatprep.mubr.bf16.mxu1 %v8941_v41  ;;  %v8957_v0 = vpack.c.bf16 %v8785_v5, %v8752_v32  ;;  %v8966_v41 = vpack.c.bf16 %v8820_v11, %v8787_v9  ;;  %v10366_v32 = vpack.c.bf16 %v8845_v57, %v8843_v48  ;;  %v7823_v5 = vld [vmem:[%s10265_s3 + $0x1b8] sm:$0xff]   ;;  %v10367_v9 = vld [vmem:[#allocation9_spill] sm:$0xff]  ;;  %v7824_v11 = vld [vmem:[%s10265_s3 + $0x1c0] sm:$0xff]  }
 0x16e   : > { %7244 = vmatprep.subr.bf16.mxu1 %v7793_v4 }
 0x16f   : > { %10350 = vst [vmem:[#allocation19_spill] sm:$0xff] %v8957_v0  ;;  %10351 = vst [vmem:[#allocation20_spill] sm:$0xff] %v8966_v41 }
 0x171   : > { %7245 = vmatpush3.bf16.msra.mxu1 %v7793_v4  ;;  %v7796_v4 = vld [vmem:[%s10265_s3 + $0xe0] sm:$0xff]  }
 0x172   : > { %7246 = vmatprep.subr.bf16.mxu1 %v7794_v58 }
 0x174   : > { %7231 = vmatmul.mubr.bf16.gmra.mrb[36].mxu1 %v8950_v29 }
 0x175   : > { %7247 = vmatpush3.bf16.msra.mxu1 %v7794_v58  ;;  %7234 = vmatprep.mubr.bf16.mxu1 %v8957_v0  ;;  %v8973_v58 = vpack.c.bf16 %v8843_v48, %v8822_v18  ;;  %v8980_v0 = vld [vmem:[#allocation2 + $0x81] sm:$0xff]  ;;  %v10368_v48 = vld [vmem:[#allocation10_spill] sm:$0xff] }
 0x176   : > { %7248 = vmatprep.subr.bf16.mxu1 %v7795_v27  ;;  %v8984_v29 = vpack.c.bf16 %v8980_v0, %v8845_v57  ;;  %v7825_v18 = vld [vmem:[%s10265_s3 + $0x1c8] sm:$0xff]   ;;  %v10369_v57 = vld [vmem:[#allocation11_spill] sm:$0xff] }
 0x177   : > { %10352 = vst [vmem:[#allocation21_spill] sm:$0xff] %v8973_v58 }
 0x179   : > { %7249 = vmatpush3.bf16.msra.mxu1 %v7795_v27  ;;  %v7798_v27 = vld [vmem:[%s10265_s3 + $0xf0] sm:$0xff]  }
 0x17a   : > { %7250 = vmatprep.subr.bf16.mxu1 %v7796_v4 }
 0x17c   : > { %7235 = vmatmul.mubr.bf16.gmra.mrb[40].mxu1 %v8966_v41  ;;  %v7799_v41 = vld [vmem:[%s10265_s3 + $0xf8] sm:$0xff]  }
 0x17d   : > { %7251 = vmatpush3.bf16.msra.mxu1 %v7796_v4  ;;  %7238 = vmatprep.mubr.bf16.mxu1 %v8973_v58  ;;  %v1644_v4 = vpack.c.bf16 %v8841_v42, %v8814_v62  ;;  %v1645_v58 = vpack.c.bf16 %v8851_v22, %v8837_v36  ;;  %v1646_v62 = vpack.c.bf16 %v8872_v33, %v8839_v38  ;;  %v7802_v42 = vld [vmem:[%s10265_s3 + $0x110] sm:$0xff]   ;;  %v7803_v22 = vld [vmem:[%s10265_s3 + $0x118] sm:$0xff]   ;;  %v7804_v33 = vld [vmem:[%s10265_s3 + $0x120] sm:$0xff]  }
 0x17e   : > { %7252 = vmatprep.subr.bf16.mxu1 %v7797_v2  ;;  %v1647_v36 = vpack.c.bf16 %v8878_v12, %v8868_v16  ;;  %v1648_v38 = vpack.c.bf16 %v8896_v1, %v8870_v35  ;;  %v1649_v16 = vpack.c.bf16 %v8902_v8, %v8892_v3  ;;  %v1650_v1 = vpack.c.bf16 %v8918_v43, %v8894_v6  ;;  %v7806_v35 = vld [vmem:[%s10265_s3 + $0x130] sm:$0xff]   ;;  %v9025_v12 = vld [vmem:[#allocation2 + $0x87] sm:$0xff]  ;;  %v7807_v8 = vld [vmem:[%s10265_s3 + $0x138] sm:$0xff]  }
 0x17f   : > { %v1651_v3 = vpack.c.bf16 %v9025_v12, %v8916_v45  ;;  %v8306_v6 = vpack.c.bf16 %v8567_v23, %v8556_v17  ;;  %v7808_v43 = vld [vmem:[%s10265_s3 + $0x140] sm:$0xff]   ;;  %v7809_v45 = vld [vmem:[%s10265_s3 + $0x148] sm:$0xff]   ;;  %v8312_v17 = vpack.c.bf16 %v8626_v59, %v8615_v53  ;;  %v7811_v23 = vld [vmem:[%s10265_s3 + $0x158] sm:$0xff]  }
 0x180   : > { %v10354_v53 = vld [vmem:[#allocation4_spill] sm:$0xff]  ;;  %v7814_v59 = vld [vmem:[%s10265_s3 + $0x170] sm:$0xff]  }
 0x181   : > { %7253 = vmatpush3.bf16.msra.mxu1 %v7797_v2  ;;  %v7800_v2 = vld [vmem:[%s10265_s3 + $0x100] sm:$0xff]   ;;  %v8324_v56 = vpack.c.bf16 %v10354_v53, %v8772_v55  ;;  %v9147_v55 = vld [vmem:[#allocation2 + $0x89] sm:$0xff] }
 0x182   : > { %7254 = vmatprep.subr.bf16.mxu1 %v7798_v27  ;;  %v2055_v63 = vpack.c.bf16 %v9147_v55, %v8980_v0  ;;  %v7827_v0 = vld [vmem:[%s10265_s3 + $0x1d8] sm:$0xff]   ;;  %v7836_v53 = vld [vmem:[%s10265_s3 + $0x220] sm:$0xff]  }
 0x184   : > { %7239 = vmatmul.mubr.bf16.gmra.mrb[44].mxu1 %v8984_v29 }
 0x185   : > { %7255 = vmatpush3.bf16.msra.mxu1 %v7798_v27  ;;  %7258 = vmatprep.mubr.bf16.mxu1 %v1644_v4  ;;  %v10371_v27 = vld [vmem:[#allocation13_spill] sm:$0xff]  ;;  %v7828_v4 = vld [vmem:[%s10265_s3 + $0x1e0] sm:$0xff]  }
 0x186   : > { %7256 = vmatprep.subr.bf16.mxu1 %v7799_v41 }
 0x189   : > { %7257 = vmatpush3.bf16.msra.mxu1 %v7799_v41  ;;  %v7826_v41 = vld [vmem:[%s10265_s3 + $0x1d0] sm:$0xff]  }
 0x18a   : > { %7274 = vmatprep.subr.bf16.mxu1 %v7800_v2 }
 0x18c   : > { %7259 = vmatmul.mubr.bf16.vlgmr.msra.gmra.mrb[32].mxu1 %v1645_v58  ;;  %v10370_v58 = vld [vmem:[#allocation12_spill] sm:$0xff] }
 0x18d   : > { %7275 = vmatpush3.bf16.msra.mxu1 %v7800_v2  ;;  %7262 = vmatprep.mubr.bf16.mxu1 %v1646_v62  ;;  %v7829_v2 = vld [vmem:[%s10265_s3 + $0x1e8] sm:$0xff]   ;;  %v10372_v62 = vld [vmem:[#allocation14_spill] sm:$0xff] }
 0x18e   : > { %7276 = vmatprep.subr.bf16.mxu1 %v7801_v50 }
 0x191   : > { %7277 = vmatpush3.bf16.msra.mxu1 %v7801_v50  ;;  %v7805_v50 = vld [vmem:[%s10265_s3 + $0x128] sm:$0xff]  }
 0x192   : > { %7278 = vmatprep.subr.bf16.mxu1 %v7802_v42 }
 0x194   : > { %7263 = vmatmul.mubr.bf16.gmra.mrb[36].mxu1 %v1647_v36  ;;  %v7830_v36 = vld [vmem:[%s10265_s3 + $0x1f0] sm:$0xff]  }
 0x195   : > { %7279 = vmatpush3.bf16.msra.mxu1 %v7802_v42  ;;  %7266 = vmatprep.mubr.bf16.mxu1 %v1648_v38  ;;  %v10373_v42 = vld [vmem:[#allocation15_spill] sm:$0xff] }
 0x196   : > { %7280 = vmatprep.subr.bf16.mxu1 %v7803_v22  ;;  %v2437_v38 = vld [vmem:[#allocation2 + $0x20] sm:$0xff] }
 0x199   : > { %7281 = vmatpush3.bf16.msra.mxu1 %v7803_v22  ;;  %v2249_v22 = vld [vmem:[#allocation2 + $0x8f] sm:$0xff] }
 0x19a   : > { %7282 = vmatprep.subr.bf16.mxu1 %v7804_v33 }
 0x19c   : > { %7267 = vmatmul.mubr.bf16.gmra.mrb[40].mxu1 %v1649_v16  ;;  %v2436_v16 = vld [vmem:[#allocation2 + $0x18] sm:$0xff] }
 0x19d   : > { %7283 = vmatpush3.bf16.msra.mxu1 %v7804_v33  ;;  %7270 = vmatprep.mubr.bf16.mxu1 %v1650_v1  ;;  %v2257_v33 = vpack.c.bf16 %v2249_v22, %v9025_v12  ;;  %v2452_v1 = vpack.c.bf16 %v2437_v38, %v2436_v16 }
 0x19e   : > { %7284 = vmatprep.subr.bf16.mxu1 %v7805_v50 }
 0x1a1   : > { %7285 = vmatpush3.bf16.msra.mxu1 %v7805_v50  ;;  %v7831_v50 = vld [vmem:[%s10265_s3 + $0x1f8] sm:$0xff]  }
 0x1a2   : > { %7286 = vmatprep.subr.bf16.mxu1 %v7806_v35 }
 0x1a4   : > { %7271 = vmatmul.mubr.bf16.gmra.mrb[44].mxu1 %v1651_v3  ;;  %v2439_v3 = vld [vmem:[#allocation2 + $0x30] sm:$0xff] }
 0x1a5   : > { %7287 = vmatpush3.bf16.msra.mxu1 %v7806_v35  ;;  %8307 = vmatprep.mubr.msk.bf16.mxu1 %vm8305_vm0, %v8306_v6  ;;  %v7832_v35 = vld [vmem:[%s10265_s3 + $0x200] sm:$0xff]   ;;  %v2438_v6 = vld [vmem:[#allocation2 + $0x28] sm:$0xff] }
 0x1a6   : > { %7288 = vmatprep.subr.bf16.mxu1 %v7807_v8  ;;  %v2453_v12 = vpack.c.bf16 %v2439_v3, %v2438_v6 }
 0x1a9   : > { %7289 = vmatpush3.bf16.msra.mxu1 %v7807_v8  ;;  %v2441_v8 = vld [vmem:[#allocation2 + $0x40] sm:$0xff] }
 0x1aa   : > { %7306 = vmatprep.subr.bf16.mxu1 %v7808_v43 }
 0x1ac   : > { %8310 = vmatmul.mubr.msk.bf16.vlgmr.msra.gmra.mrb[32].mxu1 %vm8308_vm1, %v8309_v14 }
 0x1ad   : > { %7307 = vmatpush3.bf16.msra.mxu1 %v7808_v43  ;;  %8313 = vmatprep.mubr.msk.bf16.mxu1 %vm8311_vm2, %v8312_v17  ;;  %v2440_v43 = vld [vmem:[#allocation2 + $0x38] sm:$0xff]  ;;  %v7834_v17 = vld [vmem:[%s10265_s3 + $0x210] sm:$0xff]  }
 0x1ae   : > { %7308 = vmatprep.subr.bf16.mxu1 %v7809_v45  ;;  %v2454_v14 = vpack.c.bf16 %v2441_v8, %v2440_v43 }
 0x1b1   : > { %7309 = vmatpush3.bf16.msra.mxu1 %v7809_v45  ;;  %v7833_v45 = vld [vmem:[%s10265_s3 + $0x208] sm:$0xff]  }
 0x1b2   : > { %7310 = vmatprep.subr.bf16.mxu1 %v7810_v20 }
 0x1b4   : > { %8316 = vmatmul.mubr.msk.bf16.gmra.mrb[36].mxu1 %vm8314_vm5, %v8315_v31  ;;  %v2442_v31 = vld [vmem:[#allocation2 + $0x48] sm:$0xff] }
 0x1b5   : > { %7311 = vmatpush3.bf16.msra.mxu1 %v7810_v20  ;;  %8319 = vmatprep.mubr.msk.bf16.mxu1 %vm8317_vm6, %v8318_v34  ;;  %v2443_v20 = vld [vmem:[#allocation2 + $0x50] sm:$0xff] }
 0x1b6   : > { %7312 = vmatprep.subr.bf16.mxu1 %v7811_v23  ;;  %v2455_v34 = vpack.c.bf16 %v2443_v20, %v2442_v31 }
 0x1b9   : > { %7313 = vmatpush3.bf16.msra.mxu1 %v7811_v23  ;;  %v2445_v23 = vld [vmem:[#allocation2 + $0x60] sm:$0xff] }
 0x1ba   : > { %7314 = vmatprep.subr.bf16.mxu1 %v7812_v37 }
 0x1bc   : > { %8322 = vmatmul.mubr.msk.bf16.gmra.mrb[40].mxu1 %vm8320_vm9, %v8321_v49 }
 0x1bd   : > { %7315 = vmatpush3.bf16.msra.mxu1 %v7812_v37  ;;  %8325 = vmatprep.mubr.msk.bf16.mxu1 %vm8323_vm11, %v8324_v56  ;;  %v2444_v37 = vld [vmem:[#allocation2 + $0x58] sm:$0xff]  ;;  %v2447_v56 = vld [vmem:[#allocation2 + $0x70] sm:$0xff] }
 0x1be   : > { %7316 = vmatprep.subr.bf16.mxu1 %v7813_v40  ;;  %v2456_v49 = vpack.c.bf16 %v2445_v23, %v2444_v37 }
 0x1c1   : > { %7317 = vmatpush3.bf16.msra.mxu1 %v7813_v40  ;;  %v7835_v40 = vld [vmem:[%s10265_s3 + $0x218] sm:$0xff]  }
 0x1c2   : > { %7318 = vmatprep.subr.bf16.mxu1 %v7814_v59 }
 0x1c4   : > { %8328 = vmatmul.mubr.msk.bf16.gmra.mrb[44].mxu1 %vm8326_vm12, %v8327_v47  ;;  %v2450_v47 = vld [vmem:[#allocation2 + $0x88] sm:$0xff] }
 0x1c5   : > { %7319 = vmatpush3.bf16.msra.mxu1 %v7814_v59  ;;  %7322 = vmatprep.mubr.bf16.mxu1 %v10360_v51  ;;  %v2449_v59 = vld [vmem:[#allocation2 + $0x80] sm:$0xff]  ;;  %v8280_v51 = vld [vmem:[#allocation2 + $0x8] sm:$0xff] }
 0x1c6   : > { %7320 = vmatprep.subr.bf16.mxu1 %v7815_v10  ;;  %v2458_v39 = vpack.c.bf16 %v2449_v59, %v2448_v19 }
 0x1c9   : > { %7321 = vmatpush3.bf16.msra.mxu1 %v7815_v10  ;;  %v2446_v10 = vld [vmem:[#allocation2 + $0x68] sm:$0xff] }
 0x1ca   : > { %7338 = vmatprep.subr.bf16.mxu1 %v7816_v7  ;;  %v2457_v15 = vpack.c.bf16 %v2447_v56, %v2446_v10 }
 0x1cc   : > { %7323 = vmatmul.mubr.bf16.vlgmr.msra.gmra.mrb[32].mxu1 %v10361_v21  ;;  %v10374_v21 = vld [vmem:[#allocation16_spill] sm:$0xff] }
 0x1cd   : > { %7339 = vmatpush3.bf16.msra.mxu1 %v7816_v7  ;;  %7326 = vmatprep.mubr.bf16.mxu1 %v10362_v60  ;;  %v2459_v7 = vpack.c.bf16 %v8280_v51, %v2450_v47  ;;  %v7840_v60 = vld [vmem:[%s10267_s5] sm:$0xff]  }
 0x1ce   : > { %7340 = vmatprep.subr.bf16.mxu1 %v7817_v13 }
 0x1d1   : > { %7341 = vmatpush3.bf16.msra.mxu1 %v7817_v13  ;;  %v7839_v13 = vld [vmem:[%s10265_s3 + $0x238] sm:$0xff]  }
 0x1d2   : > { %7342 = vmatprep.subr.bf16.mxu1 %v7818_v61 }
 0x1d4   : > { %7327 = vmatmul.mubr.bf16.gmra.mrb[36].mxu1 %v10363_v25  ;;  %v10376_v25 = vld [vmem:[#allocation18_spill] sm:$0xff] }
 0x1d5   : > { %7343 = vmatpush3.bf16.msra.mxu1 %v7818_v61  ;;  %7330 = vmatprep.mubr.bf16.mxu1 %v10364_v26  ;;  %v7841_v61 = vld [vmem:[%s10267_s5 + $0x8] sm:$0xff]   ;;  %v7842_v26 = vld [vmem:[%s10267_s5 + $0x10] sm:$0xff]  }
 0x1d6   : > { %7344 = vmatprep.subr.bf16.mxu1 %v7819_v28 }
 0x1d9   : > { %7345 = vmatpush3.bf16.msra.mxu1 %v7819_v28  ;;  %v10375_v28 = vld [vmem:[#allocation17_spill] sm:$0xff] }
 0x1da   : > { %7346 = vmatprep.subr.bf16.mxu1 %v7820_v52 }
 0x1dc   : > { %7331 = vmatmul.mubr.bf16.gmra.mrb[40].mxu1 %v10365_v30  ;;  %v10378_v30 = vld [vmem:[#allocation20_spill] sm:$0xff] }
 0x1dd   : > { %7347 = vmatpush3.bf16.msra.mxu1 %v7820_v52  ;;  %7334 = vmatprep.mubr.bf16.mxu1 %v10366_v32  ;;  %v7843_v52 = vld [vmem:[%s10267_s5 + $0x18] sm:$0xff]   ;;  %v7844_v32 = vld [vmem:[%s10267_s5 + $0x20] sm:$0xff]  }
 0x1de   : > { %7348 = vmatprep.subr.bf16.mxu1 %v7821_v54 }
 0x1e1   : > { %7349 = vmatpush3.bf16.msra.mxu1 %v7821_v54  ;;  %v10377_v54 = vld [vmem:[#allocation19_spill] sm:$0xff] }
 0x1e2   : > { %7350 = vmatprep.subr.bf16.mxu1 %v7822_v46 }
 0x1e4   : > { %7335 = vmatmul.mubr.bf16.gmra.mrb[44].mxu1 %v2055_v63  ;;  %v10379_v63 = vld [vmem:[#allocation21_spill] sm:$0xff] }
 0x1e5   : > { %7351 = vmatpush3.bf16.msra.mxu1 %v7822_v46  ;;  %7354 = vmatprep.mubr.bf16.mxu1 %v10367_v9  ;;  %v7845_v46 = vld [vmem:[%s10267_s5 + $0x28] sm:$0xff]  }
 0x1e6   : > { %7352 = vmatprep.subr.bf16.mxu1 %v7823_v5 }
 0x1e9   : > { %7353 = vmatpush3.bf16.msra.mxu1 %v7823_v5  ;;  %v2653_v5 = vld [vmem:[#allocation2 + $0x91] sm:$0xff] }
 0x1ea   : > { %7370 = vmatprep.subr.bf16.mxu1 %v7824_v11  ;;  %v2661_v9 = vpack.c.bf16 %v2653_v5, %v9147_v55  ;;  %v9248_v55 = vld [vmem:[%s10266_s4] ss:$0 sm:$0xff] }
 0x1ec   : > { %7355 = vmatmul.mubr.bf16.vlgmr.msra.gmra.mrb[32].mxu1 %v10368_v48 }
 0x1ed   : > { %7371 = vmatpush3.bf16.msra.mxu1 %v7824_v11  ;;  %7358 = vmatprep.mubr.bf16.mxu1 %v10369_v57  ;;  %v7846_v11 = vld [vmem:[%s10267_s5 + $0x30] sm:$0xff]  }
 0x1ee   : > { %7372 = vmatprep.subr.bf16.mxu1 %v7825_v18 }
 0x1f1   : > { %7373 = vmatpush3.bf16.msra.mxu1 %v7825_v18  ;;  %v7847_v18 = vld [vmem:[%s10267_s5 + $0x38] sm:$0xff]  }
 0x1f2   : > { %7374 = vmatprep.subr.bf16.mxu1 %v7826_v41 }
 0x1f4   : > { %7359 = vmatmul.mubr.bf16.gmra.mrb[36].mxu1 %v10370_v58 }
 0x1f5   : > { %7375 = vmatpush3.bf16.msra.mxu1 %v7826_v41  ;;  %7362 = vmatprep.mubr.bf16.mxu1 %v10371_v27 }
 0x1f6   : > { %7376 = vmatprep.subr.bf16.mxu1 %v7827_v0 }
 0x1f9   : > { %7377 = vmatpush3.bf16.msra.mxu1 %v7827_v0 }
 0x1fa   : > { %7378 = vmatprep.subr.bf16.mxu1 %v7828_v4 }
 0x1fc   : > { %7363 = vmatmul.mubr.bf16.gmra.mrb[40].mxu1 %v10372_v62 }
 0x1fd   : > { %7379 = vmatpush3.bf16.msra.mxu1 %v7828_v4  ;;  %7366 = vmatprep.mubr.bf16.mxu1 %v10373_v42 }
 0x1fe   : > { %7380 = vmatprep.subr.bf16.mxu1 %v7829_v2 }
 0x201   : > { %7381 = vmatpush3.bf16.msra.mxu1 %v7829_v2 }
 0x202   : > { %7382 = vmatprep.subr.bf16.mxu1 %v7830_v36 }
 0x204   : > { %7367 = vmatmul.mubr.bf16.gmra.mrb[44].mxu1 %v2257_v33 }
 0x205   : > { %7383 = vmatpush3.bf16.msra.mxu1 %v7830_v36  ;;  %7386 = vmatprep.mubr.bf16.mxu1 %v2452_v1 }
 0x206   : > { %7384 = vmatprep.subr.bf16.mxu1 %v7831_v50 }
 0x209   : > { %7385 = vmatpush3.bf16.msra.mxu1 %v7831_v50 }
 0x20a   : > { %7402 = vmatprep.subr.bf16.mxu1 %v7832_v35 }
 0x20c   : > { %7387 = vmatmul.mubr.bf16.vlgmr.msra.gmra.mrb[32].mxu1 %v2453_v12 }
 0x20d   : > { %7403 = vmatpush3.bf16.msra.mxu1 %v7832_v35  ;;  %7390 = vmatprep.mubr.bf16.mxu1 %v2454_v14  ;;  %v7849_v35 = vld [vmem:[%s10269_s7 + $0x8] sm:$0xff]  }
 0x20e   : > { %7404 = vmatprep.subr.bf16.mxu1 %v7833_v45 }
 0x211   : > { %7405 = vmatpush3.bf16.msra.mxu1 %v7833_v45 }
 0x212   : > { %7406 = vmatprep.subr.bf16.mxu1 %v7834_v17 }
 0x214   : > { %7391 = vmatmul.mubr.bf16.gmra.mrb[36].mxu1 %v2455_v34 }
 0x215   : > { %7407 = vmatpush3.bf16.msra.mxu1 %v7834_v17  ;;  %7394 = vmatprep.mubr.bf16.mxu1 %v2456_v49  ;;  %v7850_v17 = vld [vmem:[%s10269_s7 + $0x10] sm:$0xff]  }
 0x216   : > { %7408 = vmatprep.subr.bf16.mxu1 %v7835_v40 }
 0x219   : > { %7409 = vmatpush3.bf16.msra.mxu1 %v7835_v40 }
 0x21a   : > { %7410 = vmatprep.subr.bf16.mxu1 %v7836_v53 }
 0x21c   : > { %7395 = vmatmul.mubr.bf16.gmra.mrb[40].mxu1 %v2457_v15 }
 0x21d   : > { %7411 = vmatpush3.bf16.msra.mxu1 %v7836_v53  ;;  %7398 = vmatprep.mubr.bf16.mxu1 %v2458_v39  ;;  %v7851_v53 = vld [vmem:[%s10269_s7 + $0x18] sm:$0xff]  }
 0x21e   : > { %7412 = vmatprep.subr.bf16.mxu1 %v7837_v24 }
 0x221   : > { %7413 = vmatpush3.bf16.msra.mxu1 %v7837_v24 }
 0x222   : > { %7414 = vmatprep.subr.bf16.mxu1 %v7838_v44 }
 0x224   : > { %7399 = vmatmul.mubr.bf16.gmra.mrb[44].mxu1 %v2459_v7 }
 0x225   : > { %7415 = vmatpush3.bf16.msra.mxu1 %v7838_v44  ;;  %7418 = vmatprep.mubr.bf16.mxu1 %v10374_v21  ;;  %v7852_v44 = vld [vmem:[%s10269_s7 + $0x20] sm:$0xff]  }
 0x226   : > { %7416 = vmatprep.subr.bf16.mxu1 %v7839_v13 }
 0x229   : > { %7417 = vmatpush3.bf16.msra.mxu1 %v7839_v13 }
 0x22a   : > { %7434 = vmatprep.subr.bf16.mxu1 %v7840_v60 }
 0x22c   : > { %7419 = vmatmul.mubr.bf16.vlgmr.msra.gmra.mrb[32].mxu1 %v10375_v28  ;;  %v7853_v28 = vld [vmem:[%s10269_s7 + $0x28] sm:$0xff]  }
 0x22d   : > { %7422 = vmatprep.mubr.bf16.mxu1 %v10376_v25  ;;  %7435 = vmatpush3.bf16.msra.mxu1 %v7840_v60 }
 0x22e   : > { %7436 = vmatprep.subr.bf16.mxu1 %v7841_v61 }
 0x231   : > { %7437 = vmatpush3.bf16.msra.mxu1 %v7841_v61 }
 0x232   : > { %7438 = vmatprep.subr.bf16.mxu1 %v7842_v26 }
 0x234   : > { %7423 = vmatmul.mubr.bf16.gmra.mrb[36].mxu1 %v10377_v54 }
 0x235   : > { %7426 = vmatprep.mubr.bf16.mxu1 %v10378_v30  ;;  %7439 = vmatpush3.bf16.msra.mxu1 %v7842_v26 }
 0x236   : > { %7440 = vmatprep.subr.bf16.mxu1 %v7843_v52 }
 0x239   : > { %7441 = vmatpush3.bf16.msra.mxu1 %v7843_v52 }
 0x23a   : > { %7442 = vmatprep.subr.bf16.mxu1 %v7844_v32 }
 0x23c   : > { %7427 = vmatmul.mubr.bf16.gmra.mrb[40].mxu1 %v10379_v63 }
 0x23d   : > { %7430 = vmatprep.mubr.bf16.mxu1 %v8984_v29  ;;  %7443 = vmatpush3.bf16.msra.mxu1 %v7844_v32  ;;  %v7848_v29 = vld [vmem:[%s10269_s7] sm:$0xff]  }
 0x23e   : > { %7444 = vmatprep.subr.bf16.mxu1 %v7845_v46 }
 0x241   : > { %7445 = vmatpush3.bf16.msra.mxu1 %v7845_v46 }
 0x242   : > { %7446 = vmatprep.subr.bf16.mxu1 %v7846_v11 }
 0x244   : > { %7431 = vmatmul.mubr.bf16.gmra.mrb[44].mxu1 %v2661_v9 }
 0x245   : > { %7447 = vmatpush3.bf16.msra.mxu1 %v7846_v11 }
 0x246   : > { %7448 = vmatprep.subr.bf16.mxu1 %v7847_v18 }
 0x249   : > { %7449 = vmatpush3.bf16.msra.mxu1 %v7847_v18  ;;  %v7854_v18 = vld [vmem:[%s10269_s7 + $0x30] sm:$0xff]  }
 0x24a   : > { %7466 = vmatprep.subr.bf16.mxu1 %v7848_v29 }
 0x2ff   : > { %v7420_v48 = vpop.f32.mrb[32].mxu1 }
 0x300   : > { %v2849_v57 = vadd.f32 %v7420_v48, %v9248_v55  ;;  %v2761_v41 = vpop.f32.mrb[33].mxu1 }
 0x301   : > { %v2847_v0 = vadd.f32 %v9248_v55, %v2761_v41  ;;  %v7421_v58 = vpop.f32.mrb[34].mxu1 }
 0x302   : > { %v2850_v27 = vadd.f32 %v7421_v58, %v9248_v55  ;;  %v2764_v4 = vpop.f32.mrb[35].mxu1  ;;  %v2865_v62 = vmax.f32 %v2849_v57, 0.0 }
 0x303   : > { %v2848_v2 = vadd.f32 %v9248_v55, %v2764_v4  ;;  %v2863_v36 = vmax.f32 %v2847_v0, 0.0 }
 0x304   : > { %v2866_v42 = vmax.f32 %v2850_v27, 0.0 }
 0x305   : > { %v2864_v22 = vmax.f32 %v2848_v2, 0.0 }
 0x306   : > { %v2880_v38 = vpack.c.bf16 %v2866_v42, %v2865_v62 }
 0x307   : > { %v2879_v33 = vpack.c.bf16 %v2864_v22, %v2863_v36  ;;  %v7424_v16 = vpop.f32.mrb[36].mxu1 }
 0x308   : > { %v2853_v50 = vadd.f32 %v7424_v16, %v9248_v55  ;;  %v2777_v1 = vpop.f32.mrb[37].mxu1 }
 0x309   : > { %v2851_v3 = vadd.f32 %v9248_v55, %v2777_v1  ;;  %v7425_v8 = vpop.f32.mrb[38].mxu1  ;;  %7450 = vmatprep.mubr.bf16.mxu1 %v2879_v33 }
 0x30a   : > { %v2854_v6 = vadd.f32 %v7425_v8, %v9248_v55  ;;  %v2780_v12 = vpop.f32.mrb[39].mxu1  ;;  %7451 = vmatmul.mubr.bf16.vlgmr.msra.gmra.mrb[48].mxu1 %v2880_v38  ;;  %v2869_v45 = vmax.f32 %v2853_v50, 0.0 }
 0x30b   : > { %v2852_v43 = vadd.f32 %v9248_v55, %v2780_v12  ;;  %7467 = vmatpush3.bf16.msra.mxu1 %v7848_v29  ;;  %v2867_v20 = vmax.f32 %v2851_v3, 0.0  ;;  %v7855_v29 = vld [vmem:[%s10269_s7 + $0x38] sm:$0xff]  }
 0x30c   : > { %v2870_v14 = vmax.f32 %v2854_v6, 0.0  ;;  %7468 = vmatprep.subr.bf16.mxu1 %v7849_v35 }
 0x30d   : > { %v2868_v23 = vmax.f32 %v2852_v43, 0.0 }
 0x30e   : > { %v2882_v31 = vpack.c.bf16 %v2870_v14, %v2869_v45 }
 0x30f   : > { %v2881_v34 = vpack.c.bf16 %v2868_v23, %v2867_v20  ;;  %v7428_v37 = vpop.f32.mrb[40].mxu1  ;;  %7469 = vmatpush3.bf16.msra.mxu1 %v7849_v35 }
 0x310   : > { %v2857_v40 = vadd.f32 %v7428_v37, %v9248_v55  ;;  %v2793_v49 = vpop.f32.mrb[41].mxu1  ;;  %7470 = vmatprep.subr.bf16.mxu1 %v7850_v17 }
 0x311   : > { %v2855_v56 = vadd.f32 %v9248_v55, %v2793_v49  ;;  %v7429_v59 = vpop.f32.mrb[42].mxu1  ;;  %7454 = vmatprep.mubr.bf16.mxu1 %v2881_v34 }
 0x312   : > { %v2858_v10 = vadd.f32 %v7429_v59, %v9248_v55  ;;  %v2796_v15 = vpop.f32.mrb[43].mxu1  ;;  %7455 = vmatmul.mubr.bf16.gmra.mrb[52].mxu1 %v2882_v31  ;;  %v2873_v24 = vmax.f32 %v2857_v40, 0.0 }
 0x313   : > { %v2856_v19 = vadd.f32 %v9248_v55, %v2796_v15  ;;  %7471 = vmatpush3.bf16.msra.mxu1 %v7850_v17  ;;  %v2871_v47 = vmax.f32 %v2855_v56, 0.0 }
 0x314   : > { %v2874_v39 = vmax.f32 %v2858_v10, 0.0  ;;  %7472 = vmatprep.subr.bf16.mxu1 %v7851_v53 }
 0x315   : > { %v2872_v51 = vmax.f32 %v2856_v19, 0.0 }
 0x316   : > { %v2884_v7 = vpack.c.bf16 %v2874_v39, %v2873_v24 }
 0x317   : > { %v2883_v13 = vpack.c.bf16 %v2872_v51, %v2871_v47  ;;  %v7432_v21 = vpop.f32.mrb[44].mxu1  ;;  %7473 = vmatpush3.bf16.msra.mxu1 %v7851_v53 }
 0x318   : > { %v2861_v60 = vadd.f32 %v7432_v21, %v9248_v55  ;;  %v2809_v61 = vpop.f32.mrb[45].mxu1  ;;  %7474 = vmatprep.subr.bf16.mxu1 %v7852_v44 }
 0x319   : > { %v2859_v25 = vadd.f32 %v9248_v55, %v2809_v61  ;;  %v7433_v26 = vpop.f32.mrb[46].mxu1  ;;  %7458 = vmatprep.mubr.bf16.mxu1 %v2883_v13 }
 0x31a   : > { %v2862_v52 = vadd.f32 %v7433_v26, %v9248_v55  ;;  %v2812_v54 = vpop.f32.mrb[47].mxu1  ;;  %7459 = vmatmul.mubr.bf16.gmra.mrb[56].mxu1 %v2884_v7  ;;  %v2877_v32 = vmax.f32 %v2861_v60, 0.0 }
 0x31b   : > { %v2860_v30 = vadd.f32 %v9248_v55, %v2812_v54  ;;  %7475 = vmatpush3.bf16.msra.mxu1 %v7852_v44  ;;  %v2875_v63 = vmax.f32 %v2859_v25, 0.0  ;;  %v6373_v55 = vld [vmem:[%s10268_s6] ss:$0 sm:$0xff] }
 0x31c   : > { %v2878_v46 = vmax.f32 %v2862_v52, 0.0  ;;  %7476 = vmatprep.subr.bf16.mxu1 %v7853_v28 }
 0x31d   : > { %v2876_v5 = vmax.f32 %v2860_v30, 0.0 }
 0x31e   : > { %v2886_v9 = vpack.c.bf16 %v2878_v46, %v2877_v32  ;;  %v7856_v46 = vld [vmem:[%s10271_s9 + $0x104] ss:$16 sps:$4 sm:$0xff]  }
 0x31f   : > { %v2885_v11 = vpack.c.bf16 %v2876_v5, %v2875_v63  ;;  %7477 = vmatpush3.bf16.msra.mxu1 %v7853_v28  ;;  %v7858_v63 = vld [vmem:[%s10271_s9 + $0x100] ss:$16 sps:$4 sm:$0xff]   ;;  %v7859_v5 = vld [vmem:[%s10271_s9 + $0x124] ss:$16 sps:$4 sm:$0xff]   ;;  %3522 = vmatprep.subr.bf16.mxu0 %v7856_v46 }
 0x320   : > { %7478 = vmatprep.subr.bf16.mxu1 %v7854_v18  ;;  %3523 = vmatpush1.bf16.msra.mxu0 %v7858_v63 }
 0x321   : > { %7462 = vmatprep.mubr.bf16.mxu1 %v2885_v11  ;;  %3524 = vmatprep.subr.bf16.mxu0 %v7859_v5  ;;  %v7862_v11 = vld [vmem:[%s10271_s9 + $0x144] ss:$16 sps:$4 sm:$0xff]  }
 0x322   : > { %7463 = vmatmul.mubr.bf16.gmra.mrb[60].mxu1 %v2886_v9  ;;  %v7861_v9 = vld [vmem:[%s10271_s9 + $0x120] ss:$16 sps:$4 sm:$0xff]  }
 0x323   : > { %7479 = vmatpush3.bf16.msra.mxu1 %v7854_v18  ;;  %v7864_v18 = vld [vmem:[%s10271_s9 + $0x140] ss:$16 sps:$4 sm:$0xff]  }
 0x324   : > { %7480 = vmatprep.subr.bf16.mxu1 %v7855_v29  ;;  %3525 = vmatpush1.bf16.msra.mxu0 %v7861_v9 }
 0x325   : > { %3526 = vmatprep.subr.bf16.mxu0 %v7862_v11 }
 0x327   : > { %7481 = vmatpush3.bf16.msra.mxu1 %v7855_v29  ;;  %v7865_v29 = vld [vmem:[%s10271_s9 + $0x164] ss:$16 sps:$4 sm:$0xff]  }
 0x328   : > { %3527 = vmatpush1.bf16.msra.mxu0 %v7864_v18 }
 0x329   : > { %3528 = vmatprep.subr.bf16.mxu0 %v7865_v29 }
 0x3dd   : > { %v7452_v48 = vpop.f32.mrb[48].mxu1 }
 0x3de   : > { %v3001_v57 = vadd.f32 %v7452_v48, %v6373_v55  ;;  %v2992_v41 = vpop.f32.mrb[49].mxu1  ;;  %v7868_v48 = vld [vmem:[%s10271_s9 + $0x184] ss:$16 sps:$4 sm:$0xff]  }
 0x3df   : > { %v2993_v0 = vadd.f32 %v6373_v55, %v2992_v41  ;;  %v7453_v58 = vpop.f32.mrb[50].mxu1  ;;  %v9323_v41 = vld [vmem:[%s10270_s8] ss:$0 sm:$0xff] }
 0x3e0   : > { %v3004_v27 = vadd.f32 %v7453_v58, %v6373_v55  ;;  %v2995_v4 = vpop.f32.mrb[51].mxu1  ;;  %v3057_v62 = vmax.f32 %v3001_v57, 0.0  ;;  %v7870_v57 = vld [vmem:[%s10271_s9 + $0x180] ss:$16 sps:$4 sm:$0xff]  }
 0x3e1   : > { %v2996_v2 = vadd.f32 %v6373_v55, %v2995_v4  ;;  %v3055_v36 = vmax.f32 %v2993_v0, 0.0 }
 0x3e2   : > { %v3058_v42 = vmax.f32 %v3004_v27, 0.0 }
 0x3e3   : > { %v3056_v22 = vmax.f32 %v2996_v2, 0.0 }
 0x3e4   : > { %v3072_v38 = vpack.c.bf16 %v3058_v42, %v3057_v62 }
 0x3e5   : > { %v3071_v33 = vpack.c.bf16 %v3056_v22, %v3055_v36  ;;  %v7456_v16 = vpop.f32.mrb[52].mxu1  ;;  %v7871_v36 = vld [vmem:[%s10271_s9 + $0x1a4] ss:$16 sps:$4 sm:$0xff]   ;;  %v7873_v22 = vld [vmem:[%s10271_s9 + $0x1a0] ss:$16 sps:$4 sm:$0xff]  }
 0x3e6   : > { %v3017_v50 = vadd.f32 %v7456_v16, %v6373_v55  ;;  %v3008_v1 = vpop.f32.mrb[53].mxu1 }
 0x3e7   : > { %v3009_v35 = vadd.f32 %v6373_v55, %v3008_v1  ;;  %v7457_v3 = vpop.f32.mrb[54].mxu1  ;;  %7482 = vmatprep.mubr.bf16.mxu1 %v3071_v33 }
 0x3e8   : > { %v3020_v8 = vadd.f32 %v7457_v3, %v6373_v55  ;;  %v3011_v6 = vpop.f32.mrb[55].mxu1  ;;  %7483 = vmatmul.mubr.bf16.vlgmr.msra.gmra.mrb[64].mxu1 %v3072_v38  ;;  %v3061_v43 = vmax.f32 %v3017_v50, 0.0  ;;  %v7874_v3 = vld [vmem:[%s10271_s9 + $0x1c4] ss:$16 sps:$4 sm:$0xff]  }
 0x3e9   : > { %v3012_v12 = vadd.f32 %v6373_v55, %v3011_v6  ;;  %v3059_v14 = vmax.f32 %v3009_v35, 0.0 }
 0x3ea   : > { %v3062_v45 = vmax.f32 %v3020_v8, 0.0  ;;  %v7876_v8 = vld [vmem:[%s10271_s9 + $0x1c0] ss:$16 sps:$4 sm:$0xff]  }
 0x3eb   : > { %v3060_v17 = vmax.f32 %v3012_v12, 0.0 }
 0x3ec   : > { %v3074_v20 = vpack.c.bf16 %v3062_v45, %v3061_v43  ;;  %v7877_v43 = vld [vmem:[%s10271_s9 + $0x1e4] ss:$16 sps:$4 sm:$0xff]   ;;  %v7879_v45 = vld [vmem:[%s10271_s9 + $0x1e0] ss:$16 sps:$4 sm:$0xff]  }
 0x3ed   : > { %v3073_v23 = vpack.c.bf16 %v3060_v17, %v3059_v14  ;;  %v7460_v31 = vpop.f32.mrb[56].mxu1 }
 0x3ee   : > { %v3033_v34 = vadd.f32 %v7460_v31, %v6373_v55  ;;  %v3024_v37 = vpop.f32.mrb[57].mxu1 }
 0x3ef   : > { %v3025_v40 = vadd.f32 %v6373_v55, %v3024_v37  ;;  %v7461_v49 = vpop.f32.mrb[58].mxu1  ;;  %7486 = vmatprep.mubr.bf16.mxu1 %v3073_v23  ;;  %v7882_v37 = vld [vmem:[%s10271_s9 + $0x10c] ss:$16 sps:$4 sm:$0xff]  }
 0x3f0   : > { %v3036_v53 = vadd.f32 %v7461_v49, %v6373_v55  ;;  %v3027_v56 = vpop.f32.mrb[59].mxu1  ;;  %7487 = vmatmul.mubr.bf16.gmra.mrb[68].mxu1 %v3074_v20  ;;  %v3065_v10 = vmax.f32 %v3033_v34, 0.0 }
 0x3f1   : > { %v3028_v59 = vadd.f32 %v6373_v55, %v3027_v56  ;;  %v3063_v19 = vmax.f32 %v3025_v40, 0.0 }
 0x3f2   : > { %v3066_v15 = vmax.f32 %v3036_v53, 0.0 }
 0x3f3   : > { %v3064_v24 = vmax.f32 %v3028_v59, 0.0 }
 0x3f4   : > { %v3076_v39 = vpack.c.bf16 %v3066_v15, %v3065_v10 }
 0x3f5   : > { %v3075_v44 = vpack.c.bf16 %v3064_v24, %v3063_v19  ;;  %v7464_v47 = vpop.f32.mrb[60].mxu1 }
 0x3f6   : > { %v3049_v51 = vadd.f32 %v7464_v47, %v6373_v55  ;;  %v3040_v7 = vpop.f32.mrb[61].mxu1 }
 0x3f7   : > { %v3041_v13 = vadd.f32 %v6373_v55, %v3040_v7  ;;  %v7465_v21 = vpop.f32.mrb[62].mxu1  ;;  %7490 = vmatprep.mubr.bf16.mxu1 %v3075_v44 }
 0x3f8   : > { %v3052_v60 = vadd.f32 %v7465_v21, %v6373_v55  ;;  %v3043_v61 = vpop.f32.mrb[63].mxu1  ;;  %7491 = vmatmul.mubr.bf16.gmra.mrb[72].mxu1 %v3076_v39  ;;  %v3069_v25 = vmax.f32 %v3049_v51, 0.0 }
 0x3f9   : > { %v3044_v28 = vadd.f32 %v6373_v55, %v3043_v61  ;;  %v3067_v52 = vmax.f32 %v3041_v13, 0.0  ;;  %v7867_v55 = vld [vmem:[%s10271_s9 + $0x160] ss:$16 sps:$4 sm:$0xff]  }
 0x3fa   : > { %v3070_v26 = vmax.f32 %v3052_v60, 0.0  ;;  %3529 = vmatpush1.bf16.msra.mxu0 %v7867_v55  ;;  %v7880_v55 = vld [vmem:[%s10271_s9 + $0x108] ss:$16 sps:$4 sm:$0xff]  }
 0x3fb   : > { %v3068_v54 = vmax.f32 %v3044_v28, 0.0  ;;  %3530 = vmatprep.subr.bf16.mxu0 %v7868_v48 }
 0x3fc   : > { %v3078_v30 = vpack.c.bf16 %v3070_v26, %v3069_v25 }
 0x3fd   : > { %v3077_v32 = vpack.c.bf16 %v3068_v54, %v3067_v52 }
 0x3fe   : > { %3531 = vmatpush1.bf16.msra.mxu0 %v7870_v57  ;;  %v7885_v57 = vld [vmem:[%s10271_s9 + $0x12c] ss:$16 sps:$4 sm:$0xff]  }
 0x3ff   : > { %7494 = vmatprep.mubr.bf16.mxu1 %v3077_v32  ;;  %3532 = vmatprep.subr.bf16.mxu0 %v7871_v36  ;;  %v7897_v36 = vld [vmem:[%s10271_s9 + $0x1ac] ss:$16 sps:$4 sm:$0xff]  }
 0x400   : > { %7495 = vmatmul.mubr.bf16.gmra.mrb[76].mxu1 %v3078_v30 }
 0x402   : > { %3533 = vmatpush1.bf16.msra.mxu0 %v7873_v22  ;;  %v7895_v22 = vld [vmem:[%s10271_s9 + $0x1a8] ss:$16 sps:$4 sm:$0xff]  }
 0x403   : > { %3534 = vmatprep.subr.bf16.mxu0 %v7874_v3  ;;  %v7909_v3 = vld [vmem:[%s10271_s9 + $0x24] ss:$16 sps:$4 sm:$0xff]  }
 0x406   : > { %3535 = vmatpush1.bf16.msra.mxu0 %v7876_v8  ;;  %v7907_v8 = vld [vmem:[%s10271_s9 + $0x20] ss:$16 sps:$4 sm:$0xff]  }
 0x407   : > { %3536 = vmatprep.subr.bf16.mxu0 %v7877_v43  ;;  %v7915_v43 = vld [vmem:[%s10271_s9 + $0x64] ss:$16 sps:$4 sm:$0xff]  }
 0x40a   : > { %3537 = vmatpush1.bf16.msra.mxu0 %v7879_v45  ;;  %v7913_v45 = vld [vmem:[%s10271_s9 + $0x60] ss:$16 sps:$4 sm:$0xff]  }
 0x40b   : > { %3565 = vmatprep.subr.bf16.mxu0 %v7882_v37  ;;  %v7927_v37 = vld [vmem:[%s10271_s9 + $0xe4] ss:$16 sps:$4 sm:$0xff]  }
 0x4bb   : > { %v7484_v0 = vpop.f32.mrb[64].mxu1 }
 0x4bc   : > { %v3184_v58 = vpop.f32.mrb[65].mxu1  ;;  %v3193_v38 = vadd.f32 %v7484_v0, %v9323_v41  ;;  %v10380_v0 = vmov 0  }
 0x4bd   : > { %v7485_v27 = vpop.f32.mrb[66].mxu1  ;;  %v3185_v4 = vadd.f32 %v9323_v41, %v3184_v58  ;;  %v7888_v58 = vld [vmem:[%s10271_s9 + $0x14c] ss:$16 sps:$4 sm:$0xff]  }
 0x4be   : > { %v3187_v2 = vpop.f32.mrb[67].mxu1  ;;  %v3249_v6 = vmax.f32 %v3193_v38, 0.0  ;;  %v3196_v12 = vadd.f32 %v7485_v27, %v9323_v41  ;;  %v7886_v27 = vld [vmem:[%s10271_s9 + $0x148] ss:$16 sps:$4 sm:$0xff]   ;;  %v7900_v38 = vld [vmem:[%s10271_s9 + $0x1cc] ss:$16 sps:$4 sm:$0xff]  }
 0x4bf   : > { %v3188_v62 = vadd.f32 %v9323_v41, %v3187_v2  ;;  %v3247_v42 = vmax.f32 %v3185_v4, 0.0  ;;  %v7891_v4 = vld [vmem:[%s10271_s9 + $0x16c] ss:$16 sps:$4 sm:$0xff]   ;;  %v7889_v2 = vld [vmem:[%s10271_s9 + $0x168] ss:$16 sps:$4 sm:$0xff]  }
 0x4c0   : > { %v3250_v14 = vmax.f32 %v3196_v12, 0.0  ;;  %v7910_v12 = vld [vmem:[%s10271_s9 + $0x40] ss:$16 sps:$4 sm:$0xff]  }
 0x4c1   : > { %3263 = vxpose.xlu0.b32.start [1/16] %v3247_v42, 128  ;;  %v3248_v33 = vmax.f32 %v3188_v62, 0.0  ;;  %v7894_v62 = vld [vmem:[%s10271_s9 + $0x18c] ss:$16 sps:$4 sm:$0xff]   ;;  %v7892_v42 = vld [vmem:[%s10271_s9 + $0x188] ss:$16 sps:$4 sm:$0xff]  }
 0x4c3   : > { %v7488_v16 = vpop.f32.mrb[68].mxu1 }
 0x4c4   : > { %v3200_v50 = vpop.f32.mrb[69].mxu1  ;;  %v3209_v53 = vadd.f32 %v7488_v16, %v9323_v41  ;;  %v7903_v16 = vld [vmem:[%s10271_s9 + $0x1ec] ss:$16 sps:$4 sm:$0xff]  }
 0x4c5   : > { %v7489_v1 = vpop.f32.mrb[70].mxu1  ;;  %3264 = vxpose.xlu0.b32.cont [2/16] %v3248_v33, 128  ;;  %v3201_v17 = vadd.f32 %v9323_v41, %v3200_v50  ;;  %v7898_v33 = vld [vmem:[%s10271_s9 + $0x1c8] ss:$16 sps:$4 sm:$0xff]  }
 0x4c6   : > { %v3203_v35 = vpop.f32.mrb[71].mxu1  ;;  %v3253_v24 = vmax.f32 %v3209_v53, 0.0  ;;  %v3212_v39 = vadd.f32 %v7489_v1, %v9323_v41  ;;  %v7901_v50 = vld [vmem:[%s10271_s9 + $0x1e8] ss:$16 sps:$4 sm:$0xff]   ;;  %v7906_v1 = vld [vmem:[%s10271_s9 + $0x4] ss:$16 sps:$4 sm:$0xff]  }
 0x4c7   : > { %v3251_v40 = vmax.f32 %v3201_v17, 0.0  ;;  %v3204_v49 = vadd.f32 %v9323_v41, %v3203_v35  ;;  %v7904_v35 = vld [vmem:[%s10271_s9] ss:$16 sps:$4 sm:$0xff]   ;;  %v7928_v53 = vld [vmem:[%s10271_s9 + $0x8] ss:$16 sps:$4 sm:$0xff]  }
 0x4c8   : > { %v3254_v44 = vmax.f32 %v3212_v39, 0.0  ;;  %v7916_v17 = vld [vmem:[%s10271_s9 + $0x80] ss:$16 sps:$4 sm:$0xff]   ;;  %v7942_v39 = vld [vmem:[%s10271_s9 + $0x8c] ss:$16 sps:$4 sm:$0xff]  }
 0x4c9   : > { %3265 = vxpose.xlu0.b32.cont [3/16] %v3249_v6, 128  ;;  %v3252_v56 = vmax.f32 %v3204_v49, 0.0  ;;  %v7912_v6 = vld [vmem:[%s10271_s9 + $0x44] ss:$16 sps:$4 sm:$0xff]   ;;  %v7930_v49 = vld [vmem:[%s10271_s9 + $0xc] ss:$16 sps:$4 sm:$0xff]  }
 0x4cb   : > { %v7492_v20 = vpop.f32.mrb[72].mxu1 }
 0x4cc   : > { %v3216_v23 = vpop.f32.mrb[73].mxu1  ;;  %v3225_v13 = vadd.f32 %v7492_v20, %v9323_v41  ;;  %v7921_v20 = vld [vmem:[%s10271_s9 + $0xa4] ss:$16 sps:$4 sm:$0xff]  }
 0x4cd   : > { %v7493_v31 = vpop.f32.mrb[74].mxu1  ;;  %3266 = vxpose.xlu0.b32.cont [4/16] %v3250_v14, 128  ;;  %v3217_v47 = vadd.f32 %v9323_v41, %v3216_v23  ;;  %v7918_v14 = vld [vmem:[%s10271_s9 + $0x84] ss:$16 sps:$4 sm:$0xff]   ;;  %v7919_v23 = vld [vmem:[%s10271_s9 + $0xa0] ss:$16 sps:$4 sm:$0xff]  }
 0x4ce   : > { %v3219_v34 = vpop.f32.mrb[75].mxu1  ;;  %v3257_v60 = vmax.f32 %v3225_v13, 0.0  ;;  %v3228_v61 = vadd.f32 %v7493_v31, %v9323_v41  ;;  %v7924_v31 = vld [vmem:[%s10271_s9 + $0xc4] ss:$16 sps:$4 sm:$0xff]   ;;  %v7946_v13 = vld [vmem:[%s10271_s9 + $0xc8] ss:$16 sps:$4 sm:$0xff]  }
 0x4cf   : > { %v3255_v51 = vmax.f32 %v3217_v47, 0.0  ;;  %v3220_v7 = vadd.f32 %v9323_v41, %v3219_v34  ;;  %v7922_v34 = vld [vmem:[%s10271_s9 + $0xc0] ss:$16 sps:$4 sm:$0xff]   ;;  %v7945_v47 = vld [vmem:[%s10271_s9 + $0xac] ss:$16 sps:$4 sm:$0xff]  }
 0x4d0   : > { %v3258_v28 = vmax.f32 %v3228_v61, 0.0  ;;  %v7954_v61 = vld [vmem:[%s10271_s9 + $0x204] ss:$16 sps:$4 sm:$0xff]  }
 0x4d1   : > { %3267 = vxpose.xlu0.b32.cont [5/16] %v3251_v40, 128  ;;  %v3256_v21 = vmax.f32 %v3220_v7, 0.0  ;;  %v7925_v40 = vld [vmem:[%s10271_s9 + $0xe0] ss:$16 sps:$4 sm:$0xff]   ;;  %v7948_v7 = vld [vmem:[%s10271_s9 + $0xcc] ss:$16 sps:$4 sm:$0xff]  }
 0x4d3   : > { %v7496_v59 = vpop.f32.mrb[76].mxu1 }
 0x4d4   : > { %v3232_v10 = vpop.f32.mrb[77].mxu1  ;;  %v3241_v54 = vadd.f32 %v7496_v59, %v9323_v41  ;;  %v7931_v59 = vld [vmem:[%s10271_s9 + $0x28] ss:$16 sps:$4 sm:$0xff]  }
 0x4d5   : > { %3268 = vxpose.xlu0.b32.cont [6/16] %v3252_v56, 128  ;;  %v7497_v15 = vpop.f32.mrb[78].mxu1  ;;  %v3233_v25 = vadd.f32 %v9323_v41, %v3232_v10  ;;  %v7933_v56 = vld [vmem:[%s10271_s9 + $0x2c] ss:$16 sps:$4 sm:$0xff]  }
 0x4d6   : > { %v3235_v19 = vpop.f32.mrb[79].mxu1  ;;  %v3261_v32 = vmax.f32 %v3241_v54, 0.0  ;;  %v3244_v46 = vadd.f32 %v7497_v15, %v9323_v41  ;;  %v7936_v10 = vld [vmem:[%s10271_s9 + $0x4c] ss:$16 sps:$4 sm:$0xff]   ;;  %v7934_v15 = vld [vmem:[%s10271_s9 + $0x48] ss:$16 sps:$4 sm:$0xff]  }
 0x4d7   : > { %v3259_v26 = vmax.f32 %v3233_v25, 0.0  ;;  %v3236_v52 = vadd.f32 %v9323_v41, %v3235_v19  ;;  %v7883_v41 = vld [vmem:[%s10271_s9 + $0x128] ss:$16 sps:$4 sm:$0xff]   ;;  %v7939_v19 = vld [vmem:[%s10271_s9 + $0x6c] ss:$16 sps:$4 sm:$0xff]  }
 0x4d8   : > { %v3262_v63 = vmax.f32 %v3244_v46, 0.0  ;;  %v7957_v25 = vld [vmem:[%s10271_s9 + $0x224] ss:$16 sps:$4 sm:$0xff]   ;;  %v7958_v54 = vld [vmem:[%s10271_s9 + $0x240] ss:$16 sps:$4 sm:$0xff]  }
 0x4d9   : > { %3269 = vxpose.xlu0.b32.cont [7/16] %v3253_v24, 128  ;;  %v3260_v30 = vmax.f32 %v3236_v52, 0.0  ;;  %v7937_v24 = vld [vmem:[%s10271_s9 + $0x68] ss:$16 sps:$4 sm:$0xff]   ;;  %v7960_v52 = vld [vmem:[%s10271_s9 + $0x244] ss:$16 sps:$4 sm:$0xff]  }
 0x4da   : > { %v7966_v46 = vld [vmem:[%s10271_s9 + $0x284] ss:$16 sps:$4 sm:$0xff]  }
 0x4dd   : > { %3270 = vxpose.xlu0.b32.cont [8/16] %v3254_v44, 128  ;;  %v7940_v44 = vld [vmem:[%s10271_s9 + $0x88] ss:$16 sps:$4 sm:$0xff]  }
 0x4e1   : > { %3271 = vxpose.xlu0.b32.cont [9/16] %v3255_v51, 128  ;;  %v7943_v51 = vld [vmem:[%s10271_s9 + $0xa8] ss:$16 sps:$4 sm:$0xff]  }
 0x4e5   : > { %3272 = vxpose.xlu0.b32.cont [10/16] %v3256_v21, 128  ;;  %v7951_v21 = vld [vmem:[%s10271_s9 + $0xec] ss:$16 sps:$4 sm:$0xff]  }
 0x4e9   : > { %3273 = vxpose.xlu0.b32.cont [11/16] %v3257_v60, 128  ;;  %v7949_v60 = vld [vmem:[%s10271_s9 + $0xe8] ss:$16 sps:$4 sm:$0xff]  }
 0x4ed   : > { %3274 = vxpose.xlu0.b32.cont [12/16] %v3258_v28, 128  ;;  %v7952_v28 = vld [vmem:[%s10271_s9 + $0x200] ss:$16 sps:$4 sm:$0xff]  }
 0x4f1   : > { %3275 = vxpose.xlu0.b32.cont [13/16] %v3259_v26, 128  ;;  %v7955_v26 = vld [vmem:[%s10271_s9 + $0x220] ss:$16 sps:$4 sm:$0xff]  }
 0x4f5   : > { %3276 = vxpose.xlu0.b32.cont [14/16] %v3260_v30, 128  ;;  %v7963_v30 = vld [vmem:[%s10271_s9 + $0x264] ss:$16 sps:$4 sm:$0xff]  }
 0x4f9   : > { %3277 = vxpose.xlu0.b32.cont [15/16] %v3261_v32, 128  ;;  %v7961_v32 = vld [vmem:[%s10271_s9 + $0x260] ss:$16 sps:$4 sm:$0xff]  }
 0x4fd   : > { %3278 = vxpose.xlu0.b32.end [16/16] %v3262_v63, 128  ;;  %v7964_v63 = vld [vmem:[%s10271_s9 + $0x280] ss:$16 sps:$4 sm:$0xff]  }
 0x541   : > { %v3279_v5 = vpop.trf.xlu0 }
 0x545   : > { %v3280_v9 = vpop.trf.xlu0 }
 0x546   : > { %v9362_v11 = vpack.c.bf16 %v3280_v9, %v3279_v5  ;;  %v7969_v5 = vld [vmem:[%s10271_s9 + $0x2a4] ss:$16 sps:$4 sm:$0xff]   ;;  %v7967_v9 = vld [vmem:[%s10271_s9 + $0x2a0] ss:$16 sps:$4 sm:$0xff]  }
 0x549   : > { %v3281_v18 = vpop.trf.xlu0 }
 0x54d   : > { %v3282_v29 = vpop.trf.xlu0 }
 0x54e   : > { %v3328_v48 = vpack.c.bf16 %v3282_v29, %v3281_v18  ;;  %v7970_v29 = vld [vmem:[%s10271_s9 + $0x2c0] ss:$16 sps:$4 sm:$0xff]  }
 0x550   : > { %3555 = vmatmul.mubr.bf16.vlgmr.msra.gmra.mrb[0].mxu0 %v3328_v48 }
 0x551   : > { %3566 = vmatpush1.bf16.msra.mxu0 %v7880_v55  ;;  %3597 = vmatprep.mubr.bf16.mxu0 %v10380_v0  ;;  %v3283_v18 = vpop.trf.xlu0  ;;  %v7975_v55 = vld [vmem:[%s10271_s9 + $0x2e4] ss:$16 sps:$4 sm:$0xff]  }
 0x552   : > { %3567 = vmatprep.subr.bf16.mxu0 %v7885_v57  ;;  %v7978_v57 = vld [vmem:[%s10271_s9 + $0x20c] ss:$16 sps:$4 sm:$0xff]  }
 0x555   : > { %3568 = vmatpush1.bf16.msra.mxu0 %v7883_v41  ;;  %v3284_v41 = vpop.trf.xlu0 }
 0x556   : > { %3569 = vmatprep.subr.bf16.mxu0 %v7888_v58  ;;  %v7976_v58 = vld [vmem:[%s10271_s9 + $0x208] ss:$16 sps:$4 sm:$0xff]  }
 0x559   : > { %3570 = vmatpush1.bf16.msra.mxu0 %v7886_v27  ;;  %v3854_v27 = vpack.c.bf16 %v3284_v41, %v3283_v18  ;;  %v8059_v18 = vld [vmem:[%s10271_s9 + $0x464] ss:$16 sps:$4 sm:$0xff]   ;;  %v8063_v41 = vld [vmem:[%s10271_s9 + $0x4a0] ss:$16 sps:$4 sm:$0xff]  }
 0x55a   : > { %3571 = vmatprep.subr.bf16.mxu0 %v7891_v4  ;;  %v7981_v4 = vld [vmem:[%s10271_s9 + $0x22c] ss:$16 sps:$4 sm:$0xff]  }
 0x55d   : > { %3572 = vmatpush1.bf16.msra.mxu0 %v7889_v2  ;;  %v7979_v2 = vld [vmem:[%s10271_s9 + $0x228] ss:$16 sps:$4 sm:$0xff]  }
 0x55e   : > { %3573 = vmatprep.subr.bf16.mxu0 %v7894_v62  ;;  %v7984_v62 = vld [vmem:[%s10271_s9 + $0x24c] ss:$16 sps:$4 sm:$0xff]  }
 0x561   : > { %3574 = vmatpush1.bf16.msra.mxu0 %v7892_v42  ;;  %v7982_v42 = vld [vmem:[%s10271_s9 + $0x248] ss:$16 sps:$4 sm:$0xff]  }
 0x562   : > { %3575 = vmatprep.subr.bf16.mxu0 %v7897_v36  ;;  %v7987_v36 = vld [vmem:[%s10271_s9 + $0x26c] ss:$16 sps:$4 sm:$0xff]  }
 0x565   : > { %3576 = vmatpush1.bf16.msra.mxu0 %v7895_v22  ;;  %v7985_v22 = vld [vmem:[%s10271_s9 + $0x268] ss:$16 sps:$4 sm:$0xff]  }
 0x566   : > { %3577 = vmatprep.subr.bf16.mxu0 %v7900_v38  ;;  %v7990_v38 = vld [vmem:[%s10271_s9 + $0x28c] ss:$16 sps:$4 sm:$0xff]  }
 0x569   : > { %3578 = vmatpush1.bf16.msra.mxu0 %v7898_v33  ;;  %v7988_v33 = vld [vmem:[%s10271_s9 + $0x288] ss:$16 sps:$4 sm:$0xff]  }
 0x56a   : > { %3579 = vmatprep.subr.bf16.mxu0 %v7903_v16  ;;  %v7993_v16 = vld [vmem:[%s10271_s9 + $0x2ac] ss:$16 sps:$4 sm:$0xff]  }
 0x56d   : > { %3580 = vmatpush1.bf16.msra.mxu0 %v7901_v50  ;;  %v7991_v50 = vld [vmem:[%s10271_s9 + $0x2a8] ss:$16 sps:$4 sm:$0xff]  }
 0x56e   : > { %3768 = vmatprep.subr.bf16.mxu0 %v7906_v1  ;;  %v7996_v1 = vld [vmem:[%s10271_s9 + $0x2cc] ss:$16 sps:$4 sm:$0xff]  }
 0x570   : > { %3598 = vmatmul.mubr.bf16.vlgmr.msra.gmra.mrb[4].mxu0 %v3328_v48  ;;  %v7973_v48 = vld [vmem:[%s10271_s9 + $0x2e0] ss:$16 sps:$4 sm:$0xff]  }
 0x571   : > { %3769 = vmatpush1.bf16.msra.mxu0 %v7904_v35  ;;  %3800 = vmatprep.mubr.bf16.mxu0 %v10380_v0  ;;  %v7994_v35 = vld [vmem:[%s10271_s9 + $0x2c8] ss:$16 sps:$4 sm:$0xff]  }
 0x572   : > { %3770 = vmatprep.subr.bf16.mxu0 %v7909_v3  ;;  %v7999_v3 = vld [vmem:[%s10271_s9 + $0x2ec] ss:$16 sps:$4 sm:$0xff]  }
 0x575   : > { %3771 = vmatpush1.bf16.msra.mxu0 %v7907_v8  ;;  %v7997_v8 = vld [vmem:[%s10271_s9 + $0x2e8] ss:$16 sps:$4 sm:$0xff]  }
 0x576   : > { %3772 = vmatprep.subr.bf16.mxu0 %v7912_v6  ;;  %v8002_v6 = vld [vmem:[%s10271_s9 + $0x304] ss:$16 sps:$4 sm:$0xff]  }
 0x579   : > { %3773 = vmatpush1.bf16.msra.mxu0 %v7910_v12  ;;  %v8000_v12 = vld [vmem:[%s10271_s9 + $0x300] ss:$16 sps:$4 sm:$0xff]  }
 0x57a   : > { %3774 = vmatprep.subr.bf16.mxu0 %v7915_v43  ;;  %v8005_v43 = vld [vmem:[%s10271_s9 + $0x324] ss:$16 sps:$4 sm:$0xff]  }
 0x57d   : > { %3775 = vmatpush1.bf16.msra.mxu0 %v7913_v45  ;;  %v8003_v45 = vld [vmem:[%s10271_s9 + $0x320] ss:$16 sps:$4 sm:$0xff]  }
 0x57e   : > { %3776 = vmatprep.subr.bf16.mxu0 %v7918_v14  ;;  %v8008_v14 = vld [vmem:[%s10271_s9 + $0x344] ss:$16 sps:$4 sm:$0xff]  }
 0x581   : > { %3777 = vmatpush1.bf16.msra.mxu0 %v7916_v17  ;;  %v8006_v17 = vld [vmem:[%s10271_s9 + $0x340] ss:$16 sps:$4 sm:$0xff]  }
 0x582   : > { %3778 = vmatprep.subr.bf16.mxu0 %v7921_v20  ;;  %v8011_v20 = vld [vmem:[%s10271_s9 + $0x364] ss:$16 sps:$4 sm:$0xff]  }
 0x585   : > { %3779 = vmatpush1.bf16.msra.mxu0 %v7919_v23  ;;  %v8009_v23 = vld [vmem:[%s10271_s9 + $0x360] ss:$16 sps:$4 sm:$0xff]  }
 0x586   : > { %3780 = vmatprep.subr.bf16.mxu0 %v7924_v31  ;;  %v8014_v31 = vld [vmem:[%s10271_s9 + $0x384] ss:$16 sps:$4 sm:$0xff]  }
 0x589   : > { %3781 = vmatpush1.bf16.msra.mxu0 %v7922_v34  ;;  %v8012_v34 = vld [vmem:[%s10271_s9 + $0x380] ss:$16 sps:$4 sm:$0xff]  }
 0x58a   : > { %3782 = vmatprep.subr.bf16.mxu0 %v7927_v37  ;;  %v8017_v37 = vld [vmem:[%s10271_s9 + $0x3a4] ss:$16 sps:$4 sm:$0xff]  }
 0x58d   : > { %3783 = vmatpush1.bf16.msra.mxu0 %v7925_v40  ;;  %v8015_v40 = vld [vmem:[%s10271_s9 + $0x3a0] ss:$16 sps:$4 sm:$0xff]  }
 0x58e   : > { %3811 = vmatprep.subr.bf16.mxu0 %v7930_v49  ;;  %v8020_v49 = vld [vmem:[%s10271_s9 + $0x3c4] ss:$16 sps:$4 sm:$0xff]  }
 0x590   : > { %3801 = vmatmul.mubr.bf16.vlgmr.msra.gmra.mrb[0].mxu0 %v9362_v11 }
 0x591   : > { %3812 = vmatpush1.bf16.msra.mxu0 %v7928_v53  ;;  %3843 = vmatprep.mubr.bf16.mxu0 %v10380_v0  ;;  %v3285_v53 = vpop.trf.xlu0 }
 0x592   : > { %3813 = vmatprep.subr.bf16.mxu0 %v7933_v56  ;;  %v8018_v56 = vld [vmem:[%s10271_s9 + $0x3c0] ss:$16 sps:$4 sm:$0xff]  }
 0x595   : > { %3814 = vmatpush1.bf16.msra.mxu0 %v7931_v59  ;;  %v8023_v59 = vld [vmem:[%s10271_s9 + $0x3e4] ss:$16 sps:$4 sm:$0xff]  }
 0x596   : > { %3815 = vmatprep.subr.bf16.mxu0 %v7936_v10  ;;  %v8021_v10 = vld [vmem:[%s10271_s9 + $0x3e0] ss:$16 sps:$4 sm:$0xff]  }
 0x599   : > { %3816 = vmatpush1.bf16.msra.mxu0 %v7934_v15  ;;  %v8026_v15 = vld [vmem:[%s10271_s9 + $0x30c] ss:$16 sps:$4 sm:$0xff]  }
 0x59a   : > { %3817 = vmatprep.subr.bf16.mxu0 %v7939_v19  ;;  %v3286_v19 = vpop.trf.xlu0 }
 0x59d   : > { %3818 = vmatpush1.bf16.msra.mxu0 %v7937_v24  ;;  %v8024_v24 = vld [vmem:[%s10271_s9 + $0x308] ss:$16 sps:$4 sm:$0xff]  }
 0x59e   : > { %3819 = vmatprep.subr.bf16.mxu0 %v7942_v39  ;;  %v4142_v39 = vpack.c.bf16 %v3286_v19, %v3285_v53  ;;  %v8107_v53 = vld [vmem:[%s10271_s9 + $0x564] ss:$16 sps:$4 sm:$0xff]   ;;  %v8111_v19 = vld [vmem:[%s10271_s9 + $0x5a0] ss:$16 sps:$4 sm:$0xff]  }
 0x5a1   : > { %3820 = vmatpush1.bf16.msra.mxu0 %v7940_v44  ;;  %v8029_v44 = vld [vmem:[%s10271_s9 + $0x32c] ss:$16 sps:$4 sm:$0xff]  }
 0x5a2   : > { %3821 = vmatprep.subr.bf16.mxu0 %v7945_v47  ;;  %v8027_v47 = vld [vmem:[%s10271_s9 + $0x328] ss:$16 sps:$4 sm:$0xff]  }
 0x5a5   : > { %3822 = vmatpush1.bf16.msra.mxu0 %v7943_v51  ;;  %v8032_v51 = vld [vmem:[%s10271_s9 + $0x34c] ss:$16 sps:$4 sm:$0xff]  }
 0x5a6   : > { %3823 = vmatprep.subr.bf16.mxu0 %v7948_v7  ;;  %v8030_v7 = vld [vmem:[%s10271_s9 + $0x348] ss:$16 sps:$4 sm:$0xff]  }
 0x5a9   : > { %3824 = vmatpush1.bf16.msra.mxu0 %v7946_v13  ;;  %v8035_v13 = vld [vmem:[%s10271_s9 + $0x36c] ss:$16 sps:$4 sm:$0xff]  }
 0x5aa   : > { %3825 = vmatprep.subr.bf16.mxu0 %v7951_v21  ;;  %v8033_v21 = vld [vmem:[%s10271_s9 + $0x368] ss:$16 sps:$4 sm:$0xff]  }
 0x5ad   : > { %3826 = vmatpush1.bf16.msra.mxu0 %v7949_v60  ;;  %v8038_v60 = vld [vmem:[%s10271_s9 + $0x38c] ss:$16 sps:$4 sm:$0xff]  }
 0x5ae   : > { %4048 = vmatprep.subr.bf16.mxu0 %v7954_v61  ;;  %v8036_v61 = vld [vmem:[%s10271_s9 + $0x388] ss:$16 sps:$4 sm:$0xff]  }
 0x5b0   : > { %3844 = vmatmul.mubr.bf16.vlgmr.msra.gmra.mrb[4].mxu0 %v9362_v11  ;;  %v7972_v11 = vld [vmem:[%s10271_s9 + $0x2c4] ss:$16 sps:$4 sm:$0xff]  }
 0x5b1   : > { %4049 = vmatpush1.bf16.msra.mxu0 %v7952_v28  ;;  %4080 = vmatprep.mubr.bf16.mxu0 %v10380_v0  ;;  %v8041_v28 = vld [vmem:[%s10271_s9 + $0x3ac] ss:$16 sps:$4 sm:$0xff]  }
 0x5b2   : > { %4050 = vmatprep.subr.bf16.mxu0 %v7957_v25  ;;  %v8039_v25 = vld [vmem:[%s10271_s9 + $0x3a8] ss:$16 sps:$4 sm:$0xff]  }
 0x5b5   : > { %4051 = vmatpush1.bf16.msra.mxu0 %v7955_v26  ;;  %v8044_v26 = vld [vmem:[%s10271_s9 + $0x3cc] ss:$16 sps:$4 sm:$0xff]  }
 0x5b6   : > { %4052 = vmatprep.subr.bf16.mxu0 %v7960_v52  ;;  %v8042_v52 = vld [vmem:[%s10271_s9 + $0x3c8] ss:$16 sps:$4 sm:$0xff]  }
 0x5b9   : > { %4053 = vmatpush1.bf16.msra.mxu0 %v7958_v54  ;;  %v8047_v54 = vld [vmem:[%s10271_s9 + $0x3ec] ss:$16 sps:$4 sm:$0xff]  }
 0x5ba   : > { %4054 = vmatprep.subr.bf16.mxu0 %v7963_v30  ;;  %v8045_v30 = vld [vmem:[%s10271_s9 + $0x3e8] ss:$16 sps:$4 sm:$0xff]  }
 0x5bd   : > { %4055 = vmatpush1.bf16.msra.mxu0 %v7961_v32  ;;  %v8050_v32 = vld [vmem:[%s10271_s9 + $0x404] ss:$16 sps:$4 sm:$0xff]  }
 0x5be   : > { %4056 = vmatprep.subr.bf16.mxu0 %v7966_v46  ;;  %v8048_v46 = vld [vmem:[%s10271_s9 + $0x400] ss:$16 sps:$4 sm:$0xff]  }
 0x5c1   : > { %4057 = vmatpush1.bf16.msra.mxu0 %v7964_v63  ;;  %v8053_v63 = vld [vmem:[%s10271_s9 + $0x424] ss:$16 sps:$4 sm:$0xff]  }
 0x5c2   : > { %4058 = vmatprep.subr.bf16.mxu0 %v7969_v5  ;;  %v8051_v5 = vld [vmem:[%s10271_s9 + $0x420] ss:$16 sps:$4 sm:$0xff]  }
 0x5c5   : > { %4059 = vmatpush1.bf16.msra.mxu0 %v7967_v9  ;;  %v8056_v9 = vld [vmem:[%s10271_s9 + $0x444] ss:$16 sps:$4 sm:$0xff]  }
 0x5c6   : > { %4060 = vmatprep.subr.bf16.mxu0 %v7972_v11  ;;  %v8054_v11 = vld [vmem:[%s10271_s9 + $0x440] ss:$16 sps:$4 sm:$0xff]  }
 0x5c9   : > { %4061 = vmatpush1.bf16.msra.mxu0 %v7970_v29  ;;  %v8057_v29 = vld [vmem:[%s10271_s9 + $0x460] ss:$16 sps:$4 sm:$0xff]  }
 0x5ca   : > { %4062 = vmatprep.subr.bf16.mxu0 %v7975_v55  ;;  %v8062_v55 = vld [vmem:[%s10271_s9 + $0x484] ss:$16 sps:$4 sm:$0xff]  }
 0x5cd   : > { %4063 = vmatpush1.bf16.msra.mxu0 %v7973_v48  ;;  %v8060_v48 = vld [vmem:[%s10271_s9 + $0x480] ss:$16 sps:$4 sm:$0xff]  }
 0x5ce   : > { %4091 = vmatprep.subr.bf16.mxu0 %v7978_v57  ;;  %v8065_v57 = vld [vmem:[%s10271_s9 + $0x4a4] ss:$16 sps:$4 sm:$0xff]  }
 0x5d0   : > { %4081 = vmatmul.mubr.bf16.vlgmr.msra.gmra.mrb[0].mxu0 %v3854_v27 }
 0x5d1   : > { %4092 = vmatpush1.bf16.msra.mxu0 %v7976_v58  ;;  %4123 = vmatprep.mubr.bf16.mxu0 %v10380_v0  ;;  %v8068_v58 = vld [vmem:[%s10271_s9 + $0x4c4] ss:$16 sps:$4 sm:$0xff]  }
 0x5d2   : > { %4093 = vmatprep.subr.bf16.mxu0 %v7981_v4  ;;  %v8066_v4 = vld [vmem:[%s10271_s9 + $0x4c0] ss:$16 sps:$4 sm:$0xff]  }
 0x5d5   : > { %4094 = vmatpush1.bf16.msra.mxu0 %v7979_v2  ;;  %v8071_v2 = vld [vmem:[%s10271_s9 + $0x4e4] ss:$16 sps:$4 sm:$0xff]  }
 0x5d6   : > { %4095 = vmatprep.subr.bf16.mxu0 %v7984_v62  ;;  %v8069_v62 = vld [vmem:[%s10271_s9 + $0x4e0] ss:$16 sps:$4 sm:$0xff]  }
 0x5d9   : > { %4096 = vmatpush1.bf16.msra.mxu0 %v7982_v42  ;;  %v8074_v42 = vld [vmem:[%s10271_s9 + $0x40c] ss:$16 sps:$4 sm:$0xff]  }
 0x5da   : > { %4097 = vmatprep.subr.bf16.mxu0 %v7987_v36 }
 0x5dd   : > { %4098 = vmatpush1.bf16.msra.mxu0 %v7985_v22  ;;  %v8072_v22 = vld [vmem:[%s10271_s9 + $0x408] ss:$16 sps:$4 sm:$0xff]  }
 0x5de   : > { %4099 = vmatprep.subr.bf16.mxu0 %v7990_v38 }
 0x5e1   : > { %4100 = vmatpush1.bf16.msra.mxu0 %v7988_v33  ;;  %v8077_v33 = vld [vmem:[%s10271_s9 + $0x42c] ss:$16 sps:$4 sm:$0xff]  }
 0x5e2   : > { %4101 = vmatprep.subr.bf16.mxu0 %v7993_v16  ;;  %v8075_v16 = vld [vmem:[%s10271_s9 + $0x428] ss:$16 sps:$4 sm:$0xff]  }
 0x5e5   : > { %4102 = vmatpush1.bf16.msra.mxu0 %v7991_v50  ;;  %v8080_v50 = vld [vmem:[%s10271_s9 + $0x44c] ss:$16 sps:$4 sm:$0xff]  }
 0x5e6   : > { %4103 = vmatprep.subr.bf16.mxu0 %v7996_v1  ;;  %v8078_v1 = vld [vmem:[%s10271_s9 + $0x448] ss:$16 sps:$4 sm:$0xff]  }
 0x5e9   : > { %4104 = vmatpush1.bf16.msra.mxu0 %v7994_v35  ;;  %v8083_v35 = vld [vmem:[%s10271_s9 + $0x46c] ss:$16 sps:$4 sm:$0xff]  }
 0x5ea   : > { %4105 = vmatprep.subr.bf16.mxu0 %v7999_v3  ;;  %v8081_v3 = vld [vmem:[%s10271_s9 + $0x468] ss:$16 sps:$4 sm:$0xff]  }
 0x5ed   : > { %4106 = vmatpush1.bf16.msra.mxu0 %v7997_v8  ;;  %v8086_v8 = vld [vmem:[%s10271_s9 + $0x48c] ss:$16 sps:$4 sm:$0xff]  }
 0x5ee   : > { %4336 = vmatprep.subr.bf16.mxu0 %v8002_v6  ;;  %v8084_v6 = vld [vmem:[%s10271_s9 + $0x488] ss:$16 sps:$4 sm:$0xff]  }
 0x5f0   : > { %4124 = vmatmul.mubr.bf16.vlgmr.msra.gmra.mrb[4].mxu0 %v3854_v27  ;;  %v3287_v27 = vpop.trf.xlu0 }
 0x5f1   : > { %4337 = vmatpush1.bf16.msra.mxu0 %v8000_v12  ;;  %4368 = vmatprep.mubr.bf16.mxu0 %v10380_v0  ;;  %v8089_v12 = vld [vmem:[%s10271_s9 + $0x4ac] ss:$16 sps:$4 sm:$0xff]  }
 0x5f2   : > { %4338 = vmatprep.subr.bf16.mxu0 %v8005_v43  ;;  %v8087_v43 = vld [vmem:[%s10271_s9 + $0x4a8] ss:$16 sps:$4 sm:$0xff]  }
 0x5f4   : > { %v3288_v36 = vpop.trf.xlu0 }
 0x5f5   : > { %4339 = vmatpush1.bf16.msra.mxu0 %v8003_v45  ;;  %v4430_v38 = vpack.c.bf16 %v3288_v36, %v3287_v27  ;;  %v8092_v45 = vld [vmem:[%s10271_s9 + $0x4cc] ss:$16 sps:$4 sm:$0xff]   ;;  %v8147_v27 = vld [vmem:[%s10271_s9 + $0x620] ss:$16 sps:$4 sm:$0xff]   ;;  %v8155_v36 = vld [vmem:[%s10271_s9 + $0x664] ss:$16 sps:$4 sm:$0xff]  }
 0x5f6   : > { %4340 = vmatprep.subr.bf16.mxu0 %v8008_v14  ;;  %v8090_v14 = vld [vmem:[%s10271_s9 + $0x4c8] ss:$16 sps:$4 sm:$0xff]  }
 0x5f9   : > { %4341 = vmatpush1.bf16.msra.mxu0 %v8006_v17  ;;  %v8095_v17 = vld [vmem:[%s10271_s9 + $0x4ec] ss:$16 sps:$4 sm:$0xff]  }
 0x5fa   : > { %4342 = vmatprep.subr.bf16.mxu0 %v8011_v20  ;;  %v8093_v20 = vld [vmem:[%s10271_s9 + $0x4e8] ss:$16 sps:$4 sm:$0xff]  }
 0x5fd   : > { %4343 = vmatpush1.bf16.msra.mxu0 %v8009_v23  ;;  %v8098_v23 = vld [vmem:[%s10271_s9 + $0x504] ss:$16 sps:$4 sm:$0xff]  }
 0x5fe   : > { %4344 = vmatprep.subr.bf16.mxu0 %v8014_v31  ;;  %v8096_v31 = vld [vmem:[%s10271_s9 + $0x500] ss:$16 sps:$4 sm:$0xff]  }
 0x601   : > { %4345 = vmatpush1.bf16.msra.mxu0 %v8012_v34  ;;  %v8101_v34 = vld [vmem:[%s10271_s9 + $0x524] ss:$16 sps:$4 sm:$0xff]  }
 0x602   : > { %4346 = vmatprep.subr.bf16.mxu0 %v8017_v37  ;;  %v8099_v37 = vld [vmem:[%s10271_s9 + $0x520] ss:$16 sps:$4 sm:$0xff]  }
 0x605   : > { %4347 = vmatpush1.bf16.msra.mxu0 %v8015_v40  ;;  %v8104_v40 = vld [vmem:[%s10271_s9 + $0x544] ss:$16 sps:$4 sm:$0xff]  }
 0x606   : > { %4348 = vmatprep.subr.bf16.mxu0 %v8020_v49  ;;  %v8102_v49 = vld [vmem:[%s10271_s9 + $0x540] ss:$16 sps:$4 sm:$0xff]  }
 0x609   : > { %4349 = vmatpush1.bf16.msra.mxu0 %v8018_v56  ;;  %v8105_v56 = vld [vmem:[%s10271_s9 + $0x560] ss:$16 sps:$4 sm:$0xff]  }
 0x60a   : > { %4350 = vmatprep.subr.bf16.mxu0 %v8023_v59  ;;  %v8110_v59 = vld [vmem:[%s10271_s9 + $0x584] ss:$16 sps:$4 sm:$0xff]  }
 0x60d   : > { %4351 = vmatpush1.bf16.msra.mxu0 %v8021_v10  ;;  %v8108_v10 = vld [vmem:[%s10271_s9 + $0x580] ss:$16 sps:$4 sm:$0xff]  }
 0x60e   : > { %4379 = vmatprep.subr.bf16.mxu0 %v8026_v15  ;;  %v8113_v15 = vld [vmem:[%s10271_s9 + $0x5a4] ss:$16 sps:$4 sm:$0xff]  }
 0x610   : > { %4369 = vmatmul.mubr.bf16.vlgmr.msra.gmra.mrb[0].mxu0 %v4142_v39 }
 0x611   : > { %4380 = vmatpush1.bf16.msra.mxu0 %v8024_v24  ;;  %4411 = vmatprep.mubr.bf16.mxu0 %v10380_v0  ;;  %v8116_v24 = vld [vmem:[%s10271_s9 + $0x5c4] ss:$16 sps:$4 sm:$0xff]  }
 0x612   : > { %4381 = vmatprep.subr.bf16.mxu0 %v8029_v44  ;;  %v8114_v44 = vld [vmem:[%s10271_s9 + $0x5c0] ss:$16 sps:$4 sm:$0xff]  }
 0x615   : > { %4382 = vmatpush1.bf16.msra.mxu0 %v8027_v47  ;;  %v8119_v47 = vld [vmem:[%s10271_s9 + $0x5e4] ss:$16 sps:$4 sm:$0xff]  }
 0x616   : > { %4383 = vmatprep.subr.bf16.mxu0 %v8032_v51  ;;  %v8117_v51 = vld [vmem:[%s10271_s9 + $0x5e0] ss:$16 sps:$4 sm:$0xff]  }
 0x619   : > { %4384 = vmatpush1.bf16.msra.mxu0 %v8030_v7  ;;  %v8122_v7 = vld [vmem:[%s10271_s9 + $0x50c] ss:$16 sps:$4 sm:$0xff]  }
 0x61a   : > { %4385 = vmatprep.subr.bf16.mxu0 %v8035_v13 }
 0x61d   : > { %4386 = vmatpush1.bf16.msra.mxu0 %v8033_v21  ;;  %v8120_v21 = vld [vmem:[%s10271_s9 + $0x508] ss:$16 sps:$4 sm:$0xff]  }
 0x61e   : > { %4387 = vmatprep.subr.bf16.mxu0 %v8038_v60 }
 0x621   : > { %4388 = vmatpush1.bf16.msra.mxu0 %v8036_v61  ;;  %v8125_v61 = vld [vmem:[%s10271_s9 + $0x52c] ss:$16 sps:$4 sm:$0xff]  }
 0x622   : > { %4389 = vmatprep.subr.bf16.mxu0 %v8041_v28  ;;  %v8123_v28 = vld [vmem:[%s10271_s9 + $0x528] ss:$16 sps:$4 sm:$0xff]  }
 0x625   : > { %4390 = vmatpush1.bf16.msra.mxu0 %v8039_v25  ;;  %v8128_v25 = vld [vmem:[%s10271_s9 + $0x54c] ss:$16 sps:$4 sm:$0xff]  }
 0x626   : > { %4391 = vmatprep.subr.bf16.mxu0 %v8044_v26  ;;  %v8126_v26 = vld [vmem:[%s10271_s9 + $0x548] ss:$16 sps:$4 sm:$0xff]  }
 0x629   : > { %4392 = vmatpush1.bf16.msra.mxu0 %v8042_v52  ;;  %v8131_v52 = vld [vmem:[%s10271_s9 + $0x56c] ss:$16 sps:$4 sm:$0xff]  }
 0x62a   : > { %4393 = vmatprep.subr.bf16.mxu0 %v8047_v54  ;;  %v8129_v54 = vld [vmem:[%s10271_s9 + $0x568] ss:$16 sps:$4 sm:$0xff]  }
 0x62d   : > { %4394 = vmatpush1.bf16.msra.mxu0 %v8045_v30  ;;  %v8134_v30 = vld [vmem:[%s10271_s9 + $0x58c] ss:$16 sps:$4 sm:$0xff]  }
 0x62e   : > { %4624 = vmatprep.subr.bf16.mxu0 %v8050_v32  ;;  %v8132_v32 = vld [vmem:[%s10271_s9 + $0x588] ss:$16 sps:$4 sm:$0xff]  }
 0x630   : > { %4412 = vmatmul.mubr.bf16.vlgmr.msra.gmra.mrb[4].mxu0 %v4142_v39  ;;  %v3289_v39 = vpop.trf.xlu0 }
 0x631   : > { %4625 = vmatpush1.bf16.msra.mxu0 %v8048_v46  ;;  %4656 = vmatprep.mubr.bf16.mxu0 %v10380_v0  ;;  %v8137_v46 = vld [vmem:[%s10271_s9 + $0x5ac] ss:$16 sps:$4 sm:$0xff]  }
 0x632   : > { %4626 = vmatprep.subr.bf16.mxu0 %v8053_v63  ;;  %v8135_v63 = vld [vmem:[%s10271_s9 + $0x5a8] ss:$16 sps:$4 sm:$0xff]  }
 0x634   : > { %v3290_v13 = vpop.trf.xlu0 }
 0x635   : > { %4627 = vmatpush1.bf16.msra.mxu0 %v8051_v5  ;;  %v4718_v60 = vpack.c.bf16 %v3290_v13, %v3289_v39  ;;  %v8140_v5 = vld [vmem:[%s10271_s9 + $0x5cc] ss:$16 sps:$4 sm:$0xff]   ;;  %v8183_v39 = vld [vmem:[%s10271_s9 + $0x6a8] ss:$16 sps:$4 sm:$0xff]   ;;  %v8194_v13 = vld [vmem:[%s10271_s9 + $0x704] ss:$16 sps:$4 sm:$0xff]  }
 0x636   : > { %4628 = vmatprep.subr.bf16.mxu0 %v8056_v9  ;;  %v8138_v9 = vld [vmem:[%s10271_s9 + $0x5c8] ss:$16 sps:$4 sm:$0xff]  }
 0x639   : > { %4629 = vmatpush1.bf16.msra.mxu0 %v8054_v11  ;;  %v8143_v11 = vld [vmem:[%s10271_s9 + $0x5ec] ss:$16 sps:$4 sm:$0xff]  }
 0x63a   : > { %4630 = vmatprep.subr.bf16.mxu0 %v8059_v18  ;;  %v8141_v18 = vld [vmem:[%s10271_s9 + $0x5e8] ss:$16 sps:$4 sm:$0xff]  }
 0x63d   : > { %4631 = vmatpush1.bf16.msra.mxu0 %v8057_v29  ;;  %v8146_v29 = vld [vmem:[%s10271_s9 + $0x604] ss:$16 sps:$4 sm:$0xff]  }
 0x63e   : > { %4632 = vmatprep.subr.bf16.mxu0 %v8062_v55  ;;  %v8144_v55 = vld [vmem:[%s10271_s9 + $0x600] ss:$16 sps:$4 sm:$0xff]  }
 0x641   : > { %4633 = vmatpush1.bf16.msra.mxu0 %v8060_v48  ;;  %v8149_v48 = vld [vmem:[%s10271_s9 + $0x624] ss:$16 sps:$4 sm:$0xff]  }
 0x642   : > { %4634 = vmatprep.subr.bf16.mxu0 %v8065_v57  ;;  %v8240_v57 = vld [vmem:[%s10273_s11 + $0x40] sm:$0xff]  }
 0x643   : > { %7084 = vmatprep.subr.bf16.mxu1 %v8240_v57 }
 0x645   : > { %4635 = vmatpush1.bf16.msra.mxu0 %v8063_v41  ;;  %v8241_v41 = vld [vmem:[%s10273_s11] sm:$0xff]  }
 0x646   : > { %4636 = vmatprep.subr.bf16.mxu0 %v8068_v58  ;;  %v8242_v58 = vld [vmem:[%s10273_s11 + $0x48] sm:$0xff]   ;;  %7085 = vmatpush3.bf16.msra.mxu1 %v8241_v41 }
 0x647   : > { %7086 = vmatprep.subr.bf16.mxu1 %v8242_v58  ;;  %v8221_v41 = vld [vmem:[%s10271_s9 + $0x72c] ss:$16 sps:$4 sm:$0xff]   ;;  %v8219_v58 = vld [vmem:[%s10271_s9 + $0x728] ss:$16 sps:$4 sm:$0xff]  }
 0x649   : > { %4637 = vmatpush1.bf16.msra.mxu0 %v8066_v4  ;;  %v8152_v4 = vld [vmem:[%s10271_s9 + $0x644] ss:$16 sps:$4 sm:$0xff]  }
 0x64a   : > { %4638 = vmatprep.subr.bf16.mxu0 %v8071_v2  ;;  %v8243_v2 = vld [vmem:[%s10273_s11 + $0x8] sm:$0xff]  }
 0x64b   : > { %7087 = vmatpush3.bf16.msra.mxu1 %v8243_v2  ;;  %v8227_v2 = vld [vmem:[%s10271_s9 + $0x76c] ss:$16 sps:$4 sm:$0xff]  }
 0x64d   : > { %4639 = vmatpush1.bf16.msra.mxu0 %v8069_v62  ;;  %v8244_v62 = vld [vmem:[%s10273_s11 + $0x50] sm:$0xff]  }
 0x64e   : > { %4667 = vmatprep.subr.bf16.mxu0 %v8074_v42  ;;  %v8150_v42 = vld [vmem:[%s10271_s9 + $0x640] ss:$16 sps:$4 sm:$0xff]   ;;  %7088 = vmatprep.subr.bf16.mxu1 %v8244_v62  ;;  %v8230_v62 = vld [vmem:[%s10271_s9 + $0x78c] ss:$16 sps:$4 sm:$0xff]  }
 0x650   : > { %4657 = vmatmul.mubr.bf16.vlgmr.msra.gmra.mrb[0].mxu0 %v4430_v38 }
 0x651   : > { %4668 = vmatpush1.bf16.msra.mxu0 %v8072_v22  ;;  %4699 = vmatprep.mubr.bf16.mxu0 %v10380_v0  ;;  %v8245_v22 = vld [vmem:[%s10273_s11 + $0x10] sm:$0xff]  }
 0x652   : > { %4669 = vmatprep.subr.bf16.mxu0 %v8077_v33  ;;  %v8153_v33 = vld [vmem:[%s10271_s9 + $0x660] ss:$16 sps:$4 sm:$0xff]   ;;  %7089 = vmatpush3.bf16.msra.mxu1 %v8245_v22  ;;  %v8231_v22 = vld [vmem:[%s10271_s9 + $0x7a8] ss:$16 sps:$4 sm:$0xff]  }
 0x655   : > { %4670 = vmatpush1.bf16.msra.mxu0 %v8075_v16  ;;  %v8158_v16 = vld [vmem:[%s10271_s9 + $0x684] ss:$16 sps:$4 sm:$0xff]  }
 0x656   : > { %4671 = vmatprep.subr.bf16.mxu0 %v8080_v50  ;;  %v8247_v50 = vld [vmem:[%s10273_s11 + $0x18] sm:$0xff]  }
 0x659   : > { %4672 = vmatpush1.bf16.msra.mxu0 %v8078_v1  ;;  %v8248_v1 = vld [vmem:[%s10273_s11 + $0x60] sm:$0xff]  }
 0x65a   : > { %4673 = vmatprep.subr.bf16.mxu0 %v8083_v35  ;;  %v8156_v35 = vld [vmem:[%s10271_s9 + $0x680] ss:$16 sps:$4 sm:$0xff]  }
 0x65d   : > { %4674 = vmatpush1.bf16.msra.mxu0 %v8081_v3  ;;  %v8161_v3 = vld [vmem:[%s10271_s9 + $0x6a4] ss:$16 sps:$4 sm:$0xff]  }
 0x65e   : > { %4675 = vmatprep.subr.bf16.mxu0 %v8086_v8  ;;  %v8249_v8 = vld [vmem:[%s10273_s11 + $0x20] sm:$0xff]  }
 0x661   : > { %4676 = vmatpush1.bf16.msra.mxu0 %v8084_v6  ;;  %v8250_v6 = vld [vmem:[%s10273_s11 + $0x68] sm:$0xff]  }
 0x662   : > { %4677 = vmatprep.subr.bf16.mxu0 %v8089_v12  ;;  %v8159_v12 = vld [vmem:[%s10271_s9 + $0x6a0] ss:$16 sps:$4 sm:$0xff]  }
 0x665   : > { %4678 = vmatpush1.bf16.msra.mxu0 %v8087_v43  ;;  %v8164_v43 = vld [vmem:[%s10271_s9 + $0x6c4] ss:$16 sps:$4 sm:$0xff]  }
 0x666   : > { %4679 = vmatprep.subr.bf16.mxu0 %v8092_v45  ;;  %v3291_v45 = vpop.trf.xlu0 }
 0x669   : > { %4680 = vmatpush1.bf16.msra.mxu0 %v8090_v14  ;;  %v8162_v14 = vld [vmem:[%s10271_s9 + $0x6c0] ss:$16 sps:$4 sm:$0xff]  }
 0x66a   : > { %4681 = vmatprep.subr.bf16.mxu0 %v8095_v17  ;;  %v8167_v17 = vld [vmem:[%s10271_s9 + $0x6e4] ss:$16 sps:$4 sm:$0xff]  }
 0x66d   : > { %4682 = vmatpush1.bf16.msra.mxu0 %v8093_v20  ;;  %v8165_v20 = vld [vmem:[%s10271_s9 + $0x6e0] ss:$16 sps:$4 sm:$0xff]  }
 0x66e   : > { %4912 = vmatprep.subr.bf16.mxu0 %v8098_v23  ;;  %v8170_v23 = vld [vmem:[%s10271_s9 + $0x60c] ss:$16 sps:$4 sm:$0xff]  }
 0x670   : > { %4700 = vmatmul.mubr.bf16.vlgmr.msra.gmra.mrb[4].mxu0 %v4430_v38  ;;  %v8246_v38 = vld [vmem:[%s10273_s11 + $0x58] sm:$0xff]  }
 0x671   : > { %4913 = vmatpush1.bf16.msra.mxu0 %v8096_v31  ;;  %4944 = vmatprep.mubr.bf16.mxu0 %v10380_v0  ;;  %v3292_v31 = vpop.trf.xlu0 }
 0x672   : > { %4914 = vmatprep.subr.bf16.mxu0 %v8101_v34  ;;  %7090 = vmatprep.subr.bf16.mxu1 %v8246_v38  ;;  %v8168_v34 = vld [vmem:[%s10271_s9 + $0x608] ss:$16 sps:$4 sm:$0xff]   ;;  %v8236_v38 = vld [vmem:[%s10271_s9 + $0x7cc] ss:$16 sps:$4 sm:$0xff]  }
 0x673   : > { %7091 = vmatpush3.bf16.msra.mxu1 %v8247_v50  ;;  %v8237_v50 = vld [vmem:[%s10271_s9 + $0x7e8] ss:$16 sps:$4 sm:$0xff]  }
 0x674   : > { %7092 = vmatprep.subr.bf16.mxu1 %v8248_v1  ;;  %v8251_v1 = vld [vmem:[%s10273_s11 + $0x28] sm:$0xff]  }
 0x675   : > { %4915 = vmatpush1.bf16.msra.mxu0 %v8099_v37  ;;  %v5006_v37 = vpack.c.bf16 %v3292_v31, %v3291_v45 }
 0x676   : > { %4916 = vmatprep.subr.bf16.mxu0 %v8104_v40  ;;  %v8173_v40 = vld [vmem:[%s10271_s9 + $0x62c] ss:$16 sps:$4 sm:$0xff]  }
 0x677   : > { %7093 = vmatpush3.bf16.msra.mxu1 %v8249_v8  ;;  %v8254_v8 = vld [vmem:[%s10273_s11 + $0x78] sm:$0xff]  }
 0x678   : > { %7094 = vmatprep.subr.bf16.mxu1 %v8250_v6  ;;  %v8255_v6 = vld [vmem:[%s10273_s11 + $0x38] sm:$0xff]  }
 0x679   : > { %4917 = vmatpush1.bf16.msra.mxu0 %v8102_v49  ;;  %v8171_v49 = vld [vmem:[%s10271_s9 + $0x628] ss:$16 sps:$4 sm:$0xff]  }
 0x67a   : > { %4918 = vmatprep.subr.bf16.mxu0 %v8107_v53  ;;  %v8176_v53 = vld [vmem:[%s10271_s9 + $0x64c] ss:$16 sps:$4 sm:$0xff]  }
 0x67b   : > { %7095 = vmatpush3.bf16.msra.mxu1 %v8251_v1 }
 0x67d   : > { %4919 = vmatpush1.bf16.msra.mxu0 %v8105_v56  ;;  %v8174_v56 = vld [vmem:[%s10271_s9 + $0x648] ss:$16 sps:$4 sm:$0xff]  }
 0x67e   : > { %4920 = vmatprep.subr.bf16.mxu0 %v8110_v59  ;;  %v8179_v59 = vld [vmem:[%s10271_s9 + $0x66c] ss:$16 sps:$4 sm:$0xff]  }
 0x681   : > { %4921 = vmatpush1.bf16.msra.mxu0 %v8108_v10  ;;  %v8177_v10 = vld [vmem:[%s10271_s9 + $0x668] ss:$16 sps:$4 sm:$0xff]  }
 0x682   : > { %4922 = vmatprep.subr.bf16.mxu0 %v8113_v15  ;;  %v8182_v15 = vld [vmem:[%s10271_s9 + $0x68c] ss:$16 sps:$4 sm:$0xff]  }
 0x685   : > { %4923 = vmatpush1.bf16.msra.mxu0 %v8111_v19  ;;  %v8180_v19 = vld [vmem:[%s10271_s9 + $0x688] ss:$16 sps:$4 sm:$0xff]  }
 0x686   : > { %4924 = vmatprep.subr.bf16.mxu0 %v8116_v24  ;;  %v8185_v24 = vld [vmem:[%s10271_s9 + $0x6ac] ss:$16 sps:$4 sm:$0xff]  }
 0x689   : > { %4925 = vmatpush1.bf16.msra.mxu0 %v8114_v44  ;;  %v8188_v44 = vld [vmem:[%s10271_s9 + $0x6cc] ss:$16 sps:$4 sm:$0xff]  }
 0x68a   : > { %4926 = vmatprep.subr.bf16.mxu0 %v8119_v47  ;;  %v8186_v47 = vld [vmem:[%s10271_s9 + $0x6c8] ss:$16 sps:$4 sm:$0xff]  }
 0x68d   : > { %4927 = vmatpush1.bf16.msra.mxu0 %v8117_v51  ;;  %v8191_v51 = vld [vmem:[%s10271_s9 + $0x6ec] ss:$16 sps:$4 sm:$0xff]  }
 0x68e   : > { %4955 = vmatprep.subr.bf16.mxu0 %v8122_v7  ;;  %v8189_v7 = vld [vmem:[%s10271_s9 + $0x6e8] ss:$16 sps:$4 sm:$0xff]  }
 0x690   : > { %4945 = vmatmul.mubr.bf16.vlgmr.msra.gmra.mrb[0].mxu0 %v4718_v60 }
 0x691   : > { %4956 = vmatpush1.bf16.msra.mxu0 %v8120_v21  ;;  %4987 = vmatprep.mubr.bf16.mxu0 %v10380_v0  ;;  %v8192_v21 = vld [vmem:[%s10271_s9 + $0x700] ss:$16 sps:$4 sm:$0xff]  }
 0x692   : > { %4957 = vmatprep.subr.bf16.mxu0 %v8125_v61  ;;  %v8195_v61 = vld [vmem:[%s10271_s9 + $0x720] ss:$16 sps:$4 sm:$0xff]  }
 0x695   : > { %4958 = vmatpush1.bf16.msra.mxu0 %v8123_v28  ;;  %v8200_v28 = vld [vmem:[%s10271_s9 + $0x744] ss:$16 sps:$4 sm:$0xff]  }
 0x696   : > { %4959 = vmatprep.subr.bf16.mxu0 %v8128_v25  ;;  %v8198_v25 = vld [vmem:[%s10271_s9 + $0x740] ss:$16 sps:$4 sm:$0xff]  }
 0x699   : > { %4960 = vmatpush1.bf16.msra.mxu0 %v8126_v26  ;;  %v8203_v26 = vld [vmem:[%s10271_s9 + $0x764] ss:$16 sps:$4 sm:$0xff]  }
 0x69a   : > { %4961 = vmatprep.subr.bf16.mxu0 %v8131_v52  ;;  %v8201_v52 = vld [vmem:[%s10271_s9 + $0x760] ss:$16 sps:$4 sm:$0xff]  }
 0x69d   : > { %4962 = vmatpush1.bf16.msra.mxu0 %v8129_v54  ;;  %v8206_v54 = vld [vmem:[%s10271_s9 + $0x784] ss:$16 sps:$4 sm:$0xff]  }
 0x69e   : > { %4963 = vmatprep.subr.bf16.mxu0 %v8134_v30  ;;  %v8204_v30 = vld [vmem:[%s10271_s9 + $0x780] ss:$16 sps:$4 sm:$0xff]  }
 0x6a1   : > { %4964 = vmatpush1.bf16.msra.mxu0 %v8132_v32  ;;  %v8209_v32 = vld [vmem:[%s10271_s9 + $0x7a4] ss:$16 sps:$4 sm:$0xff]  }
 0x6a2   : > { %4965 = vmatprep.subr.bf16.mxu0 %v8137_v46  ;;  %v8207_v46 = vld [vmem:[%s10271_s9 + $0x7a0] ss:$16 sps:$4 sm:$0xff]  }
 0x6a5   : > { %4966 = vmatpush1.bf16.msra.mxu0 %v8135_v63  ;;  %v8212_v63 = vld [vmem:[%s10271_s9 + $0x7c4] ss:$16 sps:$4 sm:$0xff]  }
 0x6a6   : > { %4967 = vmatprep.subr.bf16.mxu0 %v8140_v5  ;;  %v3293_v5 = vpop.trf.xlu0 }
 0x6a9   : > { %4968 = vmatpush1.bf16.msra.mxu0 %v8138_v9  ;;  %v8210_v9 = vld [vmem:[%s10271_s9 + $0x7c0] ss:$16 sps:$4 sm:$0xff]  }
 0x6aa   : > { %4969 = vmatprep.subr.bf16.mxu0 %v8143_v11  ;;  %v8215_v11 = vld [vmem:[%s10271_s9 + $0x7e4] ss:$16 sps:$4 sm:$0xff]  }
 0x6ad   : > { %4970 = vmatpush1.bf16.msra.mxu0 %v8141_v18  ;;  %v8213_v18 = vld [vmem:[%s10271_s9 + $0x7e0] ss:$16 sps:$4 sm:$0xff]  }
 0x6ae   : > { %5200 = vmatprep.subr.bf16.mxu0 %v8146_v29  ;;  %v8218_v29 = vld [vmem:[%s10271_s9 + $0x70c] ss:$16 sps:$4 sm:$0xff]  }
 0x6b0   : > { %4988 = vmatmul.mubr.bf16.vlgmr.msra.gmra.mrb[4].mxu0 %v4718_v60  ;;  %v8197_v60 = vld [vmem:[%s10271_s9 + $0x724] ss:$16 sps:$4 sm:$0xff]  }
 0x6b1   : > { %5201 = vmatpush1.bf16.msra.mxu0 %v8144_v55  ;;  %5232 = vmatprep.mubr.bf16.mxu0 %v10380_v0  ;;  %v3294_v55 = vpop.trf.xlu0 }
 0x6b2   : > { %5202 = vmatprep.subr.bf16.mxu0 %v8149_v48  ;;  %v8216_v48 = vld [vmem:[%s10271_s9 + $0x708] ss:$16 sps:$4 sm:$0xff]   ;;  %v5294_v57 = vpack.c.bf16 %v3294_v55, %v3293_v5 }
 0x6b5   : > { %5203 = vmatpush1.bf16.msra.mxu0 %v8147_v27  ;;  %v8224_v27 = vld [vmem:[%s10271_s9 + $0x74c] ss:$16 sps:$4 sm:$0xff]  }
 0x6b6   : > { %5204 = vmatprep.subr.bf16.mxu0 %v8152_v4  ;;  %v8222_v4 = vld [vmem:[%s10271_s9 + $0x748] ss:$16 sps:$4 sm:$0xff]  }
 0x6b9   : > { %5205 = vmatpush1.bf16.msra.mxu0 %v8150_v42  ;;  %v8228_v42 = vld [vmem:[%s10271_s9 + $0x788] ss:$16 sps:$4 sm:$0xff]  }
 0x6ba   : > { %5206 = vmatprep.subr.bf16.mxu0 %v8155_v36  ;;  %v8233_v36 = vld [vmem:[%s10271_s9 + $0x7ac] ss:$16 sps:$4 sm:$0xff]  }
 0x6bd   : > { %5207 = vmatpush1.bf16.msra.mxu0 %v8153_v33  ;;  %v8234_v33 = vld [vmem:[%s10271_s9 + $0x7c8] ss:$16 sps:$4 sm:$0xff]  }
 0x6be   : > { %5208 = vmatprep.subr.bf16.mxu0 %v8158_v16  ;;  %v8239_v16 = vld [vmem:[%s10271_s9 + $0x7ec] ss:$16 sps:$4 sm:$0xff]  }
 0x6c1   : > { %5209 = vmatpush1.bf16.msra.mxu0 %v8156_v35  ;;  %v8252_v35 = vld [vmem:[%s10273_s11 + $0x70] sm:$0xff]  }
 0x6c2   : > { %5210 = vmatprep.subr.bf16.mxu0 %v8161_v3  ;;  %v8253_v3 = vld [vmem:[%s10273_s11 + $0x30] sm:$0xff]   ;;  %7096 = vmatprep.subr.bf16.mxu1 %v8252_v35  ;;  %v5975_v35 = vld [vmem:[%s10275_s13 + $0x20] sm:$0xff] }
 0x6c3   : > { %7097 = vmatpush3.bf16.msra.mxu1 %v8253_v3  ;;  %v5976_v3 = vld [vmem:[%s10275_s13 + $0x28] sm:$0xff] }
 0x6c4   : > { %7098 = vmatprep.subr.bf16.mxu1 %v8254_v8  ;;  %v7541_v8 = vpack.c.bf16 %v5976_v3, %v5975_v35 }
 0x6c5   : > { %5211 = vmatpush1.bf16.msra.mxu0 %v8159_v12  ;;  %v8256_v12 = vld [vmem:[%s10273_s11 + $0xc0] sm:$0xff]  }
 0x6c6   : > { %5212 = vmatprep.subr.bf16.mxu0 %v8164_v43  ;;  %v10381_v43 = vld [vmem:[#allocation3_spill] sm:$0xff] }
 0x6c7   : > { %7099 = vmatpush3.bf16.msra.mxu1 %v8255_v6  ;;  %v5586_v45 = vsub.s32 0, %v10381_v43  ;;  %v5977_v6 = vld [vmem:[%s10275_s13 + $0x30] sm:$0xff] }
 0x6c8   : > { %7106 = vmatprep.subr.bf16.mxu1 %v8256_v12  ;;  %v5978_v12 = vld [vmem:[%s10275_s13 + $0x38] sm:$0xff] }
 0x6c9   : > { %5213 = vmatpush1.bf16.msra.mxu0 %v8162_v14  ;;  %v5582_v14 = vld [vmem:[%s10272_s10] sm:$0xf] }
 0x6ca   : > { %5214 = vmatprep.subr.bf16.mxu0 %v8167_v17  ;;  %v5590_v17 = vsub.s32 1, %v10381_v43 }
 0x6cd   : > { %5215 = vmatpush1.bf16.msra.mxu0 %v8165_v20  ;;  %v5587_v20 = vrot.slane %v5582_v14, %v5586_v45  ;;  %v5979_v45 = vld [vmem:[%s10275_s13 + $0x40] sm:$0xff] }
 0x6ce   : > { %5243 = vmatprep.subr.bf16.mxu0 %v8170_v23  ;;  %v5591_v23 = vrot.slane %v5582_v14, %v5590_v17 }
 0x6d0   : > { %5233 = vmatmul.mubr.bf16.vlgmr.msra.gmra.mrb[0].mxu0 %v5006_v37 }
 0x6d1   : > { %5244 = vmatpush1.bf16.msra.mxu0 %v8168_v34  ;;  %5275 = vmatprep.mubr.bf16.mxu0 %v10380_v0 }
 0x6d2   : > { %5245 = vmatprep.subr.bf16.mxu0 %v8173_v40 }
 0x6d5   : > { %5246 = vmatpush1.bf16.msra.mxu0 %v8171_v49 }
 0x6d6   : > { %5247 = vmatprep.subr.bf16.mxu0 %v8176_v53 }
 0x6d9   : > { %5248 = vmatpush1.bf16.msra.mxu0 %v8174_v56 }
 0x6da   : > { %5249 = vmatprep.subr.bf16.mxu0 %v8179_v59 }
 0x6dd   : > { %5250 = vmatpush1.bf16.msra.mxu0 %v8177_v10 }
 0x6de   : > { %5251 = vmatprep.subr.bf16.mxu0 %v8182_v15 }
 0x6e1   : > { %5252 = vmatpush1.bf16.msra.mxu0 %v8180_v19 }
 0x6e2   : > { %5253 = vmatprep.subr.bf16.mxu0 %v8185_v24 }
 0x6e5   : > { %5254 = vmatpush1.bf16.msra.mxu0 %v8183_v39 }
 0x6e6   : > { %5255 = vmatprep.subr.bf16.mxu0 %v8188_v44 }
 0x6e9   : > { %5256 = vmatpush1.bf16.msra.mxu0 %v8186_v47  ;;  %v8257_v47 = vld [vmem:[%s10273_s11 + $0x80] sm:$0xff]  }
 0x6ea   : > { %5257 = vmatprep.subr.bf16.mxu0 %v8191_v51  ;;  %v8258_v51 = vld [vmem:[%s10273_s11 + $0xc8] sm:$0xff]  }
 0x6ed   : > { %5258 = vmatpush1.bf16.msra.mxu0 %v8189_v7  ;;  %v8259_v7 = vld [vmem:[%s10273_s11 + $0x88] sm:$0xff]  }
 0x6ee   : > { %5488 = vmatprep.subr.bf16.mxu0 %v8194_v13  ;;  %v8260_v13 = vld [vmem:[%s10273_s11 + $0xd0] sm:$0xff]  }
 0x6f0   : > { %5276 = vmatmul.mubr.bf16.vlgmr.msra.gmra.mrb[4].mxu0 %v5006_v37 }
 0x6f1   : > { %5489 = vmatpush1.bf16.msra.mxu0 %v8192_v21  ;;  %5520 = vmatprep.mubr.bf16.mxu0 %v10380_v0  ;;  %v8261_v21 = vld [vmem:[%s10273_s11 + $0x90] sm:$0xff]  }
 0x6f2   : > { %5490 = vmatprep.subr.bf16.mxu0 %v8197_v60  ;;  %v8262_v60 = vld [vmem:[%s10273_s11 + $0xd8] sm:$0xff]  }
 0x6f5   : > { %5491 = vmatpush1.bf16.msra.mxu0 %v8195_v61  ;;  %v8263_v61 = vld [vmem:[%s10273_s11 + $0x98] sm:$0xff]  }
 0x6f6   : > { %5492 = vmatprep.subr.bf16.mxu0 %v8200_v28  ;;  %v8264_v28 = vld [vmem:[%s10273_s11 + $0xe0] sm:$0xff]  }
 0x6f9   : > { %5493 = vmatpush1.bf16.msra.mxu0 %v8198_v25  ;;  %v8265_v25 = vld [vmem:[%s10273_s11 + $0xa0] sm:$0xff]  }
 0x6fa   : > { %5494 = vmatprep.subr.bf16.mxu0 %v8203_v26  ;;  %v8266_v26 = vld [vmem:[%s10273_s11 + $0xe8] sm:$0xff]  }
 0x6fd   : > { %5495 = vmatpush1.bf16.msra.mxu0 %v8201_v52  ;;  %v5594_v52 = vsub.s32 2, %v10381_v43 }
 0x6fe   : > { %5496 = vmatprep.subr.bf16.mxu0 %v8206_v54  ;;  %v5598_v54 = vsub.s32 3, %v10381_v43  ;;  %v7545_v43 = vpack.c.bf16 %v5978_v12, %v5977_v6 }
 0x701   : > { %5497 = vmatpush1.bf16.msra.mxu0 %v8204_v30  ;;  %v8267_v30 = vld [vmem:[%s10273_s11 + $0xa8] sm:$0xff]  }
 0x702   : > { %5498 = vmatprep.subr.bf16.mxu0 %v8209_v32  ;;  %v5595_v32 = vrot.slane %v5582_v14, %v5594_v52 }
 0x705   : > { %5499 = vmatpush1.bf16.msra.mxu0 %v8207_v46  ;;  %v8268_v46 = vld [vmem:[%s10273_s11 + $0xf0] sm:$0xff]  }
 0x706   : > { %5500 = vmatprep.subr.bf16.mxu0 %v8212_v63  ;;  %v5599_v63 = vrot.slane %v5582_v14, %v5598_v54  ;;  %v5980_v14 = vld [vmem:[%s10275_s13 + $0x48] sm:$0xff] }
 0x707   : > { %v7549_v17 = vpack.c.bf16 %v5980_v14, %v5979_v45 }
 0x709   : > { %5501 = vmatpush1.bf16.msra.mxu0 %v8210_v9  ;;  %v8269_v9 = vld [vmem:[%s10273_s11 + $0xb0] sm:$0xff]  }
 0x70a   : > { %5502 = vmatprep.subr.bf16.mxu0 %v8215_v11 }
 0x70d   : > { %5503 = vmatpush1.bf16.msra.mxu0 %v8213_v18 }
 0x70e   : > { %5531 = vmatprep.subr.bf16.mxu0 %v8218_v29  ;;  %v8270_v29 = vld [vmem:[%s10273_s11 + $0xf8] sm:$0xff]  }
 0x710   : > { %5521 = vmatmul.mubr.bf16.vlgmr.msra.gmra.mrb[0].mxu0 %v5294_v57 }
 0x711   : > { %5532 = vmatpush1.bf16.msra.mxu0 %v8216_v48  ;;  %5563 = vmatprep.mubr.bf16.mxu0 %v10380_v0  ;;  %v8225_v0 = vld [vmem:[%s10271_s9 + $0x768] ss:$16 sps:$4 sm:$0xff]  }
 0x712   : > { %5533 = vmatprep.subr.bf16.mxu0 %v8221_v41 }
 0x715   : > { %5534 = vmatpush1.bf16.msra.mxu0 %v8219_v58 }
 0x716   : > { %5535 = vmatprep.subr.bf16.mxu0 %v8224_v27  ;;  %v8271_v27 = vld [vmem:[%s10273_s11 + $0xb8] sm:$0xff]  }
 0x719   : > { %5536 = vmatpush1.bf16.msra.mxu0 %v8222_v4 }
 0x71a   : > { %5537 = vmatprep.subr.bf16.mxu0 %v8227_v2 }
 0x71d   : > { %5538 = vmatpush1.bf16.msra.mxu0 %v8225_v0 }
 0x71e   : > { %5539 = vmatprep.subr.bf16.mxu0 %v8230_v62 }
 0x721   : > { %5540 = vmatpush1.bf16.msra.mxu0 %v8228_v42 }
 0x722   : > { %5541 = vmatprep.subr.bf16.mxu0 %v8233_v36 }
 0x725   : > { %5542 = vmatpush1.bf16.msra.mxu0 %v8231_v22  ;;  %v5971_v22 = vld [vmem:[%s10275_s13] sm:$0xff] }
 0x726   : > { %5543 = vmatprep.subr.bf16.mxu0 %v8236_v38  ;;  %v5972_v38 = vld [vmem:[%s10275_s13 + $0x8] sm:$0xff] }
 0x729   : > { %5544 = vmatpush1.bf16.msra.mxu0 %v8234_v33  ;;  %v5973_v33 = vld [vmem:[%s10275_s13 + $0x10] sm:$0xff] }
 0x72a   : > { %5545 = vmatprep.subr.bf16.mxu0 %v8239_v16  ;;  %v7533_v16 = vpack.c.bf16 %v5972_v38, %v5971_v22 }
 0x72d   : > { %5546 = vmatpush1.bf16.msra.mxu0 %v8237_v50  ;;  %v5974_v50 = vld [vmem:[%s10275_s13 + $0x18] sm:$0xff] }
 0x72e   : > { %v7537_v1 = vpack.c.bf16 %v5974_v50, %v5973_v33 }
 0x730   : > { %5564 = vmatmul.mubr.bf16.vlgmr.msra.gmra.mrb[4].mxu0 %v5294_v57 }
 0x7e3   : > { %v5522_v31 = vpop.f32.mrb[0].mxu0 }
 0x7e4   : > { %v5604_v34 = vadd.f32 %v5587_v20, %v5522_v31  ;;  %v5524_v37 = vpop.f32.mrb[1].mxu0 }
 0x7e5   : > { %v5605_v40 = vadd.f32 %v5591_v23, %v5524_v37  ;;  %v5526_v49 = vpop.f32.mrb[2].mxu0  ;;  %v5984_v37 = vld [vmem:[%s10275_s13 + $0x68] sm:$0xff] }
 0x7e6   : > { %v5608_v53 = vadd.f32 %v5587_v20, %v5526_v49  ;;  %v5528_v56 = vpop.f32.mrb[3].mxu0  ;;  %v5612_v10 = vmax.f32 %v5604_v34, 0.0  ;;  %v5981_v20 = vld [vmem:[%s10275_s13 + $0x50] sm:$0xff]  ;;  %v5983_v34 = vld [vmem:[%s10275_s13 + $0x60] sm:$0xff] }
 0x7e7   : > { %v5609_v59 = vadd.f32 %v5591_v23, %v5528_v56  ;;  %v5613_v19 = vmax.f32 %v5605_v40, 0.0  ;;  %v5982_v23 = vld [vmem:[%s10275_s13 + $0x58] sm:$0xff]  ;;  %v7557_v40 = vpack.c.bf16 %v5984_v37, %v5983_v34  ;;  %v5985_v49 = vld [vmem:[%s10275_s13 + $0x70] sm:$0xff] }
 0x7e8   : > { %v5616_v15 = vmax.f32 %v5608_v53, 0.0  ;;  %v7553_v31 = vpack.c.bf16 %v5982_v23, %v5981_v20  ;;  %v5986_v53 = vld [vmem:[%s10275_s13 + $0x78] sm:$0xff] }
 0x7e9   : > { %v5617_v24 = vmax.f32 %v5609_v59, 0.0  ;;  %v7561_v56 = vpack.c.bf16 %v5986_v53, %v5985_v49 }
 0x7ea   : > { %v5620_v39 = vpack.c.bf16 %v5616_v15, %v5612_v10 }
 0x7eb   : > { %v5621_v44 = vpack.c.bf16 %v5617_v24, %v5613_v19 }
 0x7ed   : > { %5919 = vmatprep.mubr.bf16.mxu1 %v5621_v44  ;;  %v6871_v44 = vld [vmem:[%s10274_s12] ss:$0 sm:$0xff] }
 0x7ee   : > { %5920 = vmatmul.mubr.bf16.vlgmr.msra.gmra.mrb[80].mxu1 %v5620_v39 }
 0x7ef   : > { %7107 = vmatpush3.bf16.msra.mxu1 %v8257_v47 }
 0x7f0   : > { %7108 = vmatprep.subr.bf16.mxu1 %v8258_v51 }
 0x7f3   : > { %7109 = vmatpush3.bf16.msra.mxu1 %v8259_v7 }
 0x7f4   : > { %7110 = vmatprep.subr.bf16.mxu1 %v8260_v13 }
 0x7f7   : > { %7111 = vmatpush3.bf16.msra.mxu1 %v8261_v21 }
 0x7f8   : > { %7112 = vmatprep.subr.bf16.mxu1 %v8262_v60 }
 0x7fb   : > { %7113 = vmatpush3.bf16.msra.mxu1 %v8263_v61 }
 0x7fc   : > { %7114 = vmatprep.subr.bf16.mxu1 %v8264_v28 }
 0x7ff   : > { %7115 = vmatpush3.bf16.msra.mxu1 %v8265_v25 }
 0x800   : > { %7116 = vmatprep.subr.bf16.mxu1 %v8266_v26 }
 0x803   : > { %v5565_v5 = vpop.f32.mrb[4].mxu0  ;;  %7117 = vmatpush3.bf16.msra.mxu1 %v8267_v30  ;;  %v6904_v30 = vld [vmem:[%s10276_s14] ss:$0 sm:$0xff] }
 0x804   : > { %v5606_v11 = vadd.f32 %v5595_v32, %v5565_v5  ;;  %v5567_v18 = vpop.f32.mrb[5].mxu0  ;;  %7118 = vmatprep.subr.bf16.mxu1 %v8268_v46 }
 0x805   : > { %v5607_v55 = vadd.f32 %v5599_v63, %v5567_v18  ;;  %v5569_v48 = vpop.f32.mrb[6].mxu0 }
 0x806   : > { %v5610_v57 = vadd.f32 %v5595_v32, %v5569_v48  ;;  %v5571_v41 = vpop.f32.mrb[7].mxu0  ;;  %v5614_v4 = vmax.f32 %v5606_v11, 0.0 }
 0x807   : > { %v5611_v58 = vadd.f32 %v5599_v63, %v5571_v41  ;;  %7119 = vmatpush3.bf16.msra.mxu1 %v8269_v9  ;;  %v5615_v0 = vmax.f32 %v5607_v55, 0.0 }
 0x808   : > { %v5618_v2 = vmax.f32 %v5610_v57, 0.0  ;;  %7120 = vmatprep.subr.bf16.mxu1 %v8270_v29 }
 0x809   : > { %v5619_v62 = vmax.f32 %v5611_v58, 0.0 }
 0x80a   : > { %v5622_v42 = vpack.c.bf16 %v5618_v2, %v5614_v4 }
 0x80b   : > { %v5623_v36 = vpack.c.bf16 %v5619_v62, %v5615_v0  ;;  %7121 = vmatpush3.bf16.msra.mxu1 %v8271_v27 }
 0x80c   : > { %7534 = vmatprep.subr.bf16.mxu1 %v7533_v16 }
 0x80d   : > { %5960 = vmatprep.mubr.bf16.mxu1 %v5623_v36 }
 0x80e   : > { %5961 = vmatmul.mubr.bf16.vlgmr.msra.gmra.mrb[84].mxu1 %v5622_v42 }
 0x80f   : > { %7536 = vmatpush3.bf16.msra.mxu1 %v7533_v16 }
 0x810   : > { %7538 = vmatprep.subr.bf16.mxu1 %v7537_v1 }
 0x813   : > { %7540 = vmatpush3.bf16.msra.mxu1 %v7537_v1 }
 0x814   : > { %7542 = vmatprep.subr.bf16.mxu1 %v7541_v8 }
 0x817   : > { %7544 = vmatpush3.bf16.msra.mxu1 %v7541_v8 }
 0x818   : > { %7546 = vmatprep.subr.bf16.mxu1 %v7545_v43 }
 0x81b   : > { %7548 = vmatpush3.bf16.msra.mxu1 %v7545_v43 }
 0x81c   : > { %7550 = vmatprep.subr.bf16.mxu1 %v7549_v17 }
 0x81f   : > { %7552 = vmatpush3.bf16.msra.mxu1 %v7549_v17 }
 0x820   : > { %7554 = vmatprep.subr.bf16.mxu1 %v7553_v31 }
 0x823   : > { %7556 = vmatpush3.bf16.msra.mxu1 %v7553_v31 }
 0x824   : > { %7558 = vmatprep.subr.bf16.mxu1 %v7557_v40 }
 0x827   : > { %7560 = vmatpush3.bf16.msra.mxu1 %v7557_v40 }
 0x828   : > { %7562 = vmatprep.subr.bf16.mxu1 %v7561_v56 }
 0x82b   : > { %7564 = vmatpush3.bf16.msra.mxu1 %v7561_v56 }
 0x8c1   : > { %v7100_v59 = vpop.f32.mrb[80].mxu1 }
 0x8c2   : > { %v7101_v10 = vpop.f32.mrb[81].mxu1 }
 0x8c3   : > { %v7102_v15 = vadd.f32 %v7101_v10, %v7100_v59  ;;  %v7103_v19 = vpop.f32.mrb[82].mxu1 }
 0x8c4   : > { %v7104_v24 = vpop.f32.mrb[83].mxu1 }
 0x8c5   : > { %v7105_v39 = vadd.f32 %v7104_v24, %v7103_v19  ;;  %v5922_v7 = vadd.f32 %v7102_v15, %v6871_v44 }
 0x8c7   : > { %v5925_v61 = vadd.f32 %v7105_v39, %v6871_v44 }
 0x8e1   : > { %v7122_v47 = vpop.f32.mrb[84].mxu1 }
 0x8e2   : > { %v7123_v51 = vpop.f32.mrb[85].mxu1 }
 0x8e3   : > { %v7124_v13 = vadd.f32 %v7123_v51, %v7122_v47  ;;  %v7125_v21 = vpop.f32.mrb[86].mxu1 }
 0x8e4   : > { %v7126_v60 = vpop.f32.mrb[87].mxu1 }
 0x8e5   : > { %v5963_v28 = vadd.f32 %v7124_v13, %v5922_v7  ;;  %v7127_v25 = vadd.f32 %v7126_v60, %v7125_v21 }
 0x8e7   : > { %v5969_v26 = vmax.f32 %v5963_v28, 0.0  ;;  %v5966_v52 = vadd.f32 %v7127_v25, %v5925_v61 }
 0x8e9   : > { %v5970_v54 = vmax.f32 %v5966_v52, 0.0  ;;  %7530 = vmatprep.mubr.f32.mxu1 %v5969_v26 }
 0x8eb   : > { %7531 = vmatmul.mubr.f32.vlgmr.msra.gmra.mrb[88].mxu1 %v5970_v54 }
 0x9be   : > { %v7532_v32 = vpop.f32.mrb[88].mxu1 }
 0x9bf   : > { %v6060_v46 = vpop.f32.mrb[89].mxu1  ;;  %v6066_v5 = vadd.f32 %v7532_v32, %v6904_v30 }
 0x9c0   : > { %v6061_v63 = vadd.f32 %v6904_v30, %v6060_v46 }
 0x9c2   : > { %6069 = vmax.xlane.f32.xlu1 %v6061_v63 }
 0x9c6   : > { %6071 = vmax.xlane.f32.xlu1 %v6066_v5 }
 0xa4f   : > { %v6070_v9 = vpop.xlane.xlu1 %6069 }
 0xa50   : > { %v6073_v11 = vsub.f32 %v6061_v63, %v6070_v9 }
 0xa52   : > { %v6075_v18 = vmul.f32 1.442695, %v6073_v11 }
 0xa53   : > { %v6072_v29 = vpop.xlane.xlu1 %6071 }
 0xa54   : > { %8272 = vpow2.f32 %v6075_v18  ;;  %v6074_v55 = vsub.f32 %v6066_v5, %v6072_v29 }
 0xa56   : > { %v6077_v48 = vmul.f32 1.442695, %v6074_v55 }
 0xa58   : > { %8274 = vpow2.f32 %v6077_v48 }
 0xa5e   : > { %v8273_v57 = vpop.eup %8272 }
 0xa5f   : > { %6079 = vadd.xlane.f32.xlu1 %v8273_v57 }
 0xa62   : > { %v8275_v41 = vpop.eup %8274 }
 0xa63   : > { %6081 = vadd.xlane.f32.xlu1 %v8275_v41 }
 0xaec   : > { %v6080_v58 = vpop.xlane.xlu1 %6079 }
 0xaed   : > { %8276 = vrcp.f32 %v6080_v58 }
 0xaf0   : > { %v6082_v27 = vpop.xlane.xlu1 %6081 }
 0xaf1   : > { %8278 = vrcp.f32 %v6082_v27 }
 0xaf7   : > { %v8277_v4 = vpop.eup %8276 }
 0xaf8   : > { %v6084_v2 = vmul.f32 %v8277_v4, %v8273_v57 }
 0xafa   : > { %6087 = vst [vmem:[%s494_s27] sm:$0xff] %v6084_v2 }
 0xafb   : > { %v8279_v0 = vpop.eup %8278 }
 0xafc   : > { %v6086_v62 = vmul.f32 %v8279_v0, %v8275_v41 }
 0xafe   : > { %6088 = vst [vmem:[%s494_s27 + $0x8] sm:$0xff] %v6086_v62 }
 0xaff PF: > { %s25_s18 = sadd.s32 1, %s8335_s18  }
 0xb00   : > { %p22_p5 = scmp.ge.s32.totalorder %s25_s18, 6  }
 0xb02   :  { %24 = sbr.rel (!%p22_p5) target bundleno = 1 (0x1), region = 125 }

</bundles_post_ra>
